<compile_context>
chip_gen: v7x
topology: tpu7x:2x2x1
jax: 0.10.0
libtpu: 0.0.40
codegen_flags: <defaults>
</compile_context>

<pallas_src>
import functools

import jax
import jax.numpy as jnp
from jax import lax
from jax.experimental import pallas as pl
from jax.experimental.pallas import tpu as pltpu

LANE = 128
PADL = 8  # left/top-of-W padding; 8-aligned so interior stores are sublane-aligned


def _round_up(x, m):
    return (x + m - 1) // m * m


def _tpu_kind():
    try:
        return jax.devices()[0].device_kind.lower()
    except Exception:  # pragma: no cover
        return ""


def _is_v5e(kind):
    return ("v5 lite" in kind) or ("v5e" in kind) or ("v5lite" in kind)


def _pick_tn(cout_p):
    # 256-wide output tiles match the v6e/v7x 2x256x256 MXU; v5e's MXU is
    # 4x128x128 so TN=256 only doubles accumulator pressure there.
    kind = _tpu_kind()
    if cout_p % 256 == 0 and not _is_v5e(kind):
        return 256
    return 128


def _vmem_limit_bytes():
    kind = _tpu_kind()
    if "v7" in kind:                      # 64 MiB physical per TC
        return 48 * 1024 * 1024
    if _is_v5e(kind) or "v6" in kind:     # 128 MiB physical
        return 96 * 1024 * 1024
    return 64 * 1024 * 1024


def _pick_th(ho, w8, tn):
    """Output rows per strip: keep the (TH*W8, TN) f32 accumulator vreg-resident."""
    budget = 96 * 1024                    # bytes; well under the 256 KiB vreg file
    m_max = max(8, budget // (tn * 4))
    th = 1
    for cand in range(1, ho + 1):
        if ho % cand == 0 and cand * w8 <= m_max:
            th = cand
    # TODO(synk): if w8 alone exceeds m_max (very wide images) add W tiling too.
    return th


def _compiler_params():
    return pltpu.CompilerParams(
        dimension_semantics=("parallel", "parallel"),
        vmem_limit_bytes=_vmem_limit_bytes())


# ----------------------------------------------------------------------------
# In-kernel helpers
# ----------------------------------------------------------------------------
def _accum_strip(x_ref, w_ref, r0, *, th, w8):
    """f32 accumulator for TH output rows of a 3x3 stride-1 conv.

    x_ref: (1, Hp, PW, Cin) halo-padded input (interior at row 1 / col PADL).
    w_ref: (9, Cin, TN) BN-folded weights, tap index = 3*ky + kx.
    r0:    first padded input row of this strip (== first output row).
    Only the three kx windows are shifted (copying) loads; the per-ky slice and
    the reshape are layout no-ops because w8 % 8 == 0.
    """
    cin = x_ref.shape[-1]
    tn = w_ref.shape[-1]
    acc = jnp.zeros((th * w8, tn), jnp.float32)
    for kx in range(3):
        patch = x_ref[:, pl.ds(r0, th + 2), pl.ds(PADL - 1 + kx, w8), :]
        for ky in range(3):
            lhs = patch[:, ky:ky + th].reshape(th * w8, cin)
            acc = acc + jnp.dot(lhs, w_ref[3 * ky + kx],
                                preferred_element_type=jnp.float32)
    return acc


# ----------------------------------------------------------------------------
# Kernels
# ----------------------------------------------------------------------------
def _conv_bn_relu_kernel(x_ref, w_ref, b_ref, o_ref, *, th, w8, wo, n_strips):
    """conv3x3(stride=1) + folded BN + ReLU, output written in halo-padded geometry."""
    hp, pw, tn = o_ref.shape[1], o_ref.shape[2], o_ref.shape[3]
    dt = o_ref.dtype
    # Zero the halo / padding regions every grid step so conv2 never reads
    # stale revolving-buffer contents.  All stores are sublane-aligned.
    o_ref[:, pl.ds(0, 1), :, :] = jnp.zeros((1, 1, pw, tn), dt)
    o_ref[:, pl.ds(hp - 1, 1), :, :] = jnp.zeros((1, 1, pw, tn), dt)
    o_ref[:, :, pl.ds(0, PADL), :] = jnp.zeros((1, hp, PADL, tn), dt)
    o_ref[:, :, pl.ds(PADL + w8, pw - PADL - w8), :] = jnp.zeros(
        (1, hp, pw - PADL - w8, tn), dt)

    if wo < w8:
        col = lax.broadcasted_iota(jnp.int32, (1, 1, w8, 1), 2)

    def strip(s, carry):
        r0 = pl.multiple_of(s * th, th)
        acc = _accum_strip(x_ref, w_ref, r0, th=th, w8=w8)
        y = jnp.maximum(acc + b_ref[...], 0.0).reshape(1, th, w8, tn)
        if wo < w8:
            y = jnp.where(col < wo, y, 0.0)   # keep conv2's right-halo reads zero
        o_ref[:, pl.ds(1 + r0, th), pl.ds(PADL, w8), :] = y.astype(dt)
        return carry

    lax.fori_loop(0, n_strips, strip, 0, unroll=n_strips <= 8)


def _conv_bn_add_relu_kernel(a_ref, w_ref, b_ref, r_ref, o_ref, *,
                             th, w8, n_strips):
    """conv3x3(1) + folded BN + identity residual + ReLU (fused epilogue)."""
    tn = o_ref.shape[-1]

    def strip(s, carry):
        r0 = pl.multiple_of(s * th, th)
        acc = _accum_strip(a_ref, w_ref, r0, th=th, w8=w8)
        res = r_ref[:, pl.ds(1 + r0, th), pl.ds(PADL, w8), :]
        res = res.reshape(th * w8, tn).astype(jnp.float32)
        y = jnp.maximum(acc + b_ref[...] + res, 0.0)
        o_ref[:, pl.ds(r0, th), :, :] = (
            y.reshape(1, th, w8, tn).astype(o_ref.dtype))
        return carry

    lax.fori_loop(0, n_strips, strip, 0, unroll=n_strips <= 8)


def _conv_bn_ds_residual_relu_kernel(a_ref, w_ref, b_ref, xr_ref, wd_ref,
                                     bd_ref, o_ref, *, th, w8, n_strips):
    """conv3x3(1) + folded BN + (1x1 downsample conv + BN) residual + ReLU."""
    cin = xr_ref.shape[-1]
    tn = o_ref.shape[-1]

    def strip(s, carry):
        r0 = pl.multiple_of(s * th, th)
        acc = _accum_strip(a_ref, w_ref, r0, th=th, w8=w8)
        xr = xr_ref[:, pl.ds(1 + r0, th), pl.ds(PADL, w8), :]
        xr = xr.reshape(th * w8, cin)
        res = jnp.dot(xr, wd_ref[...], preferred_element_type=jnp.float32)
        y = jnp.maximum(acc + b_ref[...] + res + bd_ref[...], 0.0)
        o_ref[:, pl.ds(r0, th), :, :] = (
            y.reshape(1, th, w8, tn).astype(o_ref.dtype))
        return carry

    lax.fori_loop(0, n_strips, strip, 0, unroll=n_strips <= 8)


# ----------------------------------------------------------------------------
# pallas_call wrappers
# ----------------------------------------------------------------------------
def conv3x3_bn_relu_padded(xp, w9, b, *, ho, wo, w8, out_dtype):
    n, hp_in, pw, cin = xp.shape
    cout = w9.shape[-1]
    tn = _pick_tn(cout)
    nb = cout // tn
    th = _pick_th(ho, w8, tn)
    n_strips = ho // th
    hp_out = ho + 2
    flops = 2 * n * ho * w8 * 9 * cin * cout
    bytes_acc = (xp.size * xp.dtype.itemsize + w9.size * w9.dtype.itemsize
                 + b.size * 4
                 + n * hp_out * pw * cout * jnp.dtype(out_dtype).itemsize)
    return pl.pallas_call(
        functools.partial(_conv_bn_relu_kernel, th=th, w8=w8, wo=wo,
                          n_strips=n_strips),
        grid=(nb, n),
        in_specs=[
            pl.BlockSpec((1, hp_in, pw, cin), lambda jc, bi: (bi, 0, 0, 0)),
            pl.BlockSpec((9, cin, tn), lambda jc, bi: (0, 0, jc)),
            pl.BlockSpec((1, tn), lambda jc, bi: (0, jc)),
        ],
        out_specs=pl.BlockSpec((1, hp_out, pw, tn), lambda jc, bi: (bi, 0, 0, jc)),
        out_shape=jax.ShapeDtypeStruct((n, hp_out, pw, cout), out_dtype),
        compiler_params=_compiler_params(),
        cost_estimate=pl.CostEstimate(flops=int(flops), transcendentals=0,
                                      bytes_accessed=int(bytes_acc)),
    )(xp, w9, b)


def conv3x3_bn_add_relu(ap, w9, b, resp, *, ho, wo, w8, out_dtype):
    n, hp, pw, cmid = ap.shape
    cout = w9.shape[-1]
    tn = _pick_tn(cout)
    nb = cout // tn
    th = _pick_th(ho, w8, tn)
    n_strips = ho // th
    flops = 2 * n * ho * w8 * 9 * cmid * cout
    bytes_acc = (ap.size * ap.dtype.itemsize + w9.size * w9.dtype.itemsize
                 + resp.size * resp.dtype.itemsize + b.size * 4
                 + n * ho * w8 * cout * jnp.dtype(out_dtype).itemsize)
    return pl.pallas_call(
        functools.partial(_conv_bn_add_relu_kernel, th=th, w8=w8,
                          n_strips=n_strips),
        grid=(nb, n),
        in_specs=[
            pl.BlockSpec((1, hp, pw, cmid), lambda jc, bi: (bi, 0, 0, 0)),
            pl.BlockSpec((9, cmid, tn), lambda jc, bi: (0, 0, jc)),
            pl.BlockSpec((1, tn), lambda jc, bi: (0, jc)),
            pl.BlockSpec((1, hp, pw, tn), lambda jc, bi: (bi, 0, 0, jc)),
        ],
        out_specs=pl.BlockSpec((1, ho, w8, tn), lambda jc, bi: (bi, 0, 0, jc)),
        out_shape=jax.ShapeDtypeStruct((n, ho, w8, cout), out_dtype),
        compiler_params=_compiler_params(),
        cost_estimate=pl.CostEstimate(flops=int(flops), transcendentals=0,
                                      bytes_accessed=int(bytes_acc)),
    )(ap, w9, b, resp)


def conv3x3_bn_ds_residual_relu(ap, w9, b, xrp, wd, bd, *, ho, wo, w8, out_dtype):
    n, hp, pw, cmid = ap.shape
    cin = xrp.shape[-1]
    cout = w9.shape[-1]
    tn = _pick_tn(cout)
    nb = cout // tn
    th = _pick_th(ho, w8, tn)
    n_strips = ho // th
    flops = 2 * n * ho * w8 * (9 * cmid + cin) * cout
    bytes_acc = (ap.size * ap.dtype.itemsize + w9.size * w9.dtype.itemsize
                 + xrp.size * xrp.dtype.itemsize + wd.size * wd.dtype.itemsize
                 + (b.size + bd.size) * 4
                 + n * ho * w8 * cout * jnp.dtype(out_dtype).itemsize)
    return pl.pallas_call(
        functools.partial(_conv_bn_ds_residual_relu_kernel, th=th, w8=w8,
                          n_strips=n_strips),
        grid=(nb, n),
        in_specs=[
            pl.BlockSpec((1, hp, pw, cmid), lambda jc, bi: (bi, 0, 0, 0)),
            pl.BlockSpec((9, cmid, tn), lambda jc, bi: (0, 0, jc)),
            pl.BlockSpec((1, tn), lambda jc, bi: (0, jc)),
            pl.BlockSpec((1, hp, pw, cin), lambda jc, bi: (bi, 0, 0, 0)),
            pl.BlockSpec((cin, tn), lambda jc, bi: (0, jc)),
            pl.BlockSpec((1, tn), lambda jc, bi: (0, jc)),
        ],
        out_specs=pl.BlockSpec((1, ho, w8, tn), lambda jc, bi: (bi, 0, 0, jc)),
        out_shape=jax.ShapeDtypeStruct((n, ho, w8, cout), out_dtype),
        compiler_params=_compiler_params(),
        cost_estimate=pl.CostEstimate(flops=int(flops), transcendentals=0,
                                      bytes_accessed=int(bytes_acc)),
    )(ap, w9, b, xrp, wd, bd)


# ----------------------------------------------------------------------------
# BasicBlock forward (Pallas path)
# ----------------------------------------------------------------------------
def basic_block_forward(x_nchw, params, *, cout, stride=1, downsampling=False,
                        compute_dtype=jnp.bfloat16):
    # TODO(synk): stride > 1 not implemented (phase-decomposed taps); module
    # default is stride=1 and the identity residual also requires it.
    assert stride == 1, "Pallas BasicBlock path implements stride == 1 only"

    x = jnp.transpose(x_nchw, (0, 2, 3, 1))              # NCHW -> NHWC
    n, h, w, cin = x.shape
    cin_p, cmid_p = params["w1"].shape[1], params["w1"].shape[2]
    cout_p = params["w2"].shape[2]
    if not downsampling:
        assert cin == cout and cin_p == cout_p

    ho, wo = h, w
    w8 = _round_up(wo, 8)
    pw = PADL + w8 + 8                                    # 8-aligned halo geometry

    # Model-boundary layout change (one fused XLA pass): NHWC, compute dtype,
    # channels padded to a multiple of 128, spatial halo pad with the interior
    # at row 1 / col PADL.
    xp = jnp.pad(x.astype(compute_dtype),
                 ((0, 0), (1, 1), (PADL, pw - PADL - w), (0, cin_p - cin)))

    # conv1 + BN1 + ReLU.  Output stays in compute dtype and is already in the
    # halo-padded geometry, so conv2 reads it directly (no jnp.pad round trip).
    a = conv3x3_bn_relu_padded(xp, params["w1"], params["b1"],
                               ho=ho, wo=wo, w8=w8, out_dtype=compute_dtype)

    # conv2 + BN2 + residual + ReLU fused in one kernel.  The residual source
    # is xp itself (interior window), so no extra residual tensor is written.
    if downsampling:
        out = conv3x3_bn_ds_residual_relu(a, params["w2"], params["b2"],
                                          xp, params["wd"], params["bd"],
                                          ho=ho, wo=wo, w8=w8,
                                          out_dtype=compute_dtype)
    else:
        out = conv3x3_bn_add_relu(a, params["w2"], params["b2"], xp,
                                  ho=ho, wo=wo, w8=w8, out_dtype=compute_dtype)

    # TODO(synk): when chaining blocks keep this padded-NHWC layout and only
    # convert at the real model boundary instead of per block.
    out = out[:, :, :wo, :cout].astype(jnp.float32)
    return jnp.transpose(out, (0, 3, 1, 2))               # back to NCHW


# ----------------------------------------------------------------------------
# Parameter preparation (BN folding, padding, layout, dtype)
# ----------------------------------------------------------------------------
def prepare_params(raw, *, downsampling, compute_dtype, eps=1e-5):
    cw1, cw2 = raw["cw1"], raw["cw2"]
    mid, cin = cw1.shape[0], cw1.shape[1]
    cout = cw2.shape[0]
    cin_p, mid_p, cout_p = (_round_up(c, LANE) for c in (cin, mid, cout))

    def fold3x3(w_oihw, bnp, ci_p, co_p):
        g, b, m, v = bnp
        scale = g / jnp.sqrt(v + eps)
        wt = jnp.transpose(w_oihw, (2, 3, 1, 0)) * scale       # (3,3,ci,co)
        bias = b - m * scale
        co, ci = w_oihw.shape[0], w_oihw.shape[1]
        wt = jnp.pad(wt, ((0, 0), (0, 0), (0, ci_p - ci), (0, co_p - co)))
        wt = wt.reshape(9, ci_p, co_p).astype(compute_dtype)
        bias = jnp.pad(bias, (0, co_p - co)).reshape(1, co_p).astype(jnp.float32)
        return wt, bias

    p = {}
    p["w1"], p["b1"] = fold3x3(cw1, raw["bn1"], cin_p, mid_p)
    p["w2"], p["b2"] = fold3x3(cw2, raw["bn2"], mid_p, cout_p)
    if downsampling:
        g, b, m, v = raw["bnd"]
        scale = g / jnp.sqrt(v + eps)
        wd = jnp.transpose(raw["cwd"][:, :, 0, 0], (1, 0)) * scale   # (cin, cout)
        bd = b - m * scale
        p["wd"] = jnp.pad(wd, ((0, cin_p - cin),
                               (0, cout_p - cout))).astype(compute_dtype)
        p["bd"] = jnp.pad(bd, (0, cout_p - cout)).reshape(1, cout_p).astype(jnp.float32)
    return p, cout


# ----------------------------------------------------------------------------
# Deterministic parameter init (PyTorch shapes) + pure-JAX reference
# ----------------------------------------------------------------------------
def init_raw_params(key, in_places, places, expansion, downsampling):
    # Note: the PyTorch BasicBlock is only shape-consistent for expansion == 1.
    assert expansion == 1
    cout = places * expansion
    ks = jax.random.split(key, 6)

    def conv_w(k, co, ci, kh, kw):
        return 0.1 * jax.random.normal(k, (co, ci, kh, kw), jnp.float32)

    def bn_p(k, c):
        k1, k2, k3, k4 = jax.random.split(k, 4)
        return (jax.random.uniform(k1, (c,), jnp.float32, 0.5, 1.5),
                0.1 * jax.random.normal(k2, (c,), jnp.float32),
                0.1 * jax.random.normal(k3, (c,), jnp.float32),
                jax.random.uniform(k4, (c,), jnp.float32, 0.5, 1.5))

    raw = {"cw1": conv_w(ks[0], places, in_places, 3, 3),
           "bn1": bn_p(ks[1], places),
           "cw2": conv_w(ks[2], places, places, 3, 3),
           "bn2": bn_p(ks[3], cout)}
    if downsampling:
        raw["cwd"] = conv_w(ks[4], cout, in_places, 1, 1)
        raw["bnd"] = bn_p(ks[5], cout)
    return raw


def ref_forward(x_nchw, raw, *, stride, downsampling, eps=1e-5):
    hi = jax.lax.Precision.HIGHEST

    def conv(x, w, s, pad):
        return jax.lax.conv_general_dilated(
            x, w, (s, s), [(pad, pad), (pad, pad)],
            dimension_numbers=("NCHW", "OIHW", "NCHW"), precision=hi)

    def bn(x, p):
        g, b, m, v = p
        sh = (1, -1, 1, 1)
        return ((x - m.reshape(sh)) / jnp.sqrt(v.reshape(sh) + eps)
                * g.reshape(sh) + b.reshape(sh))

    out = jax.nn.relu(bn(conv(x_nchw, raw["cw1"], stride, 1), raw["bn1"]))
    out = bn(conv(out, raw["cw2"], 1, 1), raw["bn2"])
    res = (bn(conv(x_nchw, raw["cwd"], stride, 0), raw["bnd"])
           if downsampling else x_nchw)
    return jax.nn.relu(out + res)


# ----------------------------------------------------------------------------
if __name__ == "__main__":
    N, H, W = 2, 16, 16
    expansion, stride = 1, 1

    key = jax.random.PRNGKey(0)
    kx, kp = jax.random.split(key)
    x = jax.random.normal(kx, (N, 4, H, W), jnp.float32)

    # Loose tolerance: the MXU may use reduced-precision passes for f32, and
    # the bf16 path quantizes weights / activations / the intermediate.
    cases = [(jnp.float32, 5e-2, 5e-2), (jnp.bfloat16, 5e-2, 5e-2)]

    # (in_places, places, downsampling): identity residual and 1x1-downsample
    # residual (channel expansion) variants, both at stride 1.
    configs = [(4, 4, False), (4, 8, True)]

    for in_places, places, downsampling in configs:
        raw = init_raw_params(kp, in_places, places, expansion, downsampling)
        ref = jax.block_until_ready(
            ref_forward(x, raw, stride=stride, downsampling=downsampling))
        for cdt, atol, rtol in cases:
            params, cout = prepare_params(raw, downsampling=downsampling,
                                          compute_dtype=cdt)
            fwd = jax.jit(functools.partial(
                basic_block_forward, cout=cout, stride=stride,
                downsampling=downsampling, compute_dtype=cdt))
            out = jax.block_until_ready(fwd(x, params))
            assert out.shape == (N, places * expansion, H, W), out.shape
            max_err = float(jnp.max(jnp.abs(out - ref)))
            assert jnp.allclose(out, ref, atol=atol, rtol=rtol), (
                downsampling, str(cdt), max_err)

    print("KERNEL_OK")
</pallas_src>

<mosaic_0001>
module attributes {stable_mosaic.version = 11 : i64} {
  func.func @_conv_bn_relu_kernel(%arg0: i32, %arg1: i32, %arg2: memref<1x18x32x128xf32, #tpu.memory_space<vmem>>, %arg3: memref<9x128x128xf32, #tpu.memory_space<vmem>>, %arg4: memref<1x128xf32, #tpu.memory_space<vmem>>, %arg5: memref<1x18x32x128xf32, #tpu.memory_space<vmem>>) attributes {dimension_semantics = [#tpu.dimension_semantics<parallel>, #tpu.dimension_semantics<parallel>], iteration_bounds = array<i64: 1, 2>, scalar_prefetch = 0 : i64, scratch_operands = 0 : i64, tpu.core_type = #tpu.core_type<tc>, window_params = [{transform_indices = @transform_0, window_bounds = array<i64: 1, 18, 32, 128>}, {transform_indices = @transform_1, window_bounds = array<i64: 9, 128, 128>}, {transform_indices = @transform_2, window_bounds = array<i64: 1, 128>}, {transform_indices = @transform_3, window_bounds = array<i64: 1, 18, 32, 128>}]} {
    %cst = arith.constant 0.000000e+00 : f32
    %0 = vector.broadcast %cst : f32 to vector<1x1x32x128xf32>
    %c0 = arith.constant 0 : index
    %c0_0 = arith.constant 0 : index
    %c0_1 = arith.constant 0 : index
    %c0_2 = arith.constant 0 : index
    %1 = vector.load %arg5[%c0, %c0_0, %c0_1, %c0_2] : memref<1x18x32x128xf32, #tpu.memory_space<vmem>>, vector<1x1x32x128xf32>
    tpu.vector_store %arg5[%c0, %c0_0, %c0_1, %c0_2], %0 {strides = array<i32>} : memref<1x18x32x128xf32, #tpu.memory_space<vmem>>, vector<1x1x32x128xf32>,
    %cst_3 = arith.constant 0.000000e+00 : f32
    %2 = vector.broadcast %cst_3 : f32 to vector<1x1x32x128xf32>
    %c0_4 = arith.constant 0 : index
    %c17 = arith.constant 17 : index
    %c0_5 = arith.constant 0 : index
    %c0_6 = arith.constant 0 : index
    %3 = vector.load %arg5[%c0_4, %c17, %c0_5, %c0_6] : memref<1x18x32x128xf32, #tpu.memory_space<vmem>>, vector<1x1x32x128xf32>
    tpu.vector_store %arg5[%c0_4, %c17, %c0_5, %c0_6], %2 {strides = array<i32>} : memref<1x18x32x128xf32, #tpu.memory_space<vmem>>, vector<1x1x32x128xf32>,
    %cst_7 = arith.constant 0.000000e+00 : f32
    %4 = vector.broadcast %cst_7 : f32 to vector<1x18x8x128xf32>
    %c0_8 = arith.constant 0 : index
    %c0_9 = arith.constant 0 : index
    %c0_10 = arith.constant 0 : index
    %c0_11 = arith.constant 0 : index
    %5 = vector.load %arg5[%c0_8, %c0_9, %c0_10, %c0_11] : memref<1x18x32x128xf32, #tpu.memory_space<vmem>>, vector<1x18x8x128xf32>
    tpu.vector_store %arg5[%c0_8, %c0_9, %c0_10, %c0_11], %4 {strides = array<i32>} : memref<1x18x32x128xf32, #tpu.memory_space<vmem>>, vector<1x18x8x128xf32>,
    %cst_12 = arith.constant 0.000000e+00 : f32
    %6 = vector.broadcast %cst_12 : f32 to vector<1x18x8x128xf32>
    %c0_13 = arith.constant 0 : index
    %c0_14 = arith.constant 0 : index
    %c24 = arith.constant 24 : index
    %c0_15 = arith.constant 0 : index
    %7 = vector.load %arg5[%c0_13, %c0_14, %c24, %c0_15] : memref<1x18x32x128xf32, #tpu.memory_space<vmem>>, vector<1x18x8x128xf32>
    tpu.vector_store %arg5[%c0_13, %c0_14, %c24, %c0_15], %6 {strides = array<i32>} : memref<1x18x32x128xf32, #tpu.memory_space<vmem>>, vector<1x18x8x128xf32>,
    %c0_i32 = arith.constant 0 : i32
    %c8_i32 = arith.constant 8 : i32
    %8 = arith.muli %c0_i32, %c8_i32 : i32
    %9 = tpu.assume_multiple %8, 8 : i32
    %cst_16 = arith.constant 0.000000e+00 : f32
    %10 = vector.broadcast %cst_16 : f32 to vector<128x128xf32>
    %c0_17 = arith.constant 0 : index
    %11 = arith.index_cast %9 : i32 to index
    %c7 = arith.constant 7 : index
    %c0_18 = arith.constant 0 : index
    %12 = vector.load %arg2[%c0_17, %11, %c7, %c0_18] : memref<1x18x32x128xf32, #tpu.memory_space<vmem>>, vector<1x10x16x128xf32>
    %13 = vector.extract_strided_slice %12 {offsets = [0, 0, 0, 0], sizes = [1, 8, 16, 128], strides = [1, 1, 1, 1]} : vector<1x10x16x128xf32> to vector<1x8x16x128xf32>
    %14 = vector.shape_cast %13 : vector<1x8x16x128xf32> to vector<128x128xf32>
    %c0_19 = arith.constant 0 : index
    %c0_20 = arith.constant 0 : index
    %c0_21 = arith.constant 0 : index
    %15 = vector.load %arg3[%c0_19, %c0_20, %c0_21] : memref<9x128x128xf32, #tpu.memory_space<vmem>>, vector<1x128x128xf32>
    %16 = vector.shape_cast %15 : vector<1x128x128xf32> to vector<128x128xf32>
    %cst_22 = arith.constant dense<0.000000e+00> : vector<128x128xf32>
    %17 = tpu.matmul %14, %16, %cst_22 {dimension_numbers = #tpu.dot_dimension_numbers<[1], [0], [0], [1], [0, 0, 1, 1], [], []>} : vector<128x128xf32>, vector<128x128xf32>, vector<128x128xf32> -> vector<128x128xf32>
    %18 = arith.addf %10, %17 : vector<128x128xf32>
    %19 = vector.extract_strided_slice %12 {offsets = [0, 1, 0, 0], sizes = [1, 8, 16, 128], strides = [1, 1, 1, 1]} : vector<1x10x16x128xf32> to vector<1x8x16x128xf32>
    %20 = vector.shape_cast %19 : vector<1x8x16x128xf32> to vector<128x128xf32>
    %c3 = arith.constant 3 : index
    %c0_23 = arith.constant 0 : index
    %c0_24 = arith.constant 0 : index
    %21 = vector.load %arg3[%c3, %c0_23, %c0_24] : memref<9x128x128xf32, #tpu.memory_space<vmem>>, vector<1x128x128xf32>
    %22 = vector.shape_cast %21 : vector<1x128x128xf32> to vector<128x128xf32>
    %cst_25 = arith.constant dense<0.000000e+00> : vector<128x128xf32>
    %23 = tpu.matmul %20, %22, %cst_25 {dimension_numbers = #tpu.dot_dimension_numbers<[1], [0], [0], [1], [0, 0, 1, 1], [], []>} : vector<128x128xf32>, vector<128x128xf32>, vector<128x128xf32> -> vector<128x128xf32>
    %24 = arith.addf %18, %23 : vector<128x128xf32>
    %25 = vector.extract_strided_slice %12 {offsets = [0, 2, 0, 0], sizes = [1, 8, 16, 128], strides = [1, 1, 1, 1]} : vector<1x10x16x128xf32> to vector<1x8x16x128xf32>
    %26 = vector.shape_cast %25 : vector<1x8x16x128xf32> to vector<128x128xf32>
    %c6 = arith.constant 6 : index
    %c0_26 = arith.constant 0 : index
    %c0_27 = arith.constant 0 : index
    %27 = vector.load %arg3[%c6, %c0_26, %c0_27] : memref<9x128x128xf32, #tpu.memory_space<vmem>>, vector<1x128x128xf32>
    %28 = vector.shape_cast %27 : vector<1x128x128xf32> to vector<128x128xf32>
    %cst_28 = arith.constant dense<0.000000e+00> : vector<128x128xf32>
    %29 = tpu.matmul %26, %28, %cst_28 {dimension_numbers = #tpu.dot_dimension_numbers<[1], [0], [0], [1], [0, 0, 1, 1], [], []>} : vector<128x128xf32>, vector<128x128xf32>, vector<128x128xf32> -> vector<128x128xf32>
    %30 = arith.addf %24, %29 : vector<128x128xf32>
    %c0_29 = arith.constant 0 : index
    %31 = arith.index_cast %9 : i32 to index
    %c8 = arith.constant 8 : index
    %c0_30 = arith.constant 0 : index
    %32 = vector.load %arg2[%c0_29, %31, %c8, %c0_30] : memref<1x18x32x128xf32, #tpu.memory_space<vmem>>, vector<1x10x16x128xf32>
    %33 = vector.extract_strided_slice %32 {offsets = [0, 0, 0, 0], sizes = [1, 8, 16, 128], strides = [1, 1, 1, 1]} : vector<1x10x16x128xf32> to vector<1x8x16x128xf32>
    %34 = vector.shape_cast %33 : vector<1x8x16x128xf32> to vector<128x128xf32>
    %c1 = arith.constant 1 : index
    %c0_31 = arith.constant 0 : index
    %c0_32 = arith.constant 0 : index
    %35 = vector.load %arg3[%c1, %c0_31, %c0_32] : memref<9x128x128xf32, #tpu.memory_space<vmem>>, vector<1x128x128xf32>
    %36 = vector.shape_cast %35 : vector<1x128x128xf32> to vector<128x128xf32>
    %cst_33 = arith.constant dense<0.000000e+00> : vector<128x128xf32>
    %37 = tpu.matmul %34, %36, %cst_33 {dimension_numbers = #tpu.dot_dimension_numbers<[1], [0], [0], [1], [0, 0, 1, 1], [], []>} : vector<128x128xf32>, vector<128x128xf32>, vector<128x128xf32> -> vector<128x128xf32>
    %38 = arith.addf %30, %37 : vector<128x128xf32>
    %39 = vector.extract_strided_slice %32 {offsets = [0, 1, 0, 0], sizes = [1, 8, 16, 128], strides = [1, 1, 1, 1]} : vector<1x10x16x128xf32> to vector<1x8x16x128xf32>
    %40 = vector.shape_cast %39 : vector<1x8x16x128xf32> to vector<128x128xf32>
    %c4 = arith.constant 4 : index
    %c0_34 = arith.constant 0 : index
    %c0_35 = arith.constant 0 : index
    %41 = vector.load %arg3[%c4, %c0_34, %c0_35] : memref<9x128x128xf32, #tpu.memory_space<vmem>>, vector<1x128x128xf32>
    %42 = vector.shape_cast %41 : vector<1x128x128xf32> to vector<128x128xf32>
    %cst_36 = arith.constant dense<0.000000e+00> : vector<128x128xf32>
    %43 = tpu.matmul %40, %42, %cst_36 {dimension_numbers = #tpu.dot_dimension_numbers<[1], [0], [0], [1], [0, 0, 1, 1], [], []>} : vector<128x128xf32>, vector<128x128xf32>, vector<128x128xf32> -> vector<128x128xf32>
    %44 = arith.addf %38, %43 : vector<128x128xf32>
    %45 = vector.extract_strided_slice %32 {offsets = [0, 2, 0, 0], sizes = [1, 8, 16, 128], strides = [1, 1, 1, 1]} : vector<1x10x16x128xf32> to vector<1x8x16x128xf32>
    %46 = vector.shape_cast %45 : vector<1x8x16x128xf32> to vector<128x128xf32>
    %c7_37 = arith.constant 7 : index
    %c0_38 = arith.constant 0 : index
    %c0_39 = arith.constant 0 : index
    %47 = vector.load %arg3[%c7_37, %c0_38, %c0_39] : memref<9x128x128xf32, #tpu.memory_space<vmem>>, vector<1x128x128xf32>
    %48 = vector.shape_cast %47 : vector<1x128x128xf32> to vector<128x128xf32>
    %cst_40 = arith.constant dense<0.000000e+00> : vector<128x128xf32>
    %49 = tpu.matmul %46, %48, %cst_40 {dimension_numbers = #tpu.dot_dimension_numbers<[1], [0], [0], [1], [0, 0, 1, 1], [], []>} : vector<128x128xf32>, vector<128x128xf32>, vector<128x128xf32> -> vector<128x128xf32>
    %50 = arith.addf %44, %49 : vector<128x128xf32>
    %c0_41 = arith.constant 0 : index
    %51 = arith.index_cast %9 : i32 to index
    %c9 = arith.constant 9 : index
    %c0_42 = arith.constant 0 : index
    %52 = vector.load %arg2[%c0_41, %51, %c9, %c0_42] : memref<1x18x32x128xf32, #tpu.memory_space<vmem>>, vector<1x10x16x128xf32>
    %53 = vector.extract_strided_slice %52 {offsets = [0, 0, 0, 0], sizes = [1, 8, 16, 128], strides = [1, 1, 1, 1]} : vector<1x10x16x128xf32> to vector<1x8x16x128xf32>
    %54 = vector.shape_cast %53 : vector<1x8x16x128xf32> to vector<128x128xf32>
    %c2 = arith.constant 2 : index
    %c0_43 = arith.constant 0 : index
    %c0_44 = arith.constant 0 : index
    %55 = vector.load %arg3[%c2, %c0_43, %c0_44] : memref<9x128x128xf32, #tpu.memory_space<vmem>>, vector<1x128x128xf32>
    %56 = vector.shape_cast %55 : vector<1x128x128xf32> to vector<128x128xf32>
    %cst_45 = arith.constant dense<0.000000e+00> : vector<128x128xf32>
    %57 = tpu.matmul %54, %56, %cst_45 {dimension_numbers = #tpu.dot_dimension_numbers<[1], [0], [0], [1], [0, 0, 1, 1], [], []>} : vector<128x128xf32>, vector<128x128xf32>, vector<128x128xf32> -> vector<128x128xf32>
    %58 = arith.addf %50, %57 : vector<128x128xf32>
    %59 = vector.extract_strided_slice %52 {offsets = [0, 1, 0, 0], sizes = [1, 8, 16, 128], strides = [1, 1, 1, 1]} : vector<1x10x16x128xf32> to vector<1x8x16x128xf32>
    %60 = vector.shape_cast %59 : vector<1x8x16x128xf32> to vector<128x128xf32>
    %c5 = arith.constant 5 : index
    %c0_46 = arith.constant 0 : index
    %c0_47 = arith.constant 0 : index
    %61 = vector.load %arg3[%c5, %c0_46, %c0_47] : memref<9x128x128xf32, #tpu.memory_space<vmem>>, vector<1x128x128xf32>
    %62 = vector.shape_cast %61 : vector<1x128x128xf32> to vector<128x128xf32>
    %cst_48 = arith.constant dense<0.000000e+00> : vector<128x128xf32>
    %63 = tpu.matmul %60, %62, %cst_48 {dimension_numbers = #tpu.dot_dimension_numbers<[1], [0], [0], [1], [0, 0, 1, 1], [], []>} : vector<128x128xf32>, vector<128x128xf32>, vector<128x128xf32> -> vector<128x128xf32>
    %64 = arith.addf %58, %63 : vector<128x128xf32>
    %65 = vector.extract_strided_slice %52 {offsets = [0, 2, 0, 0], sizes = [1, 8, 16, 128], strides = [1, 1, 1, 1]} : vector<1x10x16x128xf32> to vector<1x8x16x128xf32>
    %66 = vector.shape_cast %65 : vector<1x8x16x128xf32> to vector<128x128xf32>
    %c8_49 = arith.constant 8 : index
    %c0_50 = arith.constant 0 : index
    %c0_51 = arith.constant 0 : index
    %67 = vector.load %arg3[%c8_49, %c0_50, %c0_51] : memref<9x128x128xf32, #tpu.memory_space<vmem>>, vector<1x128x128xf32>
    %68 = vector.shape_cast %67 : vector<1x128x128xf32> to vector<128x128xf32>
    %cst_52 = arith.constant dense<0.000000e+00> : vector<128x128xf32>
    %69 = tpu.matmul %66, %68, %cst_52 {dimension_numbers = #tpu.dot_dimension_numbers<[1], [0], [0], [1], [0, 0, 1, 1], [], []>} : vector<128x128xf32>, vector<128x128xf32>, vector<128x128xf32> -> vector<128x128xf32>
    %70 = arith.addf %64, %69 : vector<128x128xf32>
    %c0_53 = arith.constant 0 : index
    %c0_54 = arith.constant 0 : index
    %71 = vector.load %arg4[%c0_53, %c0_54] : memref<1x128xf32, #tpu.memory_space<vmem>>, vector<1x128xf32>
    %72 = vector.broadcast %71 : vector<1x128xf32> to vector<128x128xf32>
    %73 = arith.addf %70, %72 : vector<128x128xf32>
    %cst_55 = arith.constant 0.000000e+00 : f32
    %74 = vector.broadcast %cst_55 : f32 to vector<128x128xf32>
    %75 = arith.maximumf %73, %74 : vector<128x128xf32>
    %76 = vector.shape_cast %75 : vector<128x128xf32> to vector<1x8x16x128xf32>
    %c1_i32 = arith.constant 1 : i32
    %77 = arith.addi %c1_i32, %9 : i32
    %c0_56 = arith.constant 0 : index
    %78 = arith.index_cast %77 : i32 to index
    %c8_57 = arith.constant 8 : index
    %c0_58 = arith.constant 0 : index
    %79 = vector.load %arg5[%c0_56, %78, %c8_57, %c0_58] : memref<1x18x32x128xf32, #tpu.memory_space<vmem>>, vector<1x8x16x128xf32>
    tpu.vector_store %arg5[%c0_56, %78, %c8_57, %c0_58], %76 {strides = array<i32>} : memref<1x18x32x128xf32, #tpu.memory_space<vmem>>, vector<1x8x16x128xf32>,
    %c1_i32_59 = arith.constant 1 : i32
    %c8_i32_60 = arith.constant 8 : i32
    %80 = arith.muli %c1_i32_59, %c8_i32_60 : i32
    %81 = tpu.assume_multiple %80, 8 : i32
    %cst_61 = arith.constant 0.000000e+00 : f32
    %82 = vector.broadcast %cst_61 : f32 to vector<128x128xf32>
    %c0_62 = arith.constant 0 : index
    %83 = arith.index_cast %81 : i32 to index
    %c7_63 = arith.constant 7 : index
    %c0_64 = arith.constant 0 : index
    %84 = vector.load %arg2[%c0_62, %83, %c7_63, %c0_64] : memref<1x18x32x128xf32, #tpu.memory_space<vmem>>, vector<1x10x16x128xf32>
    %85 = vector.extract_strided_slice %84 {offsets = [0, 0, 0, 0], sizes = [1, 8, 16, 128], strides = [1, 1, 1, 1]} : vector<1x10x16x128xf32> to vector<1x8x16x128xf32>
    %86 = vector.shape_cast %85 : vector<1x8x16x128xf32> to vector<128x128xf32>
    %c0_65 = arith.constant 0 : index
    %c0_66 = arith.constant 0 : index
    %c0_67 = arith.constant 0 : index
    %87 = vector.load %arg3[%c0_65, %c0_66, %c0_67] : memref<9x128x128xf32, #tpu.memory_space<vmem>>, vector<1x128x128xf32>
    %88 = vector.shape_cast %87 : vector<1x128x128xf32> to vector<128x128xf32>
    %cst_68 = arith.constant dense<0.000000e+00> : vector<128x128xf32>
    %89 = tpu.matmul %86, %88, %cst_68 {dimension_numbers = #tpu.dot_dimension_numbers<[1], [0], [0], [1], [0, 0, 1, 1], [], []>} : vector<128x128xf32>, vector<128x128xf32>, vector<128x128xf32> -> vector<128x128xf32>
    %90 = arith.addf %82, %89 : vector<128x128xf32>
    %91 = vector.extract_strided_slice %84 {offsets = [0, 1, 0, 0], sizes = [1, 8, 16, 128], strides = [1, 1, 1, 1]} : vector<1x10x16x128xf32> to vector<1x8x16x128xf32>
    %92 = vector.shape_cast %91 : vector<1x8x16x128xf32> to vector<128x128xf32>
    %c3_69 = arith.constant 3 : index
    %c0_70 = arith.constant 0 : index
    %c0_71 = arith.constant 0 : index
    %93 = vector.load %arg3[%c3_69, %c0_70, %c0_71] : memref<9x128x128xf32, #tpu.memory_space<vmem>>, vector<1x128x128xf32>
    %94 = vector.shape_cast %93 : vector<1x128x128xf32> to vector<128x128xf32>
    %cst_72 = arith.constant dense<0.000000e+00> : vector<128x128xf32>
    %95 = tpu.matmul %92, %94, %cst_72 {dimension_numbers = #tpu.dot_dimension_numbers<[1], [0], [0], [1], [0, 0, 1, 1], [], []>} : vector<128x128xf32>, vector<128x128xf32>, vector<128x128xf32> -> vector<128x128xf32>
    %96 = arith.addf %90, %95 : vector<128x128xf32>
    %97 = vector.extract_strided_slice %84 {offsets = [0, 2, 0, 0], sizes = [1, 8, 16, 128], strides = [1, 1, 1, 1]} : vector<1x10x16x128xf32> to vector<1x8x16x128xf32>
    %98 = vector.shape_cast %97 : vector<1x8x16x128xf32> to vector<128x128xf32>
    %c6_73 = arith.constant 6 : index
    %c0_74 = arith.constant 0 : index
    %c0_75 = arith.constant 0 : index
    %99 = vector.load %arg3[%c6_73, %c0_74, %c0_75] : memref<9x128x128xf32, #tpu.memory_space<vmem>>, vector<1x128x128xf32>
    %100 = vector.shape_cast %99 : vector<1x128x128xf32> to vector<128x128xf32>
    %cst_76 = arith.constant dense<0.000000e+00> : vector<128x128xf32>
    %101 = tpu.matmul %98, %100, %cst_76 {dimension_numbers = #tpu.dot_dimension_numbers<[1], [0], [0], [1], [0, 0, 1, 1], [], []>} : vector<128x128xf32>, vector<128x128xf32>, vector<128x128xf32> -> vector<128x128xf32>
    %102 = arith.addf %96, %101 : vector<128x128xf32>
    %c0_77 = arith.constant 0 : index
    %103 = arith.index_cast %81 : i32 to index
    %c8_78 = arith.constant 8 : index
    %c0_79 = arith.constant 0 : index
    %104 = vector.load %arg2[%c0_77, %103, %c8_78, %c0_79] : memref<1x18x32x128xf32, #tpu.memory_space<vmem>>, vector<1x10x16x128xf32>
    %105 = vector.extract_strided_slice %104 {offsets = [0, 0, 0, 0], sizes = [1, 8, 16, 128], strides = [1, 1, 1, 1]} : vector<1x10x16x128xf32> to vector<1x8x16x128xf32>
    %106 = vector.shape_cast %105 : vector<1x8x16x128xf32> to vector<128x128xf32>
    %c1_80 = arith.constant 1 : index
    %c0_81 = arith.constant 0 : index
    %c0_82 = arith.constant 0 : index
    %107 = vector.load %arg3[%c1_80, %c0_81, %c0_82] : memref<9x128x128xf32, #tpu.memory_space<vmem>>, vector<1x128x128xf32>
    %108 = vector.shape_cast %107 : vector<1x128x128xf32> to vector<128x128xf32>
    %cst_83 = arith.constant dense<0.000000e+00> : vector<128x128xf32>
    %109 = tpu.matmul %106, %108, %cst_83 {dimension_numbers = #tpu.dot_dimension_numbers<[1], [0], [0], [1], [0, 0, 1, 1], [], []>} : vector<128x128xf32>, vector<128x128xf32>, vector<128x128xf32> -> vector<128x128xf32>
    %110 = arith.addf %102, %109 : vector<128x128xf32>
    %111 = vector.extract_strided_slice %104 {offsets = [0, 1, 0, 0], sizes = [1, 8, 16, 128], strides = [1, 1, 1, 1]} : vector<1x10x16x128xf32> to vector<1x8x16x128xf32>
    %112 = vector.shape_cast %111 : vector<1x8x16x128xf32> to vector<128x128xf32>
    %c4_84 = arith.constant 4 : index
    %c0_85 = arith.constant 0 : index
    %c0_86 = arith.constant 0 : index
    %113 = vector.load %arg3[%c4_84, %c0_85, %c0_86] : memref<9x128x128xf32, #tpu.memory_space<vmem>>, vector<1x128x128xf32>
    %114 = vector.shape_cast %113 : vector<1x128x128xf32> to vector<128x128xf32>
    %cst_87 = arith.constant dense<0.000000e+00> : vector<128x128xf32>
    %115 = tpu.matmul %112, %114, %cst_87 {dimension_numbers = #tpu.dot_dimension_numbers<[1], [0], [0], [1], [0, 0, 1, 1], [], []>} : vector<128x128xf32>, vector<128x128xf32>, vector<128x128xf32> -> vector<128x128xf32>
    %116 = arith.addf %110, %115 : vector<128x128xf32>
    %117 = vector.extract_strided_slice %104 {offsets = [0, 2, 0, 0], sizes = [1, 8, 16, 128], strides = [1, 1, 1, 1]} : vector<1x10x16x128xf32> to vector<1x8x16x128xf32>
    %118 = vector.shape_cast %117 : vector<1x8x16x128xf32> to vector<128x128xf32>
    %c7_88 = arith.constant 7 : index
    %c0_89 = arith.constant 0 : index
    %c0_90 = arith.constant 0 : index
    %119 = vector.load %arg3[%c7_88, %c0_89, %c0_90] : memref<9x128x128xf32, #tpu.memory_space<vmem>>, vector<1x128x128xf32>
    %120 = vector.shape_cast %119 : vector<1x128x128xf32> to vector<128x128xf32>
    %cst_91 = arith.constant dense<0.000000e+00> : vector<128x128xf32>
    %121 = tpu.matmul %118, %120, %cst_91 {dimension_numbers = #tpu.dot_dimension_numbers<[1], [0], [0], [1], [0, 0, 1, 1], [], []>} : vector<128x128xf32>, vector<128x128xf32>, vector<128x128xf32> -> vector<128x128xf32>
    %122 = arith.addf %116, %121 : vector<128x128xf32>
    %c0_92 = arith.constant 0 : index
    %123 = arith.index_cast %81 : i32 to index
    %c9_93 = arith.constant 9 : index
    %c0_94 = arith.constant 0 : index
    %124 = vector.load %arg2[%c0_92, %123, %c9_93, %c0_94] : memref<1x18x32x128xf32, #tpu.memory_space<vmem>>, vector<1x10x16x128xf32>
    %125 = vector.extract_strided_slice %124 {offsets = [0, 0, 0, 0], sizes = [1, 8, 16, 128], strides = [1, 1, 1, 1]} : vector<1x10x16x128xf32> to vector<1x8x16x128xf32>
    %126 = vector.shape_cast %125 : vector<1x8x16x128xf32> to vector<128x128xf32>
    %c2_95 = arith.constant 2 : index
    %c0_96 = arith.constant 0 : index
    %c0_97 = arith.constant 0 : index
    %127 = vector.load %arg3[%c2_95, %c0_96, %c0_97] : memref<9x128x128xf32, #tpu.memory_space<vmem>>, vector<1x128x128xf32>
    %128 = vector.shape_cast %127 : vector<1x128x128xf32> to vector<128x128xf32>
    %cst_98 = arith.constant dense<0.000000e+00> : vector<128x128xf32>
    %129 = tpu.matmul %126, %128, %cst_98 {dimension_numbers = #tpu.dot_dimension_numbers<[1], [0], [0], [1], [0, 0, 1, 1], [], []>} : vector<128x128xf32>, vector<128x128xf32>, vector<128x128xf32> -> vector<128x128xf32>
    %130 = arith.addf %122, %129 : vector<128x128xf32>
    %131 = vector.extract_strided_slice %124 {offsets = [0, 1, 0, 0], sizes = [1, 8, 16, 128], strides = [1, 1, 1, 1]} : vector<1x10x16x128xf32> to vector<1x8x16x128xf32>
    %132 = vector.shape_cast %131 : vector<1x8x16x128xf32> to vector<128x128xf32>
    %c5_99 = arith.constant 5 : index
    %c0_100 = arith.constant 0 : index
    %c0_101 = arith.constant 0 : index
    %133 = vector.load %arg3[%c5_99, %c0_100, %c0_101] : memref<9x128x128xf32, #tpu.memory_space<vmem>>, vector<1x128x128xf32>
    %134 = vector.shape_cast %133 : vector<1x128x128xf32> to vector<128x128xf32>
    %cst_102 = arith.constant dense<0.000000e+00> : vector<128x128xf32>
    %135 = tpu.matmul %132, %134, %cst_102 {dimension_numbers = #tpu.dot_dimension_numbers<[1], [0], [0], [1], [0, 0, 1, 1], [], []>} : vector<128x128xf32>, vector<128x128xf32>, vector<128x128xf32> -> vector<128x128xf32>
    %136 = arith.addf %130, %135 : vector<128x128xf32>
    %137 = vector.extract_strided_slice %124 {offsets = [0, 2, 0, 0], sizes = [1, 8, 16, 128], strides = [1, 1, 1, 1]} : vector<1x10x16x128xf32> to vector<1x8x16x128xf32>
    %138 = vector.shape_cast %137 : vector<1x8x16x128xf32> to vector<128x128xf32>
    %c8_103 = arith.constant 8 : index
    %c0_104 = arith.constant 0 : index
    %c0_105 = arith.constant 0 : index
    %139 = vector.load %arg3[%c8_103, %c0_104, %c0_105] : memref<9x128x128xf32, #tpu.memory_space<vmem>>, vector<1x128x128xf32>
    %140 = vector.shape_cast %139 : vector<1x128x128xf32> to vector<128x128xf32>
    %cst_106 = arith.constant dense<0.000000e+00> : vector<128x128xf32>
    %141 = tpu.matmul %138, %140, %cst_106 {dimension_numbers = #tpu.dot_dimension_numbers<[1], [0], [0], [1], [0, 0, 1, 1], [], []>} : vector<128x128xf32>, vector<128x128xf32>, vector<128x128xf32> -> vector<128x128xf32>
    %142 = arith.addf %136, %141 : vector<128x128xf32>
    %c0_107 = arith.constant 0 : index
    %c0_108 = arith.constant 0 : index
    %143 = vector.load %arg4[%c0_107, %c0_108] : memref<1x128xf32, #tpu.memory_space<vmem>>, vector<1x128xf32>
    %144 = vector.broadcast %143 : vector<1x128xf32> to vector<128x128xf32>
    %145 = arith.addf %142, %144 : vector<128x128xf32>
    %cst_109 = arith.constant 0.000000e+00 : f32
    %146 = vector.broadcast %cst_109 : f32 to vector<128x128xf32>
    %147 = arith.maximumf %145, %146 : vector<128x128xf32>
    %148 = vector.shape_cast %147 : vector<128x128xf32> to vector<1x8x16x128xf32>
    %c1_i32_110 = arith.constant 1 : i32
    %149 = arith.addi %c1_i32_110, %81 : i32
    %c0_111 = arith.constant 0 : index
    %150 = arith.index_cast %149 : i32 to index
    %c8_112 = arith.constant 8 : index
    %c0_113 = arith.constant 0 : index
    %151 = vector.load %arg5[%c0_111, %150, %c8_112, %c0_113] : memref<1x18x32x128xf32, #tpu.memory_space<vmem>>, vector<1x8x16x128xf32>
    tpu.vector_store %arg5[%c0_111, %150, %c8_112, %c0_113], %148 {strides = array<i32>} : memref<1x18x32x128xf32, #tpu.memory_space<vmem>>, vector<1x8x16x128xf32>,
    %c2_i32 = arith.constant 2 : i32
    return
  }
  func.func @transform_0(%arg0: i32, %arg1: i32) -> (i32, i32, i32, i32) {
    %c0_i32 = arith.constant 0 : i32
    %c0_i32_0 = arith.constant 0 : i32
    %c0_i32_1 = arith.constant 0 : i32
    %c0_i32_2 = arith.constant 0 : i32
    return %arg1, %c0_i32, %c0_i32_0, %c0_i32_1 : i32, i32, i32, i32
  }
  func.func @transform_1(%arg0: i32, %arg1: i32) -> (i32, i32, i32) {
    %c0_i32 = arith.constant 0 : i32
    %c0_i32_0 = arith.constant 0 : i32
    %c0_i32_1 = arith.constant 0 : i32
    return %c0_i32, %c0_i32_0, %arg0 : i32, i32, i32
  }
  func.func @transform_2(%arg0: i32, %arg1: i32) -> (i32, i32) {
    %c0_i32 = arith.constant 0 : i32
    %c0_i32_0 = arith.constant 0 : i32
    return %c0_i32, %arg0 : i32, i32
  }
  func.func @transform_3(%arg0: i32, %arg1: i32) -> (i32, i32, i32, i32) {
    %c0_i32 = arith.constant 0 : i32
    %c0_i32_0 = arith.constant 0 : i32
    %c0_i32_1 = arith.constant 0 : i32
    return %arg1, %c0_i32, %c0_i32_0, %arg0 : i32, i32, i32, i32
  }
}

module attributes {stable_mosaic.version = 11 : i64} {
  func.func @_conv_bn_add_relu_kernel(%arg0: i32, %arg1: i32, %arg2: memref<1x18x32x128xf32, #tpu.memory_space<vmem>>, %arg3: memref<9x128x128xf32, #tpu.memory_space<vmem>>, %arg4: memref<1x128xf32, #tpu.memory_space<vmem>>, %arg5: memref<1x18x32x128xf32, #tpu.memory_space<vmem>>, %arg6: memref<1x16x16x128xf32, #tpu.memory_space<vmem>>) attributes {dimension_semantics = [#tpu.dimension_semantics<parallel>, #tpu.dimension_semantics<parallel>], iteration_bounds = array<i64: 1, 2>, scalar_prefetch = 0 : i64, scratch_operands = 0 : i64, tpu.core_type = #tpu.core_type<tc>, window_params = [{transform_indices = @transform_0, window_bounds = array<i64: 1, 18, 32, 128>}, {transform_indices = @transform_1, window_bounds = array<i64: 9, 128, 128>}, {transform_indices = @transform_2, window_bounds = array<i64: 1, 128>}, {transform_indices = @transform_3, window_bounds = array<i64: 1, 18, 32, 128>}, {transform_indices = @transform_4, window_bounds = array<i64: 1, 16, 16, 128>}]} {
    %c0_i32 = arith.constant 0 : i32
    %c8_i32 = arith.constant 8 : i32
    %0 = arith.muli %c0_i32, %c8_i32 : i32
    %1 = tpu.assume_multiple %0, 8 : i32
    %cst = arith.constant 0.000000e+00 : f32
    %2 = vector.broadcast %cst : f32 to vector<128x128xf32>
    %c0 = arith.constant 0 : index
    %3 = arith.index_cast %1 : i32 to index
    %c7 = arith.constant 7 : index
    %c0_0 = arith.constant 0 : index
    %4 = vector.load %arg2[%c0, %3, %c7, %c0_0] : memref<1x18x32x128xf32, #tpu.memory_space<vmem>>, vector<1x10x16x128xf32>
    %5 = vector.extract_strided_slice %4 {offsets = [0, 0, 0, 0], sizes = [1, 8, 16, 128], strides = [1, 1, 1, 1]} : vector<1x10x16x128xf32> to vector<1x8x16x128xf32>
    %6 = vector.shape_cast %5 : vector<1x8x16x128xf32> to vector<128x128xf32>
    %c0_1 = arith.constant 0 : index
    %c0_2 = arith.constant 0 : index
    %c0_3 = arith.constant 0 : index
    %7 = vector.load %arg3[%c0_1, %c0_2, %c0_3] : memref<9x128x128xf32, #tpu.memory_space<vmem>>, vector<1x128x128xf32>
    %8 = vector.shape_cast %7 : vector<1x128x128xf32> to vector<128x128xf32>
    %cst_4 = arith.constant dense<0.000000e+00> : vector<128x128xf32>
    %9 = tpu.matmul %6, %8, %cst_4 {dimension_numbers = #tpu.dot_dimension_numbers<[1], [0], [0], [1], [0, 0, 1, 1], [], []>} : vector<128x128xf32>, vector<128x128xf32>, vector<128x128xf32> -> vector<128x128xf32>
    %10 = arith.addf %2, %9 : vector<128x128xf32>
    %11 = vector.extract_strided_slice %4 {offsets = [0, 1, 0, 0], sizes = [1, 8, 16, 128], strides = [1, 1, 1, 1]} : vector<1x10x16x128xf32> to vector<1x8x16x128xf32>
    %12 = vector.shape_cast %11 : vector<1x8x16x128xf32> to vector<128x128xf32>
    %c3 = arith.constant 3 : index
    %c0_5 = arith.constant 0 : index
    %c0_6 = arith.constant 0 : index
    %13 = vector.load %arg3[%c3, %c0_5, %c0_6] : memref<9x128x128xf32, #tpu.memory_space<vmem>>, vector<1x128x128xf32>
    %14 = vector.shape_cast %13 : vector<1x128x128xf32> to vector<128x128xf32>
    %cst_7 = arith.constant dense<0.000000e+00> : vector<128x128xf32>
    %15 = tpu.matmul %12, %14, %cst_7 {dimension_numbers = #tpu.dot_dimension_numbers<[1], [0], [0], [1], [0, 0, 1, 1], [], []>} : vector<128x128xf32>, vector<128x128xf32>, vector<128x128xf32> -> vector<128x128xf32>
    %16 = arith.addf %10, %15 : vector<128x128xf32>
    %17 = vector.extract_strided_slice %4 {offsets = [0, 2, 0, 0], sizes = [1, 8, 16, 128], strides = [1, 1, 1, 1]} : vector<1x10x16x128xf32> to vector<1x8x16x128xf32>
    %18 = vector.shape_cast %17 : vector<1x8x16x128xf32> to vector<128x128xf32>
    %c6 = arith.constant 6 : index
    %c0_8 = arith.constant 0 : index
    %c0_9 = arith.constant 0 : index
    %19 = vector.load %arg3[%c6, %c0_8, %c0_9] : memref<9x128x128xf32, #tpu.memory_space<vmem>>, vector<1x128x128xf32>
    %20 = vector.shape_cast %19 : vector<1x128x128xf32> to vector<128x128xf32>
    %cst_10 = arith.constant dense<0.000000e+00> : vector<128x128xf32>
    %21 = tpu.matmul %18, %20, %cst_10 {dimension_numbers = #tpu.dot_dimension_numbers<[1], [0], [0], [1], [0, 0, 1, 1], [], []>} : vector<128x128xf32>, vector<128x128xf32>, vector<128x128xf32> -> vector<128x128xf32>
    %22 = arith.addf %16, %21 : vector<128x128xf32>
    %c0_11 = arith.constant 0 : index
    %23 = arith.index_cast %1 : i32 to index
    %c8 = arith.constant 8 : index
    %c0_12 = arith.constant 0 : index
    %24 = vector.load %arg2[%c0_11, %23, %c8, %c0_12] : memref<1x18x32x128xf32, #tpu.memory_space<vmem>>, vector<1x10x16x128xf32>
    %25 = vector.extract_strided_slice %24 {offsets = [0, 0, 0, 0], sizes = [1, 8, 16, 128], strides = [1, 1, 1, 1]} : vector<1x10x16x128xf32> to vector<1x8x16x128xf32>
    %26 = vector.shape_cast %25 : vector<1x8x16x128xf32> to vector<128x128xf32>
    %c1 = arith.constant 1 : index
    %c0_13 = arith.constant 0 : index
    %c0_14 = arith.constant 0 : index
    %27 = vector.load %arg3[%c1, %c0_13, %c0_14] : memref<9x128x128xf32, #tpu.memory_space<vmem>>, vector<1x128x128xf32>
    %28 = vector.shape_cast %27 : vector<1x128x128xf32> to vector<128x128xf32>
    %cst_15 = arith.constant dense<0.000000e+00> : vector<128x128xf32>
    %29 = tpu.matmul %26, %28, %cst_15 {dimension_numbers = #tpu.dot_dimension_numbers<[1], [0], [0], [1], [0, 0, 1, 1], [], []>} : vector<128x128xf32>, vector<128x128xf32>, vector<128x128xf32> -> vector<128x128xf32>
    %30 = arith.addf %22, %29 : vector<128x128xf32>
    %31 = vector.extract_strided_slice %24 {offsets = [0, 1, 0, 0], sizes = [1, 8, 16, 128], strides = [1, 1, 1, 1]} : vector<1x10x16x128xf32> to vector<1x8x16x128xf32>
    %32 = vector.shape_cast %31 : vector<1x8x16x128xf32> to vector<128x128xf32>
    %c4 = arith.constant 4 : index
    %c0_16 = arith.constant 0 : index
    %c0_17 = arith.constant 0 : index
    %33 = vector.load %arg3[%c4, %c0_16, %c0_17] : memref<9x128x128xf32, #tpu.memory_space<vmem>>, vector<1x128x128xf32>
    %34 = vector.shape_cast %33 : vector<1x128x128xf32> to vector<128x128xf32>
    %cst_18 = arith.constant dense<0.000000e+00> : vector<128x128xf32>
    %35 = tpu.matmul %32, %34, %cst_18 {dimension_numbers = #tpu.dot_dimension_numbers<[1], [0], [0], [1], [0, 0, 1, 1], [], []>} : vector<128x128xf32>, vector<128x128xf32>, vector<128x128xf32> -> vector<128x128xf32>
    %36 = arith.addf %30, %35 : vector<128x128xf32>
    %37 = vector.extract_strided_slice %24 {offsets = [0, 2, 0, 0], sizes = [1, 8, 16, 128], strides = [1, 1, 1, 1]} : vector<1x10x16x128xf32> to vector<1x8x16x128xf32>
    %38 = vector.shape_cast %37 : vector<1x8x16x128xf32> to vector<128x128xf32>
    %c7_19 = arith.constant 7 : index
    %c0_20 = arith.constant 0 : index
    %c0_21 = arith.constant 0 : index
    %39 = vector.load %arg3[%c7_19, %c0_20, %c0_21] : memref<9x128x128xf32, #tpu.memory_space<vmem>>, vector<1x128x128xf32>
    %40 = vector.shape_cast %39 : vector<1x128x128xf32> to vector<128x128xf32>
    %cst_22 = arith.constant dense<0.000000e+00> : vector<128x128xf32>
    %41 = tpu.matmul %38, %40, %cst_22 {dimension_numbers = #tpu.dot_dimension_numbers<[1], [0], [0], [1], [0, 0, 1, 1], [], []>} : vector<128x128xf32>, vector<128x128xf32>, vector<128x128xf32> -> vector<128x128xf32>
    %42 = arith.addf %36, %41 : vector<128x128xf32>
    %c0_23 = arith.constant 0 : index
    %43 = arith.index_cast %1 : i32 to index
    %c9 = arith.constant 9 : index
    %c0_24 = arith.constant 0 : index
    %44 = vector.load %arg2[%c0_23, %43, %c9, %c0_24] : memref<1x18x32x128xf32, #tpu.memory_space<vmem>>, vector<1x10x16x128xf32>
    %45 = vector.extract_strided_slice %44 {offsets = [0, 0, 0, 0], sizes = [1, 8, 16, 128], strides = [1, 1, 1, 1]} : vector<1x10x16x128xf32> to vector<1x8x16x128xf32>
    %46 = vector.shape_cast %45 : vector<1x8x16x128xf32> to vector<128x128xf32>
    %c2 = arith.constant 2 : index
    %c0_25 = arith.constant 0 : index
    %c0_26 = arith.constant 0 : index
    %47 = vector.load %arg3[%c2, %c0_25, %c0_26] : memref<9x128x128xf32, #tpu.memory_space<vmem>>, vector<1x128x128xf32>
    %48 = vector.shape_cast %47 : vector<1x128x128xf32> to vector<128x128xf32>
    %cst_27 = arith.constant dense<0.000000e+00> : vector<128x128xf32>
    %49 = tpu.matmul %46, %48, %cst_27 {dimension_numbers = #tpu.dot_dimension_numbers<[1], [0], [0], [1], [0, 0, 1, 1], [], []>} : vector<128x128xf32>, vector<128x128xf32>, vector<128x128xf32> -> vector<128x128xf32>
    %50 = arith.addf %42, %49 : vector<128x128xf32>
    %51 = vector.extract_strided_slice %44 {offsets = [0, 1, 0, 0], sizes = [1, 8, 16, 128], strides = [1, 1, 1, 1]} : vector<1x10x16x128xf32> to vector<1x8x16x128xf32>
    %52 = vector.shape_cast %51 : vector<1x8x16x128xf32> to vector<128x128xf32>
    %c5 = arith.constant 5 : index
    %c0_28 = arith.constant 0 : index
    %c0_29 = arith.constant 0 : index
    %53 = vector.load %arg3[%c5, %c0_28, %c0_29] : memref<9x128x128xf32, #tpu.memory_space<vmem>>, vector<1x128x128xf32>
    %54 = vector.shape_cast %53 : vector<1x128x128xf32> to vector<128x128xf32>
    %cst_30 = arith.constant dense<0.000000e+00> : vector<128x128xf32>
    %55 = tpu.matmul %52, %54, %cst_30 {dimension_numbers = #tpu.dot_dimension_numbers<[1], [0], [0], [1], [0, 0, 1, 1], [], []>} : vector<128x128xf32>, vector<128x128xf32>, vector<128x128xf32> -> vector<128x128xf32>
    %56 = arith.addf %50, %55 : vector<128x128xf32>
    %57 = vector.extract_strided_slice %44 {offsets = [0, 2, 0, 0], sizes = [1, 8, 16, 128], strides = [1, 1, 1, 1]} : vector<1x10x16x128xf32> to vector<1x8x16x128xf32>
    %58 = vector.shape_cast %57 : vector<1x8x16x128xf32> to vector<128x128xf32>
    %c8_31 = arith.constant 8 : index
    %c0_32 = arith.constant 0 : index
    %c0_33 = arith.constant 0 : index
    %59 = vector.load %arg3[%c8_31, %c0_32, %c0_33] : memref<9x128x128xf32, #tpu.memory_space<vmem>>, vector<1x128x128xf32>
    %60 = vector.shape_cast %59 : vector<1x128x128xf32> to vector<128x128xf32>
    %cst_34 = arith.constant dense<0.000000e+00> : vector<128x128xf32>
    %61 = tpu.matmul %58, %60, %cst_34 {dimension_numbers = #tpu.dot_dimension_numbers<[1], [0], [0], [1], [0, 0, 1, 1], [], []>} : vector<128x128xf32>, vector<128x128xf32>, vector<128x128xf32> -> vector<128x128xf32>
    %62 = arith.addf %56, %61 : vector<128x128xf32>
    %c1_i32 = arith.constant 1 : i32
    %63 = arith.addi %c1_i32, %1 : i32
    %c0_35 = arith.constant 0 : index
    %64 = arith.index_cast %63 : i32 to index
    %c8_36 = arith.constant 8 : index
    %c0_37 = arith.constant 0 : index
    %65 = vector.load %arg5[%c0_35, %64, %c8_36, %c0_37] : memref<1x18x32x128xf32, #tpu.memory_space<vmem>>, vector<1x8x16x128xf32>
    %66 = vector.shape_cast %65 : vector<1x8x16x128xf32> to vector<128x128xf32>
    %c0_38 = arith.constant 0 : index
    %c0_39 = arith.constant 0 : index
    %67 = vector.load %arg4[%c0_38, %c0_39] : memref<1x128xf32, #tpu.memory_space<vmem>>, vector<1x128xf32>
    %68 = vector.broadcast %67 : vector<1x128xf32> to vector<128x128xf32>
    %69 = arith.addf %62, %68 : vector<128x128xf32>
    %70 = arith.addf %69, %66 : vector<128x128xf32>
    %cst_40 = arith.constant 0.000000e+00 : f32
    %71 = vector.broadcast %cst_40 : f32 to vector<128x128xf32>
    %72 = arith.maximumf %70, %71 : vector<128x128xf32>
    %73 = vector.shape_cast %72 : vector<128x128xf32> to vector<1x8x16x128xf32>
    %c0_41 = arith.constant 0 : index
    %74 = arith.index_cast %1 : i32 to index
    %c0_42 = arith.constant 0 : index
    %c0_43 = arith.constant 0 : index
    %75 = vector.load %arg6[%c0_41, %74, %c0_42, %c0_43] : memref<1x16x16x128xf32, #tpu.memory_space<vmem>>, vector<1x8x16x128xf32>
    tpu.vector_store %arg6[%c0_41, %74, %c0_42, %c0_43], %73 {strides = array<i32>} : memref<1x16x16x128xf32, #tpu.memory_space<vmem>>, vector<1x8x16x128xf32>,
    %c1_i32_44 = arith.constant 1 : i32
    %c8_i32_45 = arith.constant 8 : i32
    %76 = arith.muli %c1_i32_44, %c8_i32_45 : i32
    %77 = tpu.assume_multiple %76, 8 : i32
    %cst_46 = arith.constant 0.000000e+00 : f32
    %78 = vector.broadcast %cst_46 : f32 to vector<128x128xf32>
    %c0_47 = arith.constant 0 : index
    %79 = arith.index_cast %77 : i32 to index
    %c7_48 = arith.constant 7 : index
    %c0_49 = arith.constant 0 : index
    %80 = vector.load %arg2[%c0_47, %79, %c7_48, %c0_49] : memref<1x18x32x128xf32, #tpu.memory_space<vmem>>, vector<1x10x16x128xf32>
    %81 = vector.extract_strided_slice %80 {offsets = [0, 0, 0, 0], sizes = [1, 8, 16, 128], strides = [1, 1, 1, 1]} : vector<1x10x16x128xf32> to vector<1x8x16x128xf32>
    %82 = vector.shape_cast %81 : vector<1x8x16x128xf32> to vector<128x128xf32>
    %c0_50 = arith.constant 0 : index
    %c0_51 = arith.constant 0 : index
    %c0_52 = arith.constant 0 : index
    %83 = vector.load %arg3[%c0_50, %c0_51, %c0_52] : memref<9x128x128xf32, #tpu.memory_space<vmem>>, vector<1x128x128xf32>
    %84 = vector.shape_cast %83 : vector<1x128x128xf32> to vector<128x128xf32>
    %cst_53 = arith.constant dense<0.000000e+00> : vector<128x128xf32>
    %85 = tpu.matmul %82, %84, %cst_53 {dimension_numbers = #tpu.dot_dimension_numbers<[1], [0], [0], [1], [0, 0, 1, 1], [], []>} : vector<128x128xf32>, vector<128x128xf32>, vector<128x128xf32> -> vector<128x128xf32>
    %86 = arith.addf %78, %85 : vector<128x128xf32>
    %87 = vector.extract_strided_slice %80 {offsets = [0, 1, 0, 0], sizes = [1, 8, 16, 128], strides = [1, 1, 1, 1]} : vector<1x10x16x128xf32> to vector<1x8x16x128xf32>
    %88 = vector.shape_cast %87 : vector<1x8x16x128xf32> to vector<128x128xf32>
    %c3_54 = arith.constant 3 : index
    %c0_55 = arith.constant 0 : index
    %c0_56 = arith.constant 0 : index
    %89 = vector.load %arg3[%c3_54, %c0_55, %c0_56] : memref<9x128x128xf32, #tpu.memory_space<vmem>>, vector<1x128x128xf32>
    %90 = vector.shape_cast %89 : vector<1x128x128xf32> to vector<128x128xf32>
    %cst_57 = arith.constant dense<0.000000e+00> : vector<128x128xf32>
    %91 = tpu.matmul %88, %90, %cst_57 {dimension_numbers = #tpu.dot_dimension_numbers<[1], [0], [0], [1], [0, 0, 1, 1], [], []>} : vector<128x128xf32>, vector<128x128xf32>, vector<128x128xf32> -> vector<128x128xf32>
    %92 = arith.addf %86, %91 : vector<128x128xf32>
    %93 = vector.extract_strided_slice %80 {offsets = [0, 2, 0, 0], sizes = [1, 8, 16, 128], strides = [1, 1, 1, 1]} : vector<1x10x16x128xf32> to vector<1x8x16x128xf32>
    %94 = vector.shape_cast %93 : vector<1x8x16x128xf32> to vector<128x128xf32>
    %c6_58 = arith.constant 6 : index
    %c0_59 = arith.constant 0 : index
    %c0_60 = arith.constant 0 : index
    %95 = vector.load %arg3[%c6_58, %c0_59, %c0_60] : memref<9x128x128xf32, #tpu.memory_space<vmem>>, vector<1x128x128xf32>
    %96 = vector.shape_cast %95 : vector<1x128x128xf32> to vector<128x128xf32>
    %cst_61 = arith.constant dense<0.000000e+00> : vector<128x128xf32>
    %97 = tpu.matmul %94, %96, %cst_61 {dimension_numbers = #tpu.dot_dimension_numbers<[1], [0], [0], [1], [0, 0, 1, 1], [], []>} : vector<128x128xf32>, vector<128x128xf32>, vector<128x128xf32> -> vector<128x128xf32>
    %98 = arith.addf %92, %97 : vector<128x128xf32>
    %c0_62 = arith.constant 0 : index
    %99 = arith.index_cast %77 : i32 to index
    %c8_63 = arith.constant 8 : index
    %c0_64 = arith.constant 0 : index
    %100 = vector.load %arg2[%c0_62, %99, %c8_63, %c0_64] : memref<1x18x32x128xf32, #tpu.memory_space<vmem>>, vector<1x10x16x128xf32>
    %101 = vector.extract_strided_slice %100 {offsets = [0, 0, 0, 0], sizes = [1, 8, 16, 128], strides = [1, 1, 1, 1]} : vector<1x10x16x128xf32> to vector<1x8x16x128xf32>
    %102 = vector.shape_cast %101 : vector<1x8x16x128xf32> to vector<128x128xf32>
    %c1_65 = arith.constant 1 : index
    %c0_66 = arith.constant 0 : index
    %c0_67 = arith.constant 0 : index
    %103 = vector.load %arg3[%c1_65, %c0_66, %c0_67] : memref<9x128x128xf32, #tpu.memory_space<vmem>>, vector<1x128x128xf32>
    %104 = vector.shape_cast %103 : vector<1x128x128xf32> to vector<128x128xf32>
    %cst_68 = arith.constant dense<0.000000e+00> : vector<128x128xf32>
    %105 = tpu.matmul %102, %104, %cst_68 {dimension_numbers = #tpu.dot_dimension_numbers<[1], [0], [0], [1], [0, 0, 1, 1], [], []>} : vector<128x128xf32>, vector<128x128xf32>, vector<128x128xf32> -> vector<128x128xf32>
    %106 = arith.addf %98, %105 : vector<128x128xf32>
    %107 = vector.extract_strided_slice %100 {offsets = [0, 1, 0, 0], sizes = [1, 8, 16, 128], strides = [1, 1, 1, 1]} : vector<1x10x16x128xf32> to vector<1x8x16x128xf32>
    %108 = vector.shape_cast %107 : vector<1x8x16x128xf32> to vector<128x128xf32>
    %c4_69 = arith.constant 4 : index
    %c0_70 = arith.constant 0 : index
    %c0_71 = arith.constant 0 : index
    %109 = vector.load %arg3[%c4_69, %c0_70, %c0_71] : memref<9x128x128xf32, #tpu.memory_space<vmem>>, vector<1x128x128xf32>
    %110 = vector.shape_cast %109 : vector<1x128x128xf32> to vector<128x128xf32>
    %cst_72 = arith.constant dense<0.000000e+00> : vector<128x128xf32>
    %111 = tpu.matmul %108, %110, %cst_72 {dimension_numbers = #tpu.dot_dimension_numbers<[1], [0], [0], [1], [0, 0, 1, 1], [], []>} : vector<128x128xf32>, vector<128x128xf32>, vector<128x128xf32> -> vector<128x128xf32>
    %112 = arith.addf %106, %111 : vector<128x128xf32>
    %113 = vector.extract_strided_slice %100 {offsets = [0, 2, 0, 0], sizes = [1, 8, 16, 128], strides = [1, 1, 1, 1]} : vector<1x10x16x128xf32> to vector<1x8x16x128xf32>
    %114 = vector.shape_cast %113 : vector<1x8x16x128xf32> to vector<128x128xf32>
    %c7_73 = arith.constant 7 : index
    %c0_74 = arith.constant 0 : index
    %c0_75 = arith.constant 0 : index
    %115 = vector.load %arg3[%c7_73, %c0_74, %c0_75] : memref<9x128x128xf32, #tpu.memory_space<vmem>>, vector<1x128x128xf32>
    %116 = vector.shape_cast %115 : vector<1x128x128xf32> to vector<128x128xf32>
    %cst_76 = arith.constant dense<0.000000e+00> : vector<128x128xf32>
    %117 = tpu.matmul %114, %116, %cst_76 {dimension_numbers = #tpu.dot_dimension_numbers<[1], [0], [0], [1], [0, 0, 1, 1], [], []>} : vector<128x128xf32>, vector<128x128xf32>, vector<128x128xf32> -> vector<128x128xf32>
    %118 = arith.addf %112, %117 : vector<128x128xf32>
    %c0_77 = arith.constant 0 : index
    %119 = arith.index_cast %77 : i32 to index
    %c9_78 = arith.constant 9 : index
    %c0_79 = arith.constant 0 : index
    %120 = vector.load %arg2[%c0_77, %119, %c9_78, %c0_79] : memref<1x18x32x128xf32, #tpu.memory_space<vmem>>, vector<1x10x16x128xf32>
    %121 = vector.extract_strided_slice %120 {offsets = [0, 0, 0, 0], sizes = [1, 8, 16, 128], strides = [1, 1, 1, 1]} : vector<1x10x16x128xf32> to vector<1x8x16x128xf32>
    %122 = vector.shape_cast %121 : vector<1x8x16x128xf32> to vector<128x128xf32>
    %c2_80 = arith.constant 2 : index
    %c0_81 = arith.constant 0 : index
    %c0_82 = arith.constant 0 : index
    %123 = vector.load %arg3[%c2_80, %c0_81, %c0_82] : memref<9x128x128xf32, #tpu.memory_space<vmem>>, vector<1x128x128xf32>
    %124 = vector.shape_cast %123 : vector<1x128x128xf32> to vector<128x128xf32>
    %cst_83 = arith.constant dense<0.000000e+00> : vector<128x128xf32>
    %125 = tpu.matmul %122, %124, %cst_83 {dimension_numbers = #tpu.dot_dimension_numbers<[1], [0], [0], [1], [0, 0, 1, 1], [], []>} : vector<128x128xf32>, vector<128x128xf32>, vector<128x128xf32> -> vector<128x128xf32>
    %126 = arith.addf %118, %125 : vector<128x128xf32>
    %127 = vector.extract_strided_slice %120 {offsets = [0, 1, 0, 0], sizes = [1, 8, 16, 128], strides = [1, 1, 1, 1]} : vector<1x10x16x128xf32> to vector<1x8x16x128xf32>
    %128 = vector.shape_cast %127 : vector<1x8x16x128xf32> to vector<128x128xf32>
    %c5_84 = arith.constant 5 : index
    %c0_85 = arith.constant 0 : index
    %c0_86 = arith.constant 0 : index
    %129 = vector.load %arg3[%c5_84, %c0_85, %c0_86] : memref<9x128x128xf32, #tpu.memory_space<vmem>>, vector<1x128x128xf32>
    %130 = vector.shape_cast %129 : vector<1x128x128xf32> to vector<128x128xf32>
    %cst_87 = arith.constant dense<0.000000e+00> : vector<128x128xf32>
    %131 = tpu.matmul %128, %130, %cst_87 {dimension_numbers = #tpu.dot_dimension_numbers<[1], [0], [0], [1], [0, 0, 1, 1], [], []>} : vector<128x128xf32>, vector<128x128xf32>, vector<128x128xf32> -> vector<128x128xf32>
    %132 = arith.addf %126, %131 : vector<128x128xf32>
    %133 = vector.extract_strided_slice %120 {offsets = [0, 2, 0, 0], sizes = [1, 8, 16, 128], strides = [1, 1, 1, 1]} : vector<1x10x16x128xf32> to vector<1x8x16x128xf32>
    %134 = vector.shape_cast %133 : vector<1x8x16x128xf32> to vector<128x128xf32>
    %c8_88 = arith.constant 8 : index
    %c0_89 = arith.constant 0 : index
    %c0_90 = arith.constant 0 : index
    %135 = vector.load %arg3[%c8_88, %c0_89, %c0_90] : memref<9x128x128xf32, #tpu.memory_space<vmem>>, vector<1x128x128xf32>
    %136 = vector.shape_cast %135 : vector<1x128x128xf32> to vector<128x128xf32>
    %cst_91 = arith.constant dense<0.000000e+00> : vector<128x128xf32>
    %137 = tpu.matmul %134, %136, %cst_91 {dimension_numbers = #tpu.dot_dimension_numbers<[1], [0], [0], [1], [0, 0, 1, 1], [], []>} : vector<128x128xf32>, vector<128x128xf32>, vector<128x128xf32> -> vector<128x128xf32>
    %138 = arith.addf %132, %137 : vector<128x128xf32>
    %c1_i32_92 = arith.constant 1 : i32
    %139 = arith.addi %c1_i32_92, %77 : i32
    %c0_93 = arith.constant 0 : index
    %140 = arith.index_cast %139 : i32 to index
    %c8_94 = arith.constant 8 : index
    %c0_95 = arith.constant 0 : index
    %141 = vector.load %arg5[%c0_93, %140, %c8_94, %c0_95] : memref<1x18x32x128xf32, #tpu.memory_space<vmem>>, vector<1x8x16x128xf32>
    %142 = vector.shape_cast %141 : vector<1x8x16x128xf32> to vector<128x128xf32>
    %c0_96 = arith.constant 0 : index
    %c0_97 = arith.constant 0 : index
    %143 = vector.load %arg4[%c0_96, %c0_97] : memref<1x128xf32, #tpu.memory_space<vmem>>, vector<1x128xf32>
    %144 = vector.broadcast %143 : vector<1x128xf32> to vector<128x128xf32>
    %145 = arith.addf %138, %144 : vector<128x128xf32>
    %146 = arith.addf %145, %142 : vector<128x128xf32>
    %cst_98 = arith.constant 0.000000e+00 : f32
    %147 = vector.broadcast %cst_98 : f32 to vector<128x128xf32>
    %148 = arith.maximumf %146, %147 : vector<128x128xf32>
    %149 = vector.shape_cast %148 : vector<128x128xf32> to vector<1x8x16x128xf32>
    %c0_99 = arith.constant 0 : index
    %150 = arith.index_cast %77 : i32 to index
    %c0_100 = arith.constant 0 : index
    %c0_101 = arith.constant 0 : index
    %151 = vector.load %arg6[%c0_99, %150, %c0_100, %c0_101] : memref<1x16x16x128xf32, #tpu.memory_space<vmem>>, vector<1x8x16x128xf32>
    tpu.vector_store %arg6[%c0_99, %150, %c0_100, %c0_101], %149 {strides = array<i32>} : memref<1x16x16x128xf32, #tpu.memory_space<vmem>>, vector<1x8x16x128xf32>,
    %c2_i32 = arith.constant 2 : i32
    return
  }
  func.func @transform_0(%arg0: i32, %arg1: i32) -> (i32, i32, i32, i32) {
    %c0_i32 = arith.constant 0 : i32
    %c0_i32_0 = arith.constant 0 : i32
    %c0_i32_1 = arith.constant 0 : i32
    %c0_i32_2 = arith.constant 0 : i32
    return %arg1, %c0_i32, %c0_i32_0, %c0_i32_1 : i32, i32, i32, i32
  }
  func.func @transform_1(%arg0: i32, %arg1: i32) -> (i32, i32, i32) {
    %c0_i32 = arith.constant 0 : i32
    %c0_i32_0 = arith.constant 0 : i32
    %c0_i32_1 = arith.constant 0 : i32
    return %c0_i32, %c0_i32_0, %arg0 : i32, i32, i32
  }
  func.func @transform_2(%arg0: i32, %arg1: i32) -> (i32, i32) {
    %c0_i32 = arith.constant 0 : i32
    %c0_i32_0 = arith.constant 0 : i32
    return %c0_i32, %arg0 : i32, i32
  }
  func.func @transform_3(%arg0: i32, %arg1: i32) -> (i32, i32, i32, i32) {
    %c0_i32 = arith.constant 0 : i32
    %c0_i32_0 = arith.constant 0 : i32
    %c0_i32_1 = arith.constant 0 : i32
    return %arg1, %c0_i32, %c0_i32_0, %arg0 : i32, i32, i32, i32
  }
  func.func @transform_4(%arg0: i32, %arg1: i32) -> (i32, i32, i32, i32) {
    %c0_i32 = arith.constant 0 : i32
    %c0_i32_0 = arith.constant 0 : i32
    %c0_i32_1 = arith.constant 0 : i32
    return %arg1, %c0_i32, %c0_i32_0, %arg0 : i32, i32, i32, i32
  }
}

</mosaic_0001>

<bundles_post_ra>
// kernel: basic_block_forward.2
= control target key start
LH: loop header
LB: loop body
LE: loop exit
PB: predicated region body
PF: predicated region fallthrough
CT: control target
= control target key end

     0   :  { %8 = vsyncpa [#allocation3], 0  ;;  %s7548_s0 = inlined_call_operand.hbm [shape: f32[2,18,32,128], index: 0, kind: input, shape index: {}]   ;;  %s7549_s1 = inlined_call_operand.hbm [shape: f32[9,128,128], index: 1, kind: input, shape index: {}]   ;;  %s7550_s2 = inlined_call_operand.hbm [shape: f32[1,128], index: 2, kind: input, shape index: {}]   ;;  %s7551_s3 = inlined_call_operand.hbm [shape: f32[2,18,32,128], index: 3, kind: output, shape index: {}]  }
   0x1   :  { %10 = vsyncpa [#allocation3 + $0x1], 0 }
   0x2   :  { %11 = vsyncpa [#allocation6], 0 }
   0x3   :  { %12 = vsyncpa [#allocation4], 0 }
   0x4   :  { %14 = vsyncpa [#allocation4 + $0x1], 0  ;;  %s6605_s12 = smov 0   ;;  %s6607_s13 = smov 0  }
   0x5   :  { %s6609_s14 = smov 0   ;;  %s6611_s15 = smov 0  }
   0x6   :  { %s6613_s16 = smov 0   ;;  %s6615_s17 = smov 0  }
   0x7 LB: > { %s3783_s18 = sadd.s32 4294967295, %s6574_s17   ;;  %s3784_s19 = sadd.s32 4294967294, %s6574_s17   ;;  %s6574_s17 = sphi %s6615_s17, %s20_s17   ;;  %s6570_s16 = sphi %s6613_s16, %s7573_s16   ;;  %s6566_s15 = sphi %s6611_s15, %s7572_s15   ;;  %s6562_s14 = sphi %s6609_s14, %s7571_s14   ;;  %s6558_s13 = sphi %s6607_s13, %s7570_s13   ;;  %s6554_s12 = sphi %s6605_s12, %s7569_s12  }
   0x8   : > { %p52_p0 = scmp.ne.s32.totalorder %s6558_s13, %s6554_s12  ;;  %p6639_p1 = scmp.eq.s32.totalorder %s3783_s18, 0 }
   0x9   : > { %p6643_p2 = scmp.eq.s32.totalorder %s3783_s18, 1  ;;  %p136_p3 = scmp.eq.s32.totalorder %s3784_s19, 1 }
   0xa   : > { %s7556_s20 = scalar_select %p6639_p1, 1, 0 }
   0xb   : > { %p6649_p4 = por %p6639_p1, %p52_p0  ;;  %p3785_p5 = scmp.ge.s32.totalorder %s6574_s17, 1 }
   0xc   : > { %p6654_p6 = por %p136_p3, %p52_p0  ;;  %p143_p7 = scmp.lt.s32.totalorder %s6574_s17, 3 }
   0xd   : > { %s7558_s22 = scalar_select %p6649_p4, 1, 0 }
   0xe   : > { %s7559_s23 = scalar_select %p6654_p6, 1, 0 }
   0xf   : > { %p6659_p8 = pnand %p3785_p5, %p143_p7  ;;  %s6576_s25 = smov [#allocation5]  }
  0x10   : > { %s157_s26 = sshll.u32 %s6576_s25, 4  ;;  %s6577_s28 = smov [#allocation7]   ;;  %s6663_s26 = int_to_ptr.vmem [resolvable:$true] %s157_s26 }
  0x11   : > { %p6326_p9 = pneg %p6659_p8  ;;  %s173_s29 = sshll.u32 %s6577_s28, 4  ;;  %s6674_s29 = int_to_ptr.vmem [resolvable:$true] %s173_s29 }
  0x12   : > { %s6402_s5 = scalar_lea.hbm %s7549_s1, 18432 }
  0x13   : > { %p6670_p11 = pnand %p6326_p9, %p6639_p1  ;;  %p6403_p12 = scmp.ne.s32.totalorder %s7549_s1, %s6402_s5 }
  0x14   : > { %p6409_p5 = scmp.lt.u32.totalorder %s6402_s5, %s7549_s1 }
  0x15   : > { %p6404_p13 = pneg %p6670_p11 }
  0x17   : > { %p6405_p0 = pnand %p6404_p13, %p6403_p12 }
  0x19   : > { %p6406_p3 = pneg %p6405_p0 }
  0x1b   : > { %p6411_p7 = pnand %p6409_p5, %p6406_p3 }
  0x1d   : > { %6414 = shalt.err (!%p6411_p7)
}
  0x1e   : > { %s6415_s10 = scalar_lea.vmem %s6663_s26, 18432  ;;  %p6423_p1 = scmp.lt.s32.totalorder %s6663_s26, %s6663_s26 }
  0x1f   : > { %p6416_p9 = scmp.ne.s32.totalorder %s6663_s26, %s6415_s10  ;;  %p6424_p12 = scmp.lt.s32.totalorder %s6415_s10, %s6415_s10 }
  0x21   : > { %p6418_p10 = pnand %p6416_p9, %p6404_p13  ;;  %p6425_p0 = por %p6424_p12, %p6423_p1 }
  0x23   : > { %p6419_p6 = pneg %p6418_p10 }
  0x25   : > { %p6426_p4 = pnand %p6425_p0, %p6419_p6 }
  0x27   : > { %6429 = shalt.err (!%p6426_p4)
}
  0x28   : > { %s6578_s11 = smov 128   ;;  %s6579_s18 = smov 8  }
  0x29   : > { %6329 = dma.hbm_to_vmem [thread:$0]  (!%p6670_p11), %s7549_s1, 18432, %s6663_s26, [#allocation6], %s6578_s11, %s6578_s11, %s6579_s18  }
  0x2a   : > { %s6430_s4 = scalar_lea.hbm %s7550_s2, 16 }
  0x2b   : > { %p6431_p1 = scmp.ne.s32.totalorder %s7550_s2, %s6430_s4  ;;  %p6437_p10 = scmp.lt.u32.totalorder %s6430_s4, %s7550_s2 }
  0x2d   : > { %p6433_p4 = pnand %p6431_p1, %p6404_p13 }
  0x2f   : > { %p6434_p6 = pneg %p6433_p4 }
  0x31   : > { %p6439_p3 = pnand %p6437_p10, %p6434_p6 }
  0x33   : > { %6442 = shalt.err (!%p6439_p3)
}
  0x34   : > { %s6443_s26 = scalar_lea.vmem %s6674_s29, 16  ;;  %s6450_s9 = scalar_lea.vmem %s6674_s29, 32 }
  0x35   : > { %p6444_p5 = scmp.ne.s32.totalorder %s6674_s29, %s6443_s26  ;;  %p6451_p12 = scmp.lt.s32.totalorder %s6674_s29, %s6674_s29 }
  0x36   : > { %p6452_p0 = scmp.lt.s32.totalorder %s6450_s9, %s6443_s26 }
  0x37   : > { %p6446_p7 = pnand %p6444_p5, %p6404_p13 }
  0x38   : > { %p6453_p1 = por %p6452_p0, %p6451_p12 }
  0x39   : > { %p6447_p9 = pneg %p6446_p7 }
  0x3b   : > { %p6454_p4 = pnand %p6453_p1, %p6447_p9 }
  0x3d   : > { %6457 = shalt.err (!%p6454_p4)
}
  0x3e   : > { %6332 = dma.hbm_to_vmem [thread:$0]  (!%p6670_p11), %s7550_s2, 16, %s6674_s29, [#allocation6]  }
  0x3f   : > { %s29_s25 = sadd.s32 1, %s6570_s16  ;;  %s39_s28 = sadd.s32 1, %s6562_s14 }
  0x40   : > { %p30_p13 = scmp.ge.s32.totalorder %s29_s25, 2  ;;  %p46_p6 = scmp.ne.s32.totalorder %s6562_s14, %s6558_s13 }
  0x41   : > { %p47_p10 = scmp.eq.s32.totalorder %s6574_s17, 0  ;;  %p6343_p3 = scmp.lt.s32.totalorder %s6574_s17, 2 }
  0x42   : > { %s7575_s25 = smov (%p30_p13, %s29_s25), 0  ;;  %p6742_p7 = por %p6643_p2, %p46_p6 }
  0x43   : > { %p48_p5 = por %p47_p10, %p46_p6  ;;  %s36_s30 = ssub.s32 %s6570_s16, %s7575_s25 }
  0x44   : > { %s7562_s27 = scalar_select %p6742_p7, 1, 0 }
  0x45   : > { %s184_s4 = sand.u32 1, %s6562_s14   ;;  %p37_p9 = scmp.eq.s32.totalorder %s36_s30, 0 }
  0x46   : > { %s6310_s29 = smul.u32 576, %s184_s4  ;;  %p6749_p11 = pnand %p6343_p3, %p48_p5 }
  0x47   : > { %s6754_s6 = scalar_select %p37_p9, %s6562_s14, %s39_s28  }
  0x48   : > { %s6311_s7 = smul.u32 9216, %s6570_s16  ;;  %s188_s8 = scalar_lea.vmem [#allocation2], %s6310_s29 }
  0x49   : > { %s195_s26 = sshll.u32 %s188_s8, 4  ;;  %s6764_s19 = scalar_lea.sflag [#allocation3], %s184_s4  ;;  %s6762_s26 = int_to_ptr.vmem [resolvable:$true] %s195_s26 }
  0x4a   : > { %s6760_s10 = scalar_lea.hbm %s7548_s0, %s6311_s7  ;;  %p6460_p12 = pneg %p6749_p11 }
  0x4b   : > { %s6458_s30 = scalar_lea.hbm %s6760_s10, 9216  ;;  %s6463_s7 = scalar_lea.hbm %s7548_s0, 18432 }
  0x4c   : > { %p6459_p2 = scmp.ne.s32.totalorder %s6760_s10, %s6458_s30  ;;  %p6464_p4 = scmp.lt.u32.totalorder %s6760_s10, %s7548_s0 }
  0x4d   : > { %p6465_p13 = scmp.lt.u32.totalorder %s6463_s7, %s6458_s30  ;;  %p6467_p10 = scmp.lt.u32.totalorder %s6458_s30, %s6760_s10 }
  0x4e   : > { %p6461_p0 = pnand %p6460_p12, %p6459_p2 }
  0x4f   : > { %p6466_p6 = por %p6465_p13, %p6464_p4 }
  0x50   : > { %p6462_p1 = pneg %p6461_p0 }
  0x51   : > { %p6468_p3 = por %p6467_p10, %p6466_p6 }
  0x53   : > { %p6469_p5 = pnand %p6468_p3, %p6462_p1 }
  0x55   : > { %6472 = shalt.err (!%p6469_p5)
}
  0x56   : > { %s6473_s4 = scalar_lea.vmem %s6762_s26, 9216  ;;  %s6580_s9 = smov [#allocation2]  }
  0x57   : > { %p6474_p9 = scmp.ne.s32.totalorder %s6762_s26, %s6473_s4  ;;  %s6478_s28 = sshll.u32 %s6580_s9, 4  ;;  %s6479_s28 = int_to_ptr.vmem [resolvable:$false] %s6478_s28 }
  0x58   : > { %s6480_s29 = scalar_lea.vmem %s6479_s28, 18432  ;;  %p6481_p7 = scmp.lt.s32.totalorder %s6762_s26, %s6479_s28 }
  0x59   : > { %p6476_p2 = pnand %p6474_p9, %p6460_p12  ;;  %p6482_p4 = scmp.lt.s32.totalorder %s6480_s29, %s6473_s4 }
  0x5b   : > { %p6477_p0 = pneg %p6476_p2  ;;  %p6483_p13 = por %p6482_p4, %p6481_p7 }
  0x5d   : > { %p6484_p6 = pnand %p6483_p13, %p6477_p0 }
  0x5f   : > { %6487 = shalt.err (!%p6484_p6)
}
  0x60   : > { %6336 = dma.hbm_to_vmem [thread:$0]  (!%p6749_p11), %s6760_s10, 9216, %s6762_s26, %s6764_s19, %s6578_s11, %s6578_s11, %s6579_s18  }
  0x61   : > { %207 = sbr.rel (%p6659_p8) target bundleno = 659 (0x293), region = 32  ;;  %s6798_s30 = sand.u32 (!%p6659_p8), 1, %s6558_s13  }
  0x62   : > { %s6312_s7 = smul.u32 (!%p6659_p8), 576, %s6798_s30  ;;  %s210_s8 = scalar_lea.sflag (!%p6659_p8), [#allocation3], %s6798_s30 }
  0x63   : > { %p7564_p7 = scmp.ne.s32.totalorder (!%p6659_p8), %s7558_s22, 0 }
  0x64   : > { %s6804_s5 = scalar_lea.vmem (!%p6659_p8), [#allocation2], %s6312_s7 }
  0x68   : > { %6541 = dma.done.wait (%p7564_p7), %s210_s8, 9216  }
  0x69   : > { %6543 = vsyncadd (%p7564_p7), %s210_s8, 4294958080  ;;  %p7565_p11 = scmp.ne.s32.totalorder %s7556_s20, 0 }
  0x6b   : > { %6545 = dma.done.wait (%p7565_p11), [#allocation6], 18448  }
  0x6c   : > { %6547 = vsyncadd (%p7565_p11), [#allocation6], 4294948848  ;;  %v328_v0 = vld [vmem:[#allocation5 + $0x180] sm:$0xff]  ;;  %v329_v1 = vld [vmem:[#allocation5 + $0x188] sm:$0xff]  ;;  %s7384_s20 = scalar_lea.vmem [#allocation8], %s6312_s7  ;;  %s6313_s22 = smul.u32 9216, %s6566_s15 }
  0x6d   : > { %v330_v2 = vld [vmem:[#allocation5 + $0x190] sm:$0xff]  ;;  %v5478_v3 = vpack.c.bf16 %v329_v1, %v328_v0  ;;  %v331_v4 = vld [vmem:[#allocation5 + $0x198] sm:$0xff]  ;;  %v332_v6 = vld [vmem:[#allocation5 + $0x1a0] sm:$0xff]  ;;  %s3674_s24 = sshll.u32 %s7384_s20, 4  ;;  %s3660_s26 = scalar_lea.sflag [#allocation4], %s6798_s30  ;;  %s7495_s24 = int_to_ptr.vmem [resolvable:$true] %s3674_s24 }
  0x6e   : > { %v5482_v5 = vpack.c.bf16 %v331_v4, %v330_v2  ;;  %v333_v7 = vld [vmem:[#allocation5 + $0x1a8] sm:$0xff]  ;;  %v334_v11 = vld [vmem:[#allocation5 + $0x1b0] sm:$0xff]  ;;  %v335_v12 = vld [vmem:[#allocation5 + $0x1b8] sm:$0xff]  ;;  %s7493_s18 = scalar_lea.hbm %s7551_s3, %s6313_s22  ;;  %s6488_s10 = scalar_lea.vmem %s7495_s24, 9216 }
  0x6f   : > { %5479 = vmatprep.subr.bf16.mxu0 %v5478_v3  ;;  %5767 = vmatprep.subr.bf16.mxu1 %v5478_v3  ;;  %v5486_v8 = vpack.c.bf16 %v333_v7, %v332_v6  ;;  %v6815_v9 = vld [vmem:[%s6804_s5 + $0x27] sm:$0xff]  ;;  %v5490_v13 = vpack.c.bf16 %v335_v12, %v334_v11  ;;  %v338_v17 = vld [vmem:[#allocation5 + $0x1d0] sm:$0xff]  ;;  %v339_v18 = vld [vmem:[#allocation5 + $0x1d8] sm:$0xff]  ;;  %p6489_p8 = scmp.ne.s32.totalorder %s7495_s24, %s6488_s10  ;;  %p7566_p12 = scmp.ne.s32.totalorder %s7562_s27, 0 }
  0x70   : > { %5481 = vmatpush3.bf16.msra.mxu0 %v5478_v3  ;;  %5769 = vmatpush3.bf16.msra.mxu1 %v5478_v3  ;;  %v6818_v10 = vld [vmem:[%s6804_s5 + $0x127] sm:$0xff]  ;;  %v5498_v19 = vpack.c.bf16 %v339_v18, %v338_v17  ;;  %v342_v23 = vld [vmem:[#allocation5 + $0x1f0] sm:$0xff]  ;;  %v343_v24 = vld [vmem:[#allocation5 + $0x1f8] sm:$0xff]  ;;  %s6582_s19 = smov [#allocation8]  }
  0x71   : > { %5483 = vmatprep.subr.bf16.mxu0 %v5482_v5  ;;  %5771 = vmatprep.subr.bf16.mxu1 %v5482_v5  ;;  %v336_v14 = vld [vmem:[#allocation5 + $0x1c0] sm:$0xff]  ;;  %v337_v15 = vld [vmem:[#allocation5 + $0x1c8] sm:$0xff]  ;;  %v5506_v25 = vpack.c.bf16 %v343_v24, %v342_v23  ;;  %v313_v29 = vld [vmem:[#allocation5 + $0x10] sm:$0xff]  ;;  %p6490_p1 = pnand %p6489_p8, %p7566_p12  ;;  %s6492_s21 = sshll.u32 %s6582_s19, 4  ;;  %s6493_s21 = int_to_ptr.vmem [resolvable:$false] %s6492_s21 }
  0x72   : > { %4502 = vmatprep.mubr.f32.mxu0 %v6815_v9  ;;  %5006 = vmatprep.mubr.f32.mxu1 %v6818_v10  ;;  %v5494_v16 = vpack.c.bf16 %v337_v15, %v336_v14  ;;  %v340_v20 = vld [vmem:[#allocation5 + $0x1e0] sm:$0xff]  ;;  %v341_v21 = vld [vmem:[#allocation5 + $0x1e8] sm:$0xff]  ;;  %v314_v30 = vld [vmem:[#allocation5 + $0x18] sm:$0xff]  ;;  %s6494_s4 = scalar_lea.vmem %s6493_s21, 18432  ;;  %p6495_p3 = scmp.lt.s32.totalorder %s7495_s24, %s6493_s21 }
  0x73   : > { %v5502_v22 = vpack.c.bf16 %v341_v21, %v340_v20  ;;  %v311_v26 = vld [vmem:[#allocation5] sm:$0xff]  ;;  %v312_v27 = vld [vmem:[#allocation5 + $0x8] sm:$0xff]  ;;  %v5514_v35 = vpack.c.bf16 %v314_v30, %v313_v29  ;;  %v317_v43 = vld [vmem:[#allocation5 + $0x30] sm:$0xff]  ;;  %p6491_p10 = pneg %p6490_p1  ;;  %p6496_p5 = scmp.lt.s32.totalorder %s6494_s4, %s6488_s10 }
  0x74   : > { %5485 = vmatpush3.bf16.msra.mxu0 %v5482_v5  ;;  %5773 = vmatpush3.bf16.msra.mxu1 %v5482_v5  ;;  %v5510_v28 = vpack.c.bf16 %v312_v27, %v311_v26  ;;  %v6823_v31 = vld [vmem:[%s6804_s5 + $0x2f] sm:$0xff]  ;;  %v6829_v33 = vld [vmem:[%s6804_s5 + $0x47] sm:$0xff]  ;;  %v318_v44 = vld [vmem:[#allocation5 + $0x38] sm:$0xff] }
  0x75   : > { %5487 = vmatprep.subr.bf16.mxu0 %v5486_v8  ;;  %5775 = vmatprep.subr.bf16.mxu1 %v5486_v8  ;;  %v6826_v32 = vld [vmem:[%s6804_s5 + $0x12f] sm:$0xff]  ;;  %v6832_v34 = vld [vmem:[%s6804_s5 + $0x147] sm:$0xff]  ;;  %v5522_v49 = vpack.c.bf16 %v318_v44, %v317_v43  ;;  %v322_v58 = vld [vmem:[#allocation5 + $0x58] sm:$0xff]  ;;  %p6497_p9 = por %p6496_p5, %p6495_p3 }
  0x76   : > { %v315_v36 = vld [vmem:[#allocation5 + $0x20] sm:$0xff]  ;;  %v316_v37 = vld [vmem:[#allocation5 + $0x28] sm:$0xff]  ;;  %v321_v57 = vld [vmem:[#allocation5 + $0x50] sm:$0xff] }
  0x77   : > { %v6837_v38 = vld [vmem:[%s6804_s5 + $0x4f] sm:$0xff]  ;;  %v6845_v40 = vld [vmem:[%s6804_s5 + $0x67] sm:$0xff]  ;;  %v5518_v42 = vpack.c.bf16 %v316_v37, %v315_v36  ;;  %v5530_v63 = vpack.c.bf16 %v322_v58, %v321_v57  ;;  %v638_v23 = vld [vmem:[#allocation5 + $0x318] sm:$0xff]  ;;  %p6498_p2 = pnand %p6497_p9, %p6491_p10 }
  0x78   : > { %5489 = vmatpush3.bf16.msra.mxu0 %v5486_v8  ;;  %5777 = vmatpush3.bf16.msra.mxu1 %v5486_v8  ;;  %v6840_v39 = vld [vmem:[%s6804_s5 + $0x14f] sm:$0xff]  ;;  %v6848_v41 = vld [vmem:[%s6804_s5 + $0x167] sm:$0xff]  ;;  %v326_v8 = vld [vmem:[#allocation5 + $0x78] sm:$0xff] }
  0x79   : > { %5491 = vmatprep.subr.bf16.mxu0 %v5490_v13  ;;  %5779 = vmatprep.subr.bf16.mxu1 %v5490_v13  ;;  %v6853_v45 = vld [vmem:[%s6804_s5 + $0x6f] sm:$0xff]  ;;  %v6861_v47 = vld [vmem:[%s6804_s5 + $0x87] sm:$0xff]  ;;  %v642_v30 = vld [vmem:[#allocation5 + $0x338] sm:$0xff] }
  0x7a   : > { %v6856_v46 = vld [vmem:[%s6804_s5 + $0x16f] sm:$0xff]  ;;  %v6864_v48 = vld [vmem:[%s6804_s5 + $0x187] sm:$0xff] }
  0x7b   : > { %v319_v50 = vld [vmem:[#allocation5 + $0x40] sm:$0xff]  ;;  %v320_v51 = vld [vmem:[#allocation5 + $0x48] sm:$0xff]  ;;  %v325_v7 = vld [vmem:[#allocation5 + $0x70] sm:$0xff] }
  0x7c   : > { %5493 = vmatpush3.bf16.msra.mxu0 %v5490_v13  ;;  %5781 = vmatpush3.bf16.msra.mxu1 %v5490_v13  ;;  %v6869_v52 = vld [vmem:[%s6804_s5 + $0x8f] sm:$0xff]  ;;  %v6877_v54 = vld [vmem:[%s6804_s5 + $0xa7] sm:$0xff]  ;;  %v5526_v56 = vpack.c.bf16 %v320_v51, %v319_v50  ;;  %v5538_v15 = vpack.c.bf16 %v326_v8, %v325_v7 }
  0x7d   : > { %5495 = vmatprep.subr.bf16.mxu0 %v5494_v16  ;;  %5783 = vmatprep.subr.bf16.mxu1 %v5494_v16  ;;  %v6872_v53 = vld [vmem:[%s6804_s5 + $0x18f] sm:$0xff]  ;;  %v6880_v55 = vld [vmem:[%s6804_s5 + $0x1a7] sm:$0xff] }
  0x7e   : > { %v6885_v59 = vld [vmem:[%s6804_s5 + $0xaf] sm:$0xff]  ;;  %v6893_v61 = vld [vmem:[%s6804_s5 + $0xc7] sm:$0xff] }
  0x7f   : > { %v6888_v60 = vld [vmem:[%s6804_s5 + $0x1af] sm:$0xff]  ;;  %v6896_v62 = vld [vmem:[%s6804_s5 + $0x1c7] sm:$0xff] }
  0x80   : > { %5497 = vmatpush3.bf16.msra.mxu0 %v5494_v16  ;;  %5785 = vmatpush3.bf16.msra.mxu1 %v5494_v16  ;;  %v323_v0 = vld [vmem:[#allocation5 + $0x60] sm:$0xff]  ;;  %v324_v1 = vld [vmem:[#allocation5 + $0x68] sm:$0xff]  ;;  %v641_v29 = vld [vmem:[#allocation5 + $0x330] sm:$0xff] }
  0x81   : > { %5499 = vmatprep.subr.bf16.mxu0 %v5498_v19  ;;  %5787 = vmatprep.subr.bf16.mxu1 %v5498_v19  ;;  %v6901_v2 = vld [vmem:[%s6804_s5 + $0xcf] sm:$0xff]  ;;  %v6909_v4 = vld [vmem:[%s6804_s5 + $0xe7] sm:$0xff]  ;;  %v5534_v6 = vpack.c.bf16 %v324_v1, %v323_v0 }
  0x82   : > { %v6904_v3 = vld [vmem:[%s6804_s5 + $0x1cf] sm:$0xff]  ;;  %v6912_v5 = vld [vmem:[%s6804_s5 + $0x1e7] sm:$0xff] }
  0x83   : > { %v6917_v11 = vld [vmem:[%s6804_s5 + $0xef] sm:$0xff]  ;;  %v6925_v13 = vld [vmem:[%s6804_s5 + $0x107] sm:$0xff] }
  0x84   : > { %5501 = vmatpush3.bf16.msra.mxu0 %v5498_v19  ;;  %5789 = vmatpush3.bf16.msra.mxu1 %v5498_v19  ;;  %v6920_v12 = vld [vmem:[%s6804_s5 + $0x1ef] sm:$0xff]  ;;  %v6928_v14 = vld [vmem:[%s6804_s5 + $0x207] sm:$0xff] }
  0x85   : > { %5503 = vmatprep.subr.bf16.mxu0 %v5502_v22  ;;  %5791 = vmatprep.subr.bf16.mxu1 %v5502_v22  ;;  %v635_v16 = vld [vmem:[#allocation5 + $0x300] sm:$0xff]  ;;  %v636_v17 = vld [vmem:[#allocation5 + $0x308] sm:$0xff]  ;;  %v645_v37 = vld [vmem:[#allocation5 + $0x350] sm:$0xff] }
  0x86   : > { %v6933_v18 = vld [vmem:[%s6804_s5 + $0x10f] sm:$0xff]  ;;  %v291_v20 = vld [vmem:[%s6804_s5 + $0x7] sm:$0xff]  ;;  %v5542_v21 = vpack.c.bf16 %v636_v17, %v635_v16  ;;  %v840_v16 = vld [vmem:[#allocation5 + $0xb8] sm:$0xff] }
  0x87   : > { %v6936_v19 = vld [vmem:[%s6804_s5 + $0x20f] sm:$0xff]  ;;  %v639_v26 = vld [vmem:[#allocation5 + $0x320] sm:$0xff] }
  0x88   : > { %5505 = vmatpush3.bf16.msra.mxu0 %v5502_v22  ;;  %5793 = vmatpush3.bf16.msra.mxu1 %v5502_v22  ;;  %v637_v22 = vld [vmem:[#allocation5 + $0x310] sm:$0xff]  ;;  %v640_v27 = vld [vmem:[#allocation5 + $0x328] sm:$0xff]  ;;  %v647_v44 = vld [vmem:[#allocation5 + $0x360] sm:$0xff] }
  0x89   : > { %5507 = vmatprep.subr.bf16.mxu0 %v5506_v25  ;;  %5795 = vmatprep.subr.bf16.mxu1 %v5506_v25  ;;  %v292_v24 = vld [vmem:[%s6804_s5 + $0xf] sm:$0xff]  ;;  %v833_v58 = vld [vmem:[#allocation5 + $0x80] sm:$0xff] }
  0x8a   : > { %v644_v36 = vld [vmem:[#allocation5 + $0x348] sm:$0xff]  ;;  %v649_v51 = vld [vmem:[#allocation5 + $0x370] sm:$0xff]  ;;  %v837_v8 = vld [vmem:[#allocation5 + $0xa0] sm:$0xff] }
  0x8b   : > { %v835_v1 = vld [vmem:[#allocation5 + $0x90] sm:$0xff] }
  0x8c   : > { %5509 = vmatpush3.bf16.msra.mxu0 %v5506_v25  ;;  %5797 = vmatpush3.bf16.msra.mxu1 %v5506_v25  ;;  %v5546_v25 = vpack.c.bf16 %v638_v23, %v637_v22  ;;  %v7031_v22 = vld [vmem:[%s6804_s5 + $0x48] sm:$0xff] }
  0x8d   : > { %5511 = vmatprep.subr.bf16.mxu0 %v5510_v28  ;;  %5799 = vmatprep.subr.bf16.mxu1 %v5510_v28  ;;  %v7034_v23 = vld [vmem:[%s6804_s5 + $0x148] sm:$0xff] }
  0x8f   : > { %4503 = vmatmul.mubr.f32.vlgmr.msra.gmra.mrb[0].mxu0 %v6823_v31  ;;  %5007 = vmatmul.mubr.f32.vlgmr.msra.gmra.mrb[0].mxu1 %v6826_v32 }
  0x90   : > { %5513 = vmatpush3.bf16.msra.mxu0 %v5510_v28  ;;  %5801 = vmatpush3.bf16.msra.mxu1 %v5510_v28  ;;  %v5550_v28 = vpack.c.bf16 %v640_v27, %v639_v26  ;;  %v1018_v26 = vld [vmem:[#allocation5 + $0x238] sm:$0xff]  ;;  %v7039_v27 = vld [vmem:[%s6804_s5 + $0x50] sm:$0xff] }
  0x91   : > { %4505 = vmatprep.mubr.f32.mxu0 %v6829_v33  ;;  %5009 = vmatprep.mubr.f32.mxu1 %v6832_v34 }
  0x92   : > { %5515 = vmatprep.subr.bf16.mxu0 %v5514_v35  ;;  %5803 = vmatprep.subr.bf16.mxu1 %v5514_v35 }
  0x93   : > { %4506 = vmatmul.mubr.f32.gmra.mrb[2].mxu0 %v6837_v38  ;;  %5010 = vmatmul.mubr.f32.gmra.mrb[2].mxu1 %v6840_v39 }
  0x94   : > { %5517 = vmatpush3.bf16.msra.mxu0 %v5514_v35  ;;  %5805 = vmatpush3.bf16.msra.mxu1 %v5514_v35  ;;  %v643_v35 = vld [vmem:[#allocation5 + $0x340] sm:$0xff] }
  0x95   : > { %4508 = vmatprep.mubr.f32.mxu0 %v6845_v40  ;;  %5012 = vmatprep.mubr.f32.mxu1 %v6848_v41 }
  0x96   : > { %5519 = vmatprep.subr.bf16.mxu0 %v5518_v42  ;;  %5807 = vmatprep.subr.bf16.mxu1 %v5518_v42 }
  0x97   : > { %4509 = vmatmul.mubr.f32.gmra.mrb[4].mxu0 %v6853_v45  ;;  %5013 = vmatmul.mubr.f32.gmra.mrb[4].mxu1 %v6856_v46 }
  0x98   : > { %5521 = vmatpush3.bf16.msra.mxu0 %v5518_v42  ;;  %5809 = vmatpush3.bf16.msra.mxu1 %v5518_v42  ;;  %v646_v42 = vld [vmem:[#allocation5 + $0x358] sm:$0xff] }
  0x99   : > { %4511 = vmatprep.mubr.f32.mxu0 %v6861_v47  ;;  %5015 = vmatprep.mubr.f32.mxu1 %v6864_v48  ;;  %v5562_v43 = vpack.c.bf16 %v646_v42, %v645_v37  ;;  %v7058_v37 = vld [vmem:[%s6804_s5 + $0x170] sm:$0xff]  ;;  %v7063_v42 = vld [vmem:[%s6804_s5 + $0x88] sm:$0xff] }
  0x9a   : > { %5523 = vmatprep.subr.bf16.mxu0 %v5522_v49  ;;  %5811 = vmatprep.subr.bf16.mxu1 %v5522_v49 }
  0x9b   : > { %4512 = vmatmul.mubr.f32.gmra.mrb[6].mxu0 %v6869_v52  ;;  %5016 = vmatmul.mubr.f32.gmra.mrb[6].mxu1 %v6872_v53 }
  0x9c   : > { %5525 = vmatpush3.bf16.msra.mxu0 %v5522_v49  ;;  %5813 = vmatpush3.bf16.msra.mxu1 %v5522_v49  ;;  %v648_v49 = vld [vmem:[#allocation5 + $0x368] sm:$0xff] }
  0x9d   : > { %4514 = vmatprep.mubr.f32.mxu0 %v6877_v54  ;;  %5018 = vmatprep.mubr.f32.mxu1 %v6880_v55  ;;  %v5566_v50 = vpack.c.bf16 %v648_v49, %v647_v44  ;;  %v1021_v49 = vld [vmem:[#allocation5 + $0x250] sm:$0xff] }
  0x9e   : > { %5527 = vmatprep.subr.bf16.mxu0 %v5526_v56  ;;  %5815 = vmatprep.subr.bf16.mxu1 %v5526_v56 }
  0x9f   : > { %4515 = vmatmul.mubr.f32.gmra.mrb[8].mxu0 %v6885_v59  ;;  %5019 = vmatmul.mubr.f32.gmra.mrb[8].mxu1 %v6888_v60 }
  0xa0   : > { %5529 = vmatpush3.bf16.msra.mxu0 %v5526_v56  ;;  %5817 = vmatpush3.bf16.msra.mxu1 %v5526_v56  ;;  %v650_v56 = vld [vmem:[#allocation5 + $0x378] sm:$0xff] }
  0xa1   : > { %4517 = vmatprep.mubr.f32.mxu0 %v6893_v61  ;;  %5021 = vmatprep.mubr.f32.mxu1 %v6896_v62  ;;  %v5570_v57 = vpack.c.bf16 %v650_v56, %v649_v51  ;;  %v7071_v51 = vld [vmem:[%s6804_s5 + $0x90] sm:$0xff] }
  0xa2   : > { %5531 = vmatprep.subr.bf16.mxu0 %v5530_v63  ;;  %5819 = vmatprep.subr.bf16.mxu1 %v5530_v63  ;;  %v7074_v56 = vld [vmem:[%s6804_s5 + $0x190] sm:$0xff] }
  0xa3   : > { %4518 = vmatmul.mubr.f32.gmra.mrb[10].mxu0 %v6901_v2  ;;  %5022 = vmatmul.mubr.f32.gmra.mrb[10].mxu1 %v6904_v3 }
  0xa4   : > { %5533 = vmatpush3.bf16.msra.mxu0 %v5530_v63  ;;  %5821 = vmatpush3.bf16.msra.mxu1 %v5530_v63  ;;  %v834_v63 = vld [vmem:[#allocation5 + $0x88] sm:$0xff] }
  0xa5   : > { %4520 = vmatprep.mubr.f32.mxu0 %v6909_v4  ;;  %5024 = vmatprep.mubr.f32.mxu1 %v6912_v5  ;;  %v5574_v0 = vpack.c.bf16 %v834_v63, %v833_v58  ;;  %v7082_v58 = vld [vmem:[%s6804_s5 + $0x1a8] sm:$0xff] }
  0xa6   : > { %5535 = vmatprep.subr.bf16.mxu0 %v5534_v6  ;;  %5823 = vmatprep.subr.bf16.mxu1 %v5534_v6 }
  0xa7   : > { %4521 = vmatmul.mubr.f32.gmra.mrb[12].mxu0 %v6917_v11  ;;  %5025 = vmatmul.mubr.f32.gmra.mrb[12].mxu1 %v6920_v12 }
  0xa8   : > { %5537 = vmatpush3.bf16.msra.mxu0 %v5534_v6  ;;  %5825 = vmatpush3.bf16.msra.mxu1 %v5534_v6  ;;  %v836_v6 = vld [vmem:[#allocation5 + $0x98] sm:$0xff] }
  0xa9   : > { %4523 = vmatprep.mubr.f32.mxu0 %v6925_v13  ;;  %5027 = vmatprep.mubr.f32.mxu1 %v6928_v14  ;;  %v5578_v7 = vpack.c.bf16 %v836_v6, %v835_v1  ;;  %v1024_v1 = vld [vmem:[#allocation5 + $0x268] sm:$0xff]  ;;  %v7087_v6 = vld [vmem:[%s6804_s5 + $0xb0] sm:$0xff] }
  0xaa   : > { %5539 = vmatprep.subr.bf16.mxu0 %v5538_v15  ;;  %5827 = vmatprep.subr.bf16.mxu1 %v5538_v15 }
  0xab   : > { %4524 = vmatmul.mubr.f32.gmra.mrb[14].mxu0 %v6933_v18  ;;  %5028 = vmatmul.mubr.f32.gmra.mrb[14].mxu1 %v6936_v19 }
  0xac   : > { %5541 = vmatpush3.bf16.msra.mxu0 %v5538_v15  ;;  %5829 = vmatpush3.bf16.msra.mxu1 %v5538_v15  ;;  %v838_v15 = vld [vmem:[#allocation5 + $0xa8] sm:$0xff] }
  0xad   : > { %4558 = vmatprep.mubr.f32.mxu0 %v291_v20  ;;  %5062 = vmatprep.mubr.f32.mxu1 %v6925_v13  ;;  %v7023_v20 = vld [vmem:[%s6804_s5 + $0x30] sm:$0xff] }
  0xae   : > { %5543 = vmatprep.subr.bf16.mxu0 %v5542_v21  ;;  %5831 = vmatprep.subr.bf16.mxu1 %v5542_v21 }
  0xaf   : > { %4559 = vmatmul.mubr.f32.vlgmr.msra.gmra.mrb[0].mxu0 %v292_v24  ;;  %5063 = vmatmul.mubr.f32.vlgmr.msra.gmra.mrb[0].mxu1 %v6933_v18 }
  0xb0   : > { %5545 = vmatpush3.bf16.msra.mxu0 %v5542_v21  ;;  %5833 = vmatpush3.bf16.msra.mxu1 %v5542_v21  ;;  %v7026_v21 = vld [vmem:[%s6804_s5 + $0x130] sm:$0xff] }
  0xb1   : > { %4561 = vmatprep.mubr.f32.mxu0 %v6815_v9  ;;  %5065 = vmatprep.mubr.f32.mxu1 %v6818_v10  ;;  %v5554_v9 = vpack.c.bf16 %v642_v30, %v641_v29  ;;  %v7047_v29 = vld [vmem:[%s6804_s5 + $0x68] sm:$0xff] }
  0xb2   : > { %5547 = vmatprep.subr.bf16.mxu0 %v5546_v25  ;;  %5835 = vmatprep.subr.bf16.mxu1 %v5546_v25  ;;  %v7050_v30 = vld [vmem:[%s6804_s5 + $0x168] sm:$0xff] }
  0xb3   : > { %4562 = vmatmul.mubr.f32.gmra.mrb[2].mxu0 %v6823_v31  ;;  %5066 = vmatmul.mubr.f32.gmra.mrb[2].mxu1 %v6826_v32  ;;  %v5558_v31 = vpack.c.bf16 %v644_v36, %v643_v35  ;;  %v1019_v35 = vld [vmem:[#allocation5 + $0x240] sm:$0xff]  ;;  %v1020_v36 = vld [vmem:[#allocation5 + $0x248] sm:$0xff] }
  0xb4   : > { %5549 = vmatpush3.bf16.msra.mxu0 %v5546_v25  ;;  %5837 = vmatpush3.bf16.msra.mxu1 %v5546_v25  ;;  %v1017_v25 = vld [vmem:[#allocation5 + $0x230] sm:$0xff]  ;;  %v5622_v44 = vpack.c.bf16 %v1020_v36, %v1019_v35  ;;  %v1387_v36 = vld [vmem:[#allocation5 + $0x100] sm:$0xff] }
  0xb5   : > { %4564 = vmatprep.mubr.f32.mxu0 %v6829_v33  ;;  %5068 = vmatprep.mubr.f32.mxu1 %v6832_v34 }
  0xb6   : > { %5551 = vmatprep.subr.bf16.mxu0 %v5550_v28  ;;  %5839 = vmatprep.subr.bf16.mxu1 %v5550_v28 }
  0xb7   : > { %4565 = vmatmul.mubr.f32.gmra.mrb[4].mxu0 %v6837_v38  ;;  %5069 = vmatmul.mubr.f32.gmra.mrb[4].mxu1 %v6840_v39 }
  0xb8   : > { %5553 = vmatpush3.bf16.msra.mxu0 %v5550_v28  ;;  %5841 = vmatpush3.bf16.msra.mxu1 %v5550_v28  ;;  %v7042_v28 = vld [vmem:[%s6804_s5 + $0x150] sm:$0xff] }
  0xb9   : > { %4567 = vmatprep.mubr.f32.mxu0 %v6845_v40  ;;  %5071 = vmatprep.mubr.f32.mxu1 %v6848_v41 }
  0xba   : > { %5555 = vmatprep.subr.bf16.mxu0 %v5554_v9  ;;  %5843 = vmatprep.subr.bf16.mxu1 %v5554_v9 }
  0xbb   : > { %4568 = vmatmul.mubr.f32.gmra.mrb[6].mxu0 %v6853_v45  ;;  %5072 = vmatmul.mubr.f32.gmra.mrb[6].mxu1 %v6856_v46 }
  0xbc   : > { %5557 = vmatpush3.bf16.msra.mxu0 %v5554_v9  ;;  %5845 = vmatpush3.bf16.msra.mxu1 %v5554_v9  ;;  %v5618_v9 = vpack.c.bf16 %v1018_v26, %v1017_v25  ;;  %v1203_v25 = vld [vmem:[#allocation5 + $0x3f0] sm:$0xff]  ;;  %v1204_v26 = vld [vmem:[#allocation5 + $0x3f8] sm:$0xff] }
  0xbd   : > { %4570 = vmatprep.mubr.f32.mxu0 %v6861_v47  ;;  %5074 = vmatprep.mubr.f32.mxu1 %v6864_v48  ;;  %v5666_v35 = vpack.c.bf16 %v1204_v26, %v1203_v25  ;;  %v1575_v25 = vld [vmem:[#allocation5 + $0x2d0] sm:$0xff]  ;;  %v1576_v26 = vld [vmem:[#allocation5 + $0x2d8] sm:$0xff] }
  0xbe   : > { %5559 = vmatprep.subr.bf16.mxu0 %v5558_v31  ;;  %5847 = vmatprep.subr.bf16.mxu1 %v5558_v31 }
  0xbf   : > { %4571 = vmatmul.mubr.f32.gmra.mrb[8].mxu0 %v6869_v52  ;;  %5075 = vmatmul.mubr.f32.gmra.mrb[8].mxu1 %v6872_v53 }
  0xc0   : > { %5561 = vmatpush3.bf16.msra.mxu0 %v5558_v31  ;;  %5849 = vmatpush3.bf16.msra.mxu1 %v5558_v31  ;;  %v7055_v31 = vld [vmem:[%s6804_s5 + $0x70] sm:$0xff] }
  0xc1   : > { %4573 = vmatprep.mubr.f32.mxu0 %v6877_v54  ;;  %5077 = vmatprep.mubr.f32.mxu1 %v6880_v55 }
  0xc2   : > { %5563 = vmatprep.subr.bf16.mxu0 %v5562_v43  ;;  %5851 = vmatprep.subr.bf16.mxu1 %v5562_v43 }
  0xc3   : > { %4574 = vmatmul.mubr.f32.gmra.mrb[10].mxu0 %v6885_v59  ;;  %5078 = vmatmul.mubr.f32.gmra.mrb[10].mxu1 %v6888_v60 }
  0xc4   : > { %5565 = vmatpush3.bf16.msra.mxu0 %v5562_v43  ;;  %5853 = vmatpush3.bf16.msra.mxu1 %v5562_v43  ;;  %v7066_v43 = vld [vmem:[%s6804_s5 + $0x188] sm:$0xff] }
  0xc5   : > { %4576 = vmatprep.mubr.f32.mxu0 %v6893_v61  ;;  %5080 = vmatprep.mubr.f32.mxu1 %v6896_v62 }
  0xc6   : > { %5567 = vmatprep.subr.bf16.mxu0 %v5566_v50  ;;  %5855 = vmatprep.subr.bf16.mxu1 %v5566_v50 }
  0xc7   : > { %4577 = vmatmul.mubr.f32.gmra.mrb[12].mxu0 %v6901_v2  ;;  %5081 = vmatmul.mubr.f32.gmra.mrb[12].mxu1 %v6904_v3 }
  0xc8   : > { %5569 = vmatpush3.bf16.msra.mxu0 %v5566_v50  ;;  %5857 = vmatpush3.bf16.msra.mxu1 %v5566_v50  ;;  %v1022_v50 = vld [vmem:[#allocation5 + $0x258] sm:$0xff] }
  0xc9   : > { %4579 = vmatprep.mubr.f32.mxu0 %v6909_v4  ;;  %5083 = vmatprep.mubr.f32.mxu1 %v6912_v5  ;;  %v5626_v63 = vpack.c.bf16 %v1022_v50, %v1021_v49  ;;  %v7160_v49 = vld [vmem:[%s6804_s5 + $0x210] sm:$0xff] }
  0xca   : > { %5571 = vmatprep.subr.bf16.mxu0 %v5570_v57  ;;  %5859 = vmatprep.subr.bf16.mxu1 %v5570_v57 }
  0xcb   : > { %4580 = vmatmul.mubr.f32.gmra.mrb[14].mxu0 %v6917_v11  ;;  %5084 = vmatmul.mubr.f32.gmra.mrb[14].mxu1 %v6920_v12 }
  0xcc   : > { %5573 = vmatpush3.bf16.msra.mxu0 %v5570_v57  ;;  %5861 = vmatpush3.bf16.msra.mxu1 %v5570_v57  ;;  %v7079_v57 = vld [vmem:[%s6804_s5 + $0xa8] sm:$0xff] }
  0xcd   : > { %4614 = vmatprep.mubr.f32.mxu0 %v6829_v33  ;;  %5118 = vmatprep.mubr.f32.mxu1 %v6832_v34  ;;  %v5582_v33 = vpack.c.bf16 %v838_v15, %v837_v8  ;;  %v839_v34 = vld [vmem:[#allocation5 + $0xb0] sm:$0xff]  ;;  %v7095_v8 = vld [vmem:[%s6804_s5 + $0xc8] sm:$0xff] }
  0xce   : > { %5575 = vmatprep.subr.bf16.mxu0 %v5574_v0  ;;  %5863 = vmatprep.subr.bf16.mxu1 %v5574_v0  ;;  %v7098_v15 = vld [vmem:[%s6804_s5 + $0x1c8] sm:$0xff] }
  0xcf   : > { %4615 = vmatmul.mubr.f32.vlgmr.msra.gmra.mrb[0].mxu0 %v6837_v38  ;;  %5119 = vmatmul.mubr.f32.vlgmr.msra.gmra.mrb[0].mxu1 %v6840_v39  ;;  %v5586_v38 = vpack.c.bf16 %v840_v16, %v839_v34  ;;  %v841_v39 = vld [vmem:[#allocation5 + $0xc0] sm:$0xff]  ;;  %v1025_v34 = vld [vmem:[#allocation5 + $0x270] sm:$0xff]  ;;  %v1026_v16 = vld [vmem:[#allocation5 + $0x278] sm:$0xff] }
  0xd0   : > { %5577 = vmatpush3.bf16.msra.mxu0 %v5574_v0  ;;  %5865 = vmatpush3.bf16.msra.mxu1 %v5574_v0  ;;  %v1023_v0 = vld [vmem:[#allocation5 + $0x260] sm:$0xff] }
  0xd1   : > { %4617 = vmatprep.mubr.f32.mxu0 %v6845_v40  ;;  %5121 = vmatprep.mubr.f32.mxu1 %v6848_v41  ;;  %v842_v40 = vld [vmem:[#allocation5 + $0xc8] sm:$0xff] }
  0xd2   : > { %5579 = vmatprep.subr.bf16.mxu0 %v5578_v7  ;;  %5867 = vmatprep.subr.bf16.mxu1 %v5578_v7  ;;  %v5590_v41 = vpack.c.bf16 %v842_v40, %v841_v39  ;;  %v7106_v39 = vld [vmem:[%s6804_s5 + $0x1d0] sm:$0xff]  ;;  %v7111_v40 = vld [vmem:[%s6804_s5 + $0xe8] sm:$0xff] }
  0xd3   : > { %4618 = vmatmul.mubr.f32.gmra.mrb[2].mxu0 %v6853_v45  ;;  %5122 = vmatmul.mubr.f32.gmra.mrb[2].mxu1 %v6856_v46  ;;  %v843_v45 = vld [vmem:[#allocation5 + $0xd0] sm:$0xff]  ;;  %v844_v46 = vld [vmem:[#allocation5 + $0xd8] sm:$0xff] }
  0xd4   : > { %5581 = vmatpush3.bf16.msra.mxu0 %v5578_v7  ;;  %5869 = vmatpush3.bf16.msra.mxu1 %v5578_v7  ;;  %v7090_v7 = vld [vmem:[%s6804_s5 + $0x1b0] sm:$0xff] }
  0xd5   : > { %4620 = vmatprep.mubr.f32.mxu0 %v6861_v47  ;;  %5124 = vmatprep.mubr.f32.mxu1 %v6864_v48  ;;  %v5594_v47 = vpack.c.bf16 %v844_v46, %v843_v45  ;;  %v845_v48 = vld [vmem:[#allocation5 + $0xe0] sm:$0xff]  ;;  %v5634_v45 = vpack.c.bf16 %v1026_v16, %v1025_v34  ;;  %v1392_v34 = vld [vmem:[#allocation5 + $0x128] sm:$0xff]  ;;  %v1394_v16 = vld [vmem:[#allocation5 + $0x138] sm:$0xff] }
  0xd6   : > { %5583 = vmatprep.subr.bf16.mxu0 %v5582_v33  ;;  %5871 = vmatprep.subr.bf16.mxu1 %v5582_v33  ;;  %v1189_v46 = vld [vmem:[#allocation5 + $0x380] sm:$0xff] }
  0xd7   : > { %4621 = vmatmul.mubr.f32.gmra.mrb[4].mxu0 %v6869_v52  ;;  %5125 = vmatmul.mubr.f32.gmra.mrb[4].mxu1 %v6872_v53  ;;  %v846_v52 = vld [vmem:[#allocation5 + $0xe8] sm:$0xff] }
  0xd8   : > { %5585 = vmatpush3.bf16.msra.mxu0 %v5582_v33  ;;  %5873 = vmatpush3.bf16.msra.mxu1 %v5582_v33  ;;  %v5598_v53 = vpack.c.bf16 %v846_v52, %v845_v48  ;;  %v5630_v33 = vpack.c.bf16 %v1024_v1, %v1023_v0  ;;  %v7119_v48 = vld [vmem:[%s6804_s5 + $0xf0] sm:$0xff]  ;;  %v1390_v0 = vld [vmem:[#allocation5 + $0x118] sm:$0xff] }
  0xd9   : > { %4623 = vmatprep.mubr.f32.mxu0 %v6877_v54  ;;  %5127 = vmatprep.mubr.f32.mxu1 %v6880_v55  ;;  %v847_v54 = vld [vmem:[#allocation5 + $0xf0] sm:$0xff]  ;;  %v848_v55 = vld [vmem:[#allocation5 + $0xf8] sm:$0xff] }
  0xda   : > { %5587 = vmatprep.subr.bf16.mxu0 %v5586_v38  ;;  %5875 = vmatprep.subr.bf16.mxu1 %v5586_v38  ;;  %v7122_v52 = vld [vmem:[%s6804_s5 + $0x1f0] sm:$0xff] }
  0xdb   : > { %4624 = vmatmul.mubr.f32.gmra.mrb[6].mxu0 %v6885_v59  ;;  %5128 = vmatmul.mubr.f32.gmra.mrb[6].mxu1 %v6888_v60  ;;  %v3832_v59 = vld [vmem:[%s6804_s5 + $0x227] sm:$0xff]  ;;  %v5602_v60 = vpack.c.bf16 %v848_v55, %v847_v54  ;;  %v1191_v54 = vld [vmem:[#allocation5 + $0x390] sm:$0xff]  ;;  %v1192_v55 = vld [vmem:[#allocation5 + $0x398] sm:$0xff] }
  0xdc   : > { %5589 = vmatpush3.bf16.msra.mxu0 %v5586_v38  ;;  %5877 = vmatpush3.bf16.msra.mxu1 %v5586_v38  ;;  %v7103_v38 = vld [vmem:[%s6804_s5 + $0xd0] sm:$0xff] }
  0xdd   : > { %4626 = vmatprep.mubr.f32.mxu0 %v6893_v61  ;;  %5130 = vmatprep.mubr.f32.mxu1 %v6896_v62  ;;  %v1011_v61 = vld [vmem:[#allocation5 + $0x200] sm:$0xff]  ;;  %v1012_v62 = vld [vmem:[#allocation5 + $0x208] sm:$0xff] }
  0xde   : > { %5591 = vmatprep.subr.bf16.mxu0 %v5590_v41  ;;  %5879 = vmatprep.subr.bf16.mxu1 %v5590_v41 }
  0xdf   : > { %4627 = vmatmul.mubr.f32.gmra.mrb[8].mxu0 %v6901_v2  ;;  %5131 = vmatmul.mubr.f32.gmra.mrb[8].mxu1 %v6904_v3  ;;  %v3833_v2 = vld [vmem:[%s6804_s5 + $0x22f] sm:$0xff] }
  0xe0   : > { %5593 = vmatpush3.bf16.msra.mxu0 %v5590_v41  ;;  %5881 = vmatpush3.bf16.msra.mxu1 %v5590_v41  ;;  %v812_v3 = vld [vmem:[%s6804_s5 + $0x8] sm:$0xff] }
  0xe1   : > { %4629 = vmatprep.mubr.f32.mxu0 %v6909_v4  ;;  %5133 = vmatprep.mubr.f32.mxu1 %v6912_v5  ;;  %v7007_v4 = vld [vmem:[%s6804_s5 + $0x108] sm:$0xff]  ;;  %v5606_v5 = vpack.c.bf16 %v1012_v62, %v1011_v61 }
  0xe2   : > { %5595 = vmatprep.subr.bf16.mxu0 %v5594_v47  ;;  %5883 = vmatprep.subr.bf16.mxu1 %v5594_v47  ;;  %v7114_v41 = vld [vmem:[%s6804_s5 + $0x1e8] sm:$0xff] }
  0xe3   : > { %4630 = vmatmul.mubr.f32.gmra.mrb[10].mxu0 %v6917_v11  ;;  %5134 = vmatmul.mubr.f32.gmra.mrb[10].mxu1 %v6920_v12  ;;  %v1013_v11 = vld [vmem:[#allocation5 + $0x210] sm:$0xff]  ;;  %v1014_v12 = vld [vmem:[#allocation5 + $0x218] sm:$0xff]  ;;  %v1194_v61 = vld [vmem:[#allocation5 + $0x3a8] sm:$0xff] }
  0xe4   : > { %5597 = vmatpush3.bf16.msra.mxu0 %v5594_v47  ;;  %5885 = vmatpush3.bf16.msra.mxu1 %v5594_v47  ;;  %v5610_v17 = vpack.c.bf16 %v1014_v12, %v1013_v11  ;;  %v1190_v47 = vld [vmem:[#allocation5 + $0x388] sm:$0xff]  ;;  %v1197_v11 = vld [vmem:[#allocation5 + $0x3c0] sm:$0xff] }
  0xe5   : > { %4632 = vmatprep.mubr.f32.mxu0 %v6925_v13  ;;  %5136 = vmatprep.mubr.f32.mxu1 %v6928_v14  ;;  %v813_v13 = vld [vmem:[%s6804_s5 + $0x10] sm:$0xff]  ;;  %v7016_v14 = vld [vmem:[%s6804_s5 + $0x28] sm:$0xff] }
  0xe6   : > { %5599 = vmatprep.subr.bf16.mxu0 %v5598_v53  ;;  %5887 = vmatprep.subr.bf16.mxu1 %v5598_v53  ;;  %v1198_v12 = vld [vmem:[#allocation5 + $0x3c8] sm:$0xff] }
  0xe7   : > { %4633 = vmatmul.mubr.f32.gmra.mrb[12].mxu0 %v6933_v18  ;;  %5137 = vmatmul.mubr.f32.gmra.mrb[12].mxu1 %v6936_v19  ;;  %v1015_v18 = vld [vmem:[#allocation5 + $0x220] sm:$0xff]  ;;  %v1016_v19 = vld [vmem:[#allocation5 + $0x228] sm:$0xff] }
  0xe8   : > { %5601 = vmatpush3.bf16.msra.mxu0 %v5598_v53  ;;  %5889 = vmatpush3.bf16.msra.mxu1 %v5598_v53  ;;  %v5614_v24 = vpack.c.bf16 %v1016_v19, %v1015_v18  ;;  %v5638_v53 = vpack.c.bf16 %v1190_v47, %v1189_v46  ;;  %v1201_v19 = vld [vmem:[#allocation5 + $0x3e0] sm:$0xff]  ;;  %v7208_v46 = vld [vmem:[%s6804_s5 + $0x29] sm:$0xff] }
  0xe9   : > { %4635 = vmatprep.mubr.f32.mxu0 %v6818_v10  ;;  %5139 = vmatprep.mubr.f32.mxu1 %v3832_v59  ;;  %v7012_v10 = vld [vmem:[%s6804_s5 + $0x110] sm:$0xff]  ;;  %v5642_v59 = vpack.c.bf16 %v1192_v55, %v1191_v54 }
  0xea   : > { %5603 = vmatprep.subr.bf16.mxu0 %v5602_v60  ;;  %5891 = vmatprep.subr.bf16.mxu1 %v5602_v60  ;;  %v7218_v54 = vld [vmem:[%s6804_s5 + $0x131] sm:$0xff]  ;;  %v7223_v55 = vld [vmem:[%s6804_s5 + $0x49] sm:$0xff] }
  0xeb   : > { %4636 = vmatmul.mubr.f32.gmra.mrb[14].mxu0 %v6826_v32  ;;  %5140 = vmatmul.mubr.f32.gmra.mrb[14].mxu1 %v3833_v2  ;;  %v7019_v32 = vld [vmem:[%s6804_s5 + $0x128] sm:$0xff]  ;;  %v1195_v2 = vld [vmem:[#allocation5 + $0x3b0] sm:$0xff] }
  0xec   : > { %5605 = vmatpush3.bf16.msra.mxu0 %v5602_v60  ;;  %5893 = vmatpush3.bf16.msra.mxu1 %v5602_v60  ;;  %v1193_v60 = vld [vmem:[#allocation5 + $0x3a0] sm:$0xff] }
  0xed   : > { %4670 = vmatprep.mubr.f32.mxu0 %v812_v3  ;;  %5174 = vmatprep.mubr.f32.mxu1 %v7007_v4  ;;  %v5646_v62 = vpack.c.bf16 %v1194_v61, %v1193_v60  ;;  %v1196_v3 = vld [vmem:[#allocation5 + $0x3b8] sm:$0xff]  ;;  %v1571_v61 = vld [vmem:[#allocation5 + $0x2b0] sm:$0xff] }
  0xee   : > { %5607 = vmatprep.subr.bf16.mxu0 %v5606_v5  ;;  %5895 = vmatprep.subr.bf16.mxu1 %v5606_v5 }
  0xef   : > { %4671 = vmatmul.mubr.f32.vlgmr.msra.gmra.mrb[0].mxu0 %v813_v13  ;;  %5175 = vmatmul.mubr.f32.vlgmr.msra.gmra.mrb[0].mxu1 %v7012_v10  ;;  %v5654_v13 = vpack.c.bf16 %v1198_v12, %v1197_v11  ;;  %v7242_v11 = vld [vmem:[%s6804_s5 + $0x169] sm:$0xff] }
  0xf0   : > { %5609 = vmatpush3.bf16.msra.mxu0 %v5606_v5  ;;  %5897 = vmatpush3.bf16.msra.mxu1 %v5606_v5  ;;  %v5650_v5 = vpack.c.bf16 %v1196_v3, %v1195_v2  ;;  %v7231_v2 = vld [vmem:[%s6804_s5 + $0x51] sm:$0xff] }
  0xf1   : > { %4673 = vmatprep.mubr.f32.mxu0 %v7016_v14  ;;  %5177 = vmatprep.mubr.f32.mxu1 %v7019_v32  ;;  %v7234_v3 = vld [vmem:[%s6804_s5 + $0x151] sm:$0xff] }
  0xf2   : > { %5611 = vmatprep.subr.bf16.mxu0 %v5610_v17  ;;  %5899 = vmatprep.subr.bf16.mxu1 %v5610_v17 }
  0xf3   : > { %4674 = vmatmul.mubr.f32.gmra.mrb[2].mxu0 %v7023_v20  ;;  %5178 = vmatmul.mubr.f32.gmra.mrb[2].mxu1 %v7026_v21 }
  0xf4   : > { %5613 = vmatpush3.bf16.msra.mxu0 %v5610_v17  ;;  %5901 = vmatpush3.bf16.msra.mxu1 %v5610_v17  ;;  %v1200_v17 = vld [vmem:[#allocation5 + $0x3d8] sm:$0xff] }
  0xf5   : > { %4676 = vmatprep.mubr.f32.mxu0 %v7031_v22  ;;  %5180 = vmatprep.mubr.f32.mxu1 %v7034_v23 }
  0xf6   : > { %5615 = vmatprep.subr.bf16.mxu0 %v5614_v24  ;;  %5903 = vmatprep.subr.bf16.mxu1 %v5614_v24 }
  0xf7   : > { %4677 = vmatmul.mubr.f32.gmra.mrb[4].mxu0 %v7039_v27  ;;  %5181 = vmatmul.mubr.f32.gmra.mrb[4].mxu1 %v7042_v28 }
  0xf8   : > { %5617 = vmatpush3.bf16.msra.mxu0 %v5614_v24  ;;  %5905 = vmatpush3.bf16.msra.mxu1 %v5614_v24 }
  0xf9   : > { %4679 = vmatprep.mubr.f32.mxu0 %v7047_v29  ;;  %5183 = vmatprep.mubr.f32.mxu1 %v7050_v30 }
  0xfa   : > { %5619 = vmatprep.subr.bf16.mxu0 %v5618_v9  ;;  %5907 = vmatprep.subr.bf16.mxu1 %v5618_v9 }
  0xfb   : > { %4680 = vmatmul.mubr.f32.gmra.mrb[6].mxu0 %v7055_v31  ;;  %5184 = vmatmul.mubr.f32.gmra.mrb[6].mxu1 %v7058_v37 }
  0xfc   : > { %5621 = vmatpush3.bf16.msra.mxu0 %v5618_v9  ;;  %5909 = vmatpush3.bf16.msra.mxu1 %v5618_v9  ;;  %v7155_v9 = vld [vmem:[%s6804_s5 + $0x208] sm:$0xff] }
  0xfd   : > { %4682 = vmatprep.mubr.f32.mxu0 %v7063_v42  ;;  %5186 = vmatprep.mubr.f32.mxu1 %v7066_v43 }
  0xfe   : > { %5623 = vmatprep.subr.bf16.mxu0 %v5622_v44  ;;  %5911 = vmatprep.subr.bf16.mxu1 %v5622_v44 }
  0xff   : > { %4683 = vmatmul.mubr.f32.gmra.mrb[8].mxu0 %v7071_v51  ;;  %5187 = vmatmul.mubr.f32.gmra.mrb[8].mxu1 %v7074_v56 }
 0x100   : > { %5625 = vmatpush3.bf16.msra.mxu0 %v5622_v44  ;;  %5913 = vmatpush3.bf16.msra.mxu1 %v5622_v44  ;;  %v1388_v44 = vld [vmem:[#allocation5 + $0x108] sm:$0xff] }
 0x101   : > { %4685 = vmatprep.mubr.f32.mxu0 %v7079_v57  ;;  %5189 = vmatprep.mubr.f32.mxu1 %v7082_v58  ;;  %v5670_v50 = vpack.c.bf16 %v1388_v44, %v1387_v36  ;;  %v7271_v36 = vld [vmem:[%s6804_s5 + $0xa9] sm:$0xff] }
 0x102   : > { %5627 = vmatprep.subr.bf16.mxu0 %v5626_v63  ;;  %5915 = vmatprep.subr.bf16.mxu1 %v5626_v63  ;;  %v7274_v44 = vld [vmem:[%s6804_s5 + $0x1a9] sm:$0xff] }
 0x103   : > { %4686 = vmatmul.mubr.f32.gmra.mrb[10].mxu0 %v7087_v6  ;;  %5190 = vmatmul.mubr.f32.gmra.mrb[10].mxu1 %v7090_v7 }
 0x104   : > { %5629 = vmatpush3.bf16.msra.mxu0 %v5626_v63  ;;  %5917 = vmatpush3.bf16.msra.mxu1 %v5626_v63  ;;  %v1389_v63 = vld [vmem:[#allocation5 + $0x110] sm:$0xff] }
 0x105   : > { %4688 = vmatprep.mubr.f32.mxu0 %v7095_v8  ;;  %5192 = vmatprep.mubr.f32.mxu1 %v7098_v15  ;;  %v5674_v1 = vpack.c.bf16 %v1390_v0, %v1389_v63  ;;  %v1578_v63 = vld [vmem:[#allocation5 + $0x2e8] sm:$0xff]  ;;  %v7279_v0 = vld [vmem:[%s6804_s5 + $0xb1] sm:$0xff] }
 0x106   : > { %5631 = vmatprep.subr.bf16.mxu0 %v5630_v33  ;;  %5919 = vmatprep.subr.bf16.mxu1 %v5630_v33 }
 0x107   : > { %4689 = vmatmul.mubr.f32.gmra.mrb[12].mxu0 %v7103_v38  ;;  %5193 = vmatmul.mubr.f32.gmra.mrb[12].mxu1 %v7106_v39 }
 0x108   : > { %5633 = vmatpush3.bf16.msra.mxu0 %v5630_v33  ;;  %5921 = vmatpush3.bf16.msra.mxu1 %v5630_v33  ;;  %v1391_v33 = vld [vmem:[#allocation5 + $0x120] sm:$0xff] }
 0x109   : > { %4691 = vmatprep.mubr.f32.mxu0 %v7111_v40  ;;  %5195 = vmatprep.mubr.f32.mxu1 %v7114_v41 }
 0x10a   : > { %5635 = vmatprep.subr.bf16.mxu0 %v5634_v45  ;;  %5923 = vmatprep.subr.bf16.mxu1 %v5634_v45 }
 0x10b   : > { %4692 = vmatmul.mubr.f32.gmra.mrb[14].mxu0 %v7119_v48  ;;  %5196 = vmatmul.mubr.f32.gmra.mrb[14].mxu1 %v7122_v52 }
 0x10c   : > { %5637 = vmatpush3.bf16.msra.mxu0 %v5634_v45  ;;  %5925 = vmatpush3.bf16.msra.mxu1 %v5634_v45  ;;  %v1367_v45 = vld [vmem:[%s6804_s5 + $0x11] sm:$0xff] }
 0x10d   : > { %4726 = vmatprep.mubr.f32.mxu0 %v7016_v14  ;;  %5230 = vmatprep.mubr.f32.mxu1 %v7019_v32  ;;  %v1199_v14 = vld [vmem:[#allocation5 + $0x3d0] sm:$0xff] }
 0x10e   : > { %5639 = vmatprep.subr.bf16.mxu0 %v5638_v53  ;;  %5927 = vmatprep.subr.bf16.mxu1 %v5638_v53  ;;  %v5658_v18 = vpack.c.bf16 %v1200_v17, %v1199_v14  ;;  %v1574_v14 = vld [vmem:[#allocation5 + $0x2c8] sm:$0xff]  ;;  %v7247_v17 = vld [vmem:[%s6804_s5 + $0x71] sm:$0xff] }
 0x10f   : > { %4727 = vmatmul.mubr.f32.vlgmr.msra.gmra.mrb[0].mxu0 %v7023_v20  ;;  %5231 = vmatmul.mubr.f32.vlgmr.msra.gmra.mrb[0].mxu1 %v7026_v21  ;;  %v1202_v20 = vld [vmem:[#allocation5 + $0x3e8] sm:$0xff] }
 0x110   : > { %5641 = vmatpush3.bf16.msra.mxu0 %v5638_v53  ;;  %5929 = vmatpush3.bf16.msra.mxu1 %v5638_v53  ;;  %v5662_v24 = vpack.c.bf16 %v1202_v20, %v1201_v19  ;;  %v7215_v53 = vld [vmem:[%s6804_s5 + $0x31] sm:$0xff]  ;;  %v7255_v19 = vld [vmem:[%s6804_s5 + $0x89] sm:$0xff] }
 0x111   : > { %4729 = vmatprep.mubr.f32.mxu0 %v7031_v22  ;;  %5233 = vmatprep.mubr.f32.mxu1 %v7034_v23  ;;  %v7258_v20 = vld [vmem:[%s6804_s5 + $0x189] sm:$0xff] }
 0x112   : > { %5643 = vmatprep.subr.bf16.mxu0 %v5642_v59  ;;  %5931 = vmatprep.subr.bf16.mxu1 %v5642_v59 }
 0x113   : > { %4730 = vmatmul.mubr.f32.gmra.mrb[2].mxu0 %v7039_v27  ;;  %5234 = vmatmul.mubr.f32.gmra.mrb[2].mxu1 %v7042_v28 }
 0x114   : > { %5645 = vmatpush3.bf16.msra.mxu0 %v5642_v59  ;;  %5933 = vmatpush3.bf16.msra.mxu1 %v5642_v59  ;;  %v7226_v59 = vld [vmem:[%s6804_s5 + $0x149] sm:$0xff] }
 0x115   : > { %4732 = vmatprep.mubr.f32.mxu0 %v7047_v29  ;;  %5236 = vmatprep.mubr.f32.mxu1 %v7050_v30 }
 0x116   : > { %5647 = vmatprep.subr.bf16.mxu0 %v5646_v62  ;;  %5935 = vmatprep.subr.bf16.mxu1 %v5646_v62 }
 0x117   : > { %4733 = vmatmul.mubr.f32.gmra.mrb[4].mxu0 %v7055_v31  ;;  %5237 = vmatmul.mubr.f32.gmra.mrb[4].mxu1 %v7058_v37 }
 0x118   : > { %5649 = vmatpush3.bf16.msra.mxu0 %v5646_v62  ;;  %5937 = vmatpush3.bf16.msra.mxu1 %v5646_v62  ;;  %v1572_v62 = vld [vmem:[#allocation5 + $0x2b8] sm:$0xff] }
 0x119   : > { %4735 = vmatprep.mubr.f32.mxu0 %v7063_v42  ;;  %5239 = vmatprep.mubr.f32.mxu1 %v7066_v43  ;;  %v5714_v12 = vpack.c.bf16 %v1572_v62, %v1571_v61  ;;  %v1757_v61 = vld [vmem:[#allocation5 + $0x470] sm:$0xff]  ;;  %v1758_v62 = vld [vmem:[#allocation5 + $0x478] sm:$0xff] }
 0x11a   : > { %5651 = vmatprep.subr.bf16.mxu0 %v5650_v5  ;;  %5939 = vmatprep.subr.bf16.mxu1 %v5650_v5 }
 0x11b   : > { %4736 = vmatmul.mubr.f32.gmra.mrb[6].mxu0 %v7071_v51  ;;  %5240 = vmatmul.mubr.f32.gmra.mrb[6].mxu1 %v7074_v56 }
 0x11c   : > { %5653 = vmatpush3.bf16.msra.mxu0 %v5650_v5  ;;  %5941 = vmatpush3.bf16.msra.mxu1 %v5650_v5  ;;  %v7239_v5 = vld [vmem:[%s6804_s5 + $0x69] sm:$0xff] }
 0x11d   : > { %4738 = vmatprep.mubr.f32.mxu0 %v7079_v57  ;;  %5242 = vmatprep.mubr.f32.mxu1 %v7082_v58 }
 0x11e   : > { %5655 = vmatprep.subr.bf16.mxu0 %v5654_v13  ;;  %5943 = vmatprep.subr.bf16.mxu1 %v5654_v13 }
 0x11f   : > { %4739 = vmatmul.mubr.f32.gmra.mrb[8].mxu0 %v7087_v6  ;;  %5243 = vmatmul.mubr.f32.gmra.mrb[8].mxu1 %v7090_v7 }
 0x120   : > { %5657 = vmatpush3.bf16.msra.mxu0 %v5654_v13  ;;  %5945 = vmatpush3.bf16.msra.mxu1 %v5654_v13  ;;  %v1573_v13 = vld [vmem:[#allocation5 + $0x2c0] sm:$0xff] }
 0x121   : > { %4741 = vmatprep.mubr.f32.mxu0 %v7095_v8  ;;  %5245 = vmatprep.mubr.f32.mxu1 %v7098_v15 }
 0x122   : > { %5659 = vmatprep.subr.bf16.mxu0 %v5658_v18  ;;  %5947 = vmatprep.subr.bf16.mxu1 %v5658_v18 }
 0x123   : > { %4742 = vmatmul.mubr.f32.gmra.mrb[10].mxu0 %v7103_v38  ;;  %5246 = vmatmul.mubr.f32.gmra.mrb[10].mxu1 %v7106_v39 }
 0x124   : > { %5661 = vmatpush3.bf16.msra.mxu0 %v5658_v18  ;;  %5949 = vmatpush3.bf16.msra.mxu1 %v5658_v18  ;;  %v7250_v18 = vld [vmem:[%s6804_s5 + $0x171] sm:$0xff] }
 0x125   : > { %4744 = vmatprep.mubr.f32.mxu0 %v7111_v40  ;;  %5248 = vmatprep.mubr.f32.mxu1 %v7114_v41 }
 0x126   : > { %5663 = vmatprep.subr.bf16.mxu0 %v5662_v24  ;;  %5951 = vmatprep.subr.bf16.mxu1 %v5662_v24 }
 0x127   : > { %4745 = vmatmul.mubr.f32.gmra.mrb[12].mxu0 %v7119_v48  ;;  %5249 = vmatmul.mubr.f32.gmra.mrb[12].mxu1 %v7122_v52 }
 0x128   : > { %5665 = vmatpush3.bf16.msra.mxu0 %v5662_v24  ;;  %5953 = vmatpush3.bf16.msra.mxu1 %v5662_v24  ;;  %v5718_v24 = vpack.c.bf16 %v1574_v14, %v1573_v13  ;;  %v5762_v13 = vpack.c.bf16 %v1758_v62, %v1757_v61  ;;  %v3871_v14 = vld [vmem:[%s6804_s5 + $0x211] sm:$0xff] }
 0x129   : > { %4747 = vmatprep.mubr.f32.mxu0 %v7007_v4  ;;  %5251 = vmatprep.mubr.f32.mxu1 %v7155_v9 }
 0x12a   : > { %5667 = vmatprep.subr.bf16.mxu0 %v5666_v35  ;;  %5955 = vmatprep.subr.bf16.mxu1 %v5666_v35 }
 0x12b   : > { %4748 = vmatmul.mubr.f32.gmra.mrb[14].mxu0 %v7012_v10  ;;  %5252 = vmatmul.mubr.f32.gmra.mrb[14].mxu1 %v7160_v49 }
 0x12c   : > { %5669 = vmatpush3.bf16.msra.mxu0 %v5666_v35  ;;  %5957 = vmatpush3.bf16.msra.mxu1 %v5666_v35  ;;  %v7266_v35 = vld [vmem:[%s6804_s5 + $0x191] sm:$0xff] }
 0x12d   : > { %4782 = vmatprep.mubr.f32.mxu0 %v7031_v22  ;;  %5286 = vmatprep.mubr.f32.mxu1 %v7034_v23  ;;  %v5678_v22 = vpack.c.bf16 %v1392_v34, %v1391_v33  ;;  %v1393_v23 = vld [vmem:[#allocation5 + $0x130] sm:$0xff] }
 0x12e   : > { %5671 = vmatprep.subr.bf16.mxu0 %v5670_v50  ;;  %5959 = vmatprep.subr.bf16.mxu1 %v5670_v50  ;;  %v7287_v33 = vld [vmem:[%s6804_s5 + $0xc9] sm:$0xff] }
 0x12f   : > { %4783 = vmatmul.mubr.f32.vlgmr.msra.gmra.mrb[0].mxu0 %v7039_v27  ;;  %5287 = vmatmul.mubr.f32.vlgmr.msra.gmra.mrb[0].mxu1 %v7042_v28  ;;  %v5682_v27 = vpack.c.bf16 %v1394_v16, %v1393_v23  ;;  %v1395_v28 = vld [vmem:[#allocation5 + $0x140] sm:$0xff]  ;;  %v7290_v34 = vld [vmem:[%s6804_s5 + $0x1c9] sm:$0xff]  ;;  %v1580_v16 = vld [vmem:[#allocation5 + $0x2f8] sm:$0xff] }
 0x130   : > { %5673 = vmatpush3.bf16.msra.mxu0 %v5670_v50  ;;  %5961 = vmatpush3.bf16.msra.mxu1 %v5670_v50  ;;  %v1577_v50 = vld [vmem:[#allocation5 + $0x2e0] sm:$0xff]  ;;  %v1579_v23 = vld [vmem:[#allocation5 + $0x2f0] sm:$0xff] }
 0x131   : > { %4785 = vmatprep.mubr.f32.mxu0 %v7047_v29  ;;  %5289 = vmatprep.mubr.f32.mxu1 %v7050_v30  ;;  %v1396_v29 = vld [vmem:[#allocation5 + $0x148] sm:$0xff] }
 0x132   : > { %5675 = vmatprep.subr.bf16.mxu0 %v5674_v1  ;;  %5963 = vmatprep.subr.bf16.mxu1 %v5674_v1  ;;  %v5686_v30 = vpack.c.bf16 %v1396_v29, %v1395_v28  ;;  %v7298_v28 = vld [vmem:[%s6804_s5 + $0x1d1] sm:$0xff]  ;;  %v7303_v29 = vld [vmem:[%s6804_s5 + $0xe9] sm:$0xff] }
 0x133   : > { %4786 = vmatmul.mubr.f32.gmra.mrb[2].mxu0 %v7055_v31  ;;  %5290 = vmatmul.mubr.f32.gmra.mrb[2].mxu1 %v7058_v37  ;;  %v1397_v31 = vld [vmem:[#allocation5 + $0x150] sm:$0xff]  ;;  %v1398_v37 = vld [vmem:[#allocation5 + $0x158] sm:$0xff] }
 0x134   : > { %5677 = vmatpush3.bf16.msra.mxu0 %v5674_v1  ;;  %5965 = vmatpush3.bf16.msra.mxu1 %v5674_v1  ;;  %v7282_v1 = vld [vmem:[%s6804_s5 + $0x1b1] sm:$0xff] }
 0x135   : > { %4788 = vmatprep.mubr.f32.mxu0 %v7063_v42  ;;  %5292 = vmatprep.mubr.f32.mxu1 %v7066_v43  ;;  %v5690_v42 = vpack.c.bf16 %v1398_v37, %v1397_v31  ;;  %v1399_v43 = vld [vmem:[#allocation5 + $0x160] sm:$0xff]  ;;  %v5730_v31 = vpack.c.bf16 %v1580_v16, %v1579_v23 }
 0x136   : > { %5679 = vmatprep.subr.bf16.mxu0 %v5678_v22  ;;  %5967 = vmatprep.subr.bf16.mxu1 %v5678_v22  ;;  %v1743_v37 = vld [vmem:[#allocation5 + $0x400] sm:$0xff] }
 0x137   : > { %4789 = vmatmul.mubr.f32.gmra.mrb[4].mxu0 %v7071_v51  ;;  %5293 = vmatmul.mubr.f32.gmra.mrb[4].mxu1 %v7074_v56  ;;  %v1400_v51 = vld [vmem:[#allocation5 + $0x168] sm:$0xff] }
 0x138   : > { %5681 = vmatpush3.bf16.msra.mxu0 %v5678_v22  ;;  %5969 = vmatpush3.bf16.msra.mxu1 %v5678_v22  ;;  %v5694_v56 = vpack.c.bf16 %v1400_v51, %v1399_v43  ;;  %v5726_v22 = vpack.c.bf16 %v1578_v63, %v1577_v50  ;;  %v7311_v43 = vld [vmem:[%s6804_s5 + $0xf1] sm:$0xff] }
 0x139   : > { %4791 = vmatprep.mubr.f32.mxu0 %v7079_v57  ;;  %5295 = vmatprep.mubr.f32.mxu1 %v7082_v58  ;;  %v1401_v57 = vld [vmem:[#allocation5 + $0x170] sm:$0xff]  ;;  %v1402_v58 = vld [vmem:[#allocation5 + $0x178] sm:$0xff] }
 0x13a   : > { %5683 = vmatprep.subr.bf16.mxu0 %v5682_v27  ;;  %5971 = vmatprep.subr.bf16.mxu1 %v5682_v27  ;;  %v7314_v51 = vld [vmem:[%s6804_s5 + $0x1f1] sm:$0xff] }
 0x13b   : > { %4792 = vmatmul.mubr.f32.gmra.mrb[6].mxu0 %v7087_v6  ;;  %5296 = vmatmul.mubr.f32.gmra.mrb[6].mxu1 %v7090_v7  ;;  %v3852_v6 = vld [vmem:[%s6804_s5 + $0x228] sm:$0xff]  ;;  %v5698_v7 = vpack.c.bf16 %v1402_v58, %v1401_v57  ;;  %v1745_v57 = vld [vmem:[#allocation5 + $0x410] sm:$0xff]  ;;  %v1746_v58 = vld [vmem:[#allocation5 + $0x418] sm:$0xff] }
 0x13c   : > { %5685 = vmatpush3.bf16.msra.mxu0 %v5682_v27  ;;  %5973 = vmatpush3.bf16.msra.mxu1 %v5682_v27  ;;  %v7295_v27 = vld [vmem:[%s6804_s5 + $0xd1] sm:$0xff] }
 0x13d   : > { %4794 = vmatprep.mubr.f32.mxu0 %v7095_v8  ;;  %5298 = vmatprep.mubr.f32.mxu1 %v7098_v15  ;;  %v1565_v8 = vld [vmem:[#allocation5 + $0x280] sm:$0xff]  ;;  %v1566_v15 = vld [vmem:[#allocation5 + $0x288] sm:$0xff] }
 0x13e   : > { %5687 = vmatprep.subr.bf16.mxu0 %v5686_v30  ;;  %5975 = vmatprep.subr.bf16.mxu1 %v5686_v30 }
 0x13f   : > { %4795 = vmatmul.mubr.f32.gmra.mrb[8].mxu0 %v7103_v38  ;;  %5299 = vmatmul.mubr.f32.gmra.mrb[8].mxu1 %v7106_v39  ;;  %v3853_v38 = vld [vmem:[%s6804_s5 + $0x230] sm:$0xff] }
 0x140   : > { %5689 = vmatpush3.bf16.msra.mxu0 %v5686_v30  ;;  %5977 = vmatpush3.bf16.msra.mxu1 %v5686_v30  ;;  %v7199_v39 = vld [vmem:[%s6804_s5 + $0x109] sm:$0xff] }
 0x141   : > { %4797 = vmatprep.mubr.f32.mxu0 %v7111_v40  ;;  %5301 = vmatprep.mubr.f32.mxu1 %v7114_v41  ;;  %v1567_v40 = vld [vmem:[#allocation5 + $0x290] sm:$0xff]  ;;  %v1568_v41 = vld [vmem:[#allocation5 + $0x298] sm:$0xff] }
 0x142   : > { %5691 = vmatprep.subr.bf16.mxu0 %v5690_v42  ;;  %5979 = vmatprep.subr.bf16.mxu1 %v5690_v42  ;;  %v5706_v47 = vpack.c.bf16 %v1568_v41, %v1567_v40  ;;  %v7306_v30 = vld [vmem:[%s6804_s5 + $0x1e9] sm:$0xff]  ;;  %v1751_v40 = vld [vmem:[#allocation5 + $0x440] sm:$0xff] }
 0x143   : > { %4798 = vmatmul.mubr.f32.gmra.mrb[10].mxu0 %v7119_v48  ;;  %5302 = vmatmul.mubr.f32.gmra.mrb[10].mxu1 %v7122_v52  ;;  %v1569_v48 = vld [vmem:[#allocation5 + $0x2a0] sm:$0xff]  ;;  %v1570_v52 = vld [vmem:[#allocation5 + $0x2a8] sm:$0xff] }
 0x144   : > { %5693 = vmatpush3.bf16.msra.mxu0 %v5690_v42  ;;  %5981 = vmatpush3.bf16.msra.mxu1 %v5690_v42  ;;  %v5710_v60 = vpack.c.bf16 %v1570_v52, %v1569_v48  ;;  %v1744_v42 = vld [vmem:[#allocation5 + $0x408] sm:$0xff]  ;;  %v1755_v52 = vld [vmem:[#allocation5 + $0x460] sm:$0xff] }
 0x145   : > { %4800 = vmatprep.mubr.f32.mxu0 %v7007_v4  ;;  %5304 = vmatprep.mubr.f32.mxu1 %v7155_v9  ;;  %v1366_v4 = vld [vmem:[%s6804_s5 + $0x9] sm:$0xff]  ;;  %v7263_v9 = vld [vmem:[%s6804_s5 + $0x91] sm:$0xff] }
 0x146   : > { %5695 = vmatprep.subr.bf16.mxu0 %v5694_v56  ;;  %5983 = vmatprep.subr.bf16.mxu1 %v5694_v56  ;;  %v1752_v41 = vld [vmem:[#allocation5 + $0x448] sm:$0xff] }
 0x147   : > { %4801 = vmatmul.mubr.f32.gmra.mrb[12].mxu0 %v7012_v10  ;;  %5305 = vmatmul.mubr.f32.gmra.mrb[12].mxu1 %v7160_v49  ;;  %v5702_v10 = vpack.c.bf16 %v1566_v15, %v1565_v8  ;;  %v5722_v49 = vpack.c.bf16 %v1576_v26, %v1575_v25  ;;  %v1748_v8 = vld [vmem:[#allocation5 + $0x428] sm:$0xff] }
 0x148   : > { %5697 = vmatpush3.bf16.msra.mxu0 %v5694_v56  ;;  %5985 = vmatpush3.bf16.msra.mxu1 %v5694_v56  ;;  %v5734_v56 = vpack.c.bf16 %v1744_v42, %v1743_v37 }
 0x149   : > { %4803 = vmatprep.mubr.f32.mxu0 %v7019_v32  ;;  %5307 = vmatprep.mubr.f32.mxu1 %v3852_v6  ;;  %v7204_v32 = vld [vmem:[%s6804_s5 + $0x111] sm:$0xff]  ;;  %v5738_v6 = vpack.c.bf16 %v1746_v58, %v1745_v57 }
 0x14a   : > { %5699 = vmatprep.subr.bf16.mxu0 %v5698_v7  ;;  %5987 = vmatprep.subr.bf16.mxu1 %v5698_v7 }
 0x14b   : > { %4804 = vmatmul.mubr.f32.gmra.mrb[14].mxu0 %v7026_v21  ;;  %5308 = vmatmul.mubr.f32.gmra.mrb[14].mxu1 %v3853_v38  ;;  %v7211_v21 = vld [vmem:[%s6804_s5 + $0x129] sm:$0xff] }
 0x14c   : > { %5701 = vmatpush3.bf16.msra.mxu0 %v5698_v7  ;;  %5989 = vmatpush3.bf16.msra.mxu1 %v5698_v7  ;;  %v1747_v7 = vld [vmem:[#allocation5 + $0x420] sm:$0xff]  ;;  %v1749_v38 = vld [vmem:[#allocation5 + $0x430] sm:$0xff] }
 0x14d   : > { %4838 = vmatprep.mubr.f32.mxu0 %v1366_v4  ;;  %5342 = vmatprep.mubr.f32.mxu1 %v7199_v39  ;;  %v5742_v15 = vpack.c.bf16 %v1748_v8, %v1747_v7  ;;  %v1750_v4 = vld [vmem:[#allocation5 + $0x438] sm:$0xff] }
 0x14e   : > { %5703 = vmatprep.subr.bf16.mxu0 %v5702_v10  ;;  %5991 = vmatprep.subr.bf16.mxu1 %v5702_v10 }
 0x14f   : > { %4839 = vmatmul.mubr.f32.vlgmr.msra.gmra.mrb[0].mxu0 %v1367_v45  ;;  %5343 = vmatmul.mubr.f32.vlgmr.msra.gmra.mrb[0].mxu1 %v7204_v32  ;;  %v5750_v45 = vpack.c.bf16 %v1752_v41, %v1751_v40 }
 0x150   : > { %5705 = vmatpush3.bf16.msra.mxu0 %v5702_v10  ;;  %5993 = vmatpush3.bf16.msra.mxu1 %v5702_v10  ;;  %v5746_v10 = vpack.c.bf16 %v1750_v4, %v1749_v38 }
 0x151   : > { %4841 = vmatprep.mubr.f32.mxu0 %v7208_v46  ;;  %5345 = vmatprep.mubr.f32.mxu1 %v7211_v21 }
 0x152   : > { %5707 = vmatprep.subr.bf16.mxu0 %v5706_v47  ;;  %5995 = vmatprep.subr.bf16.mxu1 %v5706_v47 }
 0x153   : > { %4842 = vmatmul.mubr.f32.gmra.mrb[2].mxu0 %v7215_v53  ;;  %5346 = vmatmul.mubr.f32.gmra.mrb[2].mxu1 %v7218_v54 }
 0x154   : > { %5709 = vmatpush3.bf16.msra.mxu0 %v5706_v47  ;;  %5997 = vmatpush3.bf16.msra.mxu1 %v5706_v47  ;;  %v1754_v47 = vld [vmem:[#allocation5 + $0x458] sm:$0xff] }
 0x155   : > { %4844 = vmatprep.mubr.f32.mxu0 %v7223_v55  ;;  %5348 = vmatprep.mubr.f32.mxu1 %v7226_v59 }
 0x156   : > { %5711 = vmatprep.subr.bf16.mxu0 %v5710_v60  ;;  %5999 = vmatprep.subr.bf16.mxu1 %v5710_v60 }
 0x157   : > { %4845 = vmatmul.mubr.f32.gmra.mrb[4].mxu0 %v7231_v2  ;;  %5349 = vmatmul.mubr.f32.gmra.mrb[4].mxu1 %v7234_v3 }
 0x158   : > { %5713 = vmatpush3.bf16.msra.mxu0 %v5710_v60  ;;  %6001 = vmatpush3.bf16.msra.mxu1 %v5710_v60 }
 0x159   : > { %4847 = vmatprep.mubr.f32.mxu0 %v7239_v5  ;;  %5351 = vmatprep.mubr.f32.mxu1 %v7242_v11 }
 0x15a   : > { %5715 = vmatprep.subr.bf16.mxu0 %v5714_v12  ;;  %6003 = vmatprep.subr.bf16.mxu1 %v5714_v12 }
 0x15b   : > { %4848 = vmatmul.mubr.f32.gmra.mrb[6].mxu0 %v7247_v17  ;;  %5352 = vmatmul.mubr.f32.gmra.mrb[6].mxu1 %v7250_v18 }
 0x15c   : > { %5717 = vmatpush3.bf16.msra.mxu0 %v5714_v12  ;;  %6005 = vmatpush3.bf16.msra.mxu1 %v5714_v12  ;;  %v3870_v12 = vld [vmem:[%s6804_s5 + $0x209] sm:$0xff] }
 0x15d   : > { %4850 = vmatprep.mubr.f32.mxu0 %v7255_v19  ;;  %5354 = vmatprep.mubr.f32.mxu1 %v7258_v20 }
 0x15e   : > { %5719 = vmatprep.subr.bf16.mxu0 %v5718_v24  ;;  %6007 = vmatprep.subr.bf16.mxu1 %v5718_v24 }
 0x15f   : > { %4851 = vmatmul.mubr.f32.gmra.mrb[8].mxu0 %v7263_v9  ;;  %5355 = vmatmul.mubr.f32.gmra.mrb[8].mxu1 %v7266_v35 }
 0x160   : > { %5721 = vmatpush3.bf16.msra.mxu0 %v5718_v24  ;;  %6009 = vmatpush3.bf16.msra.mxu1 %v5718_v24 }
 0x161   : > { %4853 = vmatprep.mubr.f32.mxu0 %v7271_v36  ;;  %5357 = vmatprep.mubr.f32.mxu1 %v7274_v44 }
 0x162   : > { %5723 = vmatprep.subr.bf16.mxu0 %v5722_v49  ;;  %6011 = vmatprep.subr.bf16.mxu1 %v5722_v49 }
 0x163   : > { %4854 = vmatmul.mubr.f32.gmra.mrb[10].mxu0 %v7279_v0  ;;  %5358 = vmatmul.mubr.f32.gmra.mrb[10].mxu1 %v7282_v1 }
 0x164   : > { %5725 = vmatpush3.bf16.msra.mxu0 %v5722_v49  ;;  %6013 = vmatpush3.bf16.msra.mxu1 %v5722_v49 }
 0x165   : > { %4856 = vmatprep.mubr.f32.mxu0 %v7287_v33  ;;  %5360 = vmatprep.mubr.f32.mxu1 %v7290_v34 }
 0x166   : > { %5727 = vmatprep.subr.bf16.mxu0 %v5726_v22  ;;  %6015 = vmatprep.subr.bf16.mxu1 %v5726_v22 }
 0x167   : > { %4857 = vmatmul.mubr.f32.gmra.mrb[12].mxu0 %v7295_v27  ;;  %5361 = vmatmul.mubr.f32.gmra.mrb[12].mxu1 %v7298_v28 }
 0x168   : > { %5729 = vmatpush3.bf16.msra.mxu0 %v5726_v22  ;;  %6017 = vmatpush3.bf16.msra.mxu1 %v5726_v22 }
 0x169   : > { %4859 = vmatprep.mubr.f32.mxu0 %v7303_v29  ;;  %5363 = vmatprep.mubr.f32.mxu1 %v7306_v30 }
 0x16a   : > { %5731 = vmatprep.subr.bf16.mxu0 %v5730_v31  ;;  %6019 = vmatprep.subr.bf16.mxu1 %v5730_v31 }
 0x16b   : > { %4860 = vmatmul.mubr.f32.gmra.mrb[14].mxu0 %v7311_v43  ;;  %5364 = vmatmul.mubr.f32.gmra.mrb[14].mxu1 %v7314_v51 }
 0x16c   : > { %5733 = vmatpush3.bf16.msra.mxu0 %v5730_v31  ;;  %6021 = vmatpush3.bf16.msra.mxu1 %v5730_v31 }
 0x16d   : > { %4894 = vmatprep.mubr.f32.mxu0 %v7208_v46  ;;  %5398 = vmatprep.mubr.f32.mxu1 %v7211_v21  ;;  %v1753_v46 = vld [vmem:[#allocation5 + $0x450] sm:$0xff] }
 0x16e   : > { %5735 = vmatprep.subr.bf16.mxu0 %v5734_v56  ;;  %6023 = vmatprep.subr.bf16.mxu1 %v5734_v56  ;;  %v5754_v48 = vpack.c.bf16 %v1754_v47, %v1753_v46 }
 0x16f   : > { %4895 = vmatmul.mubr.f32.vlgmr.msra.gmra.mrb[0].mxu0 %v7215_v53  ;;  %5399 = vmatmul.mubr.f32.vlgmr.msra.gmra.mrb[0].mxu1 %v7218_v54  ;;  %v1756_v53 = vld [vmem:[#allocation5 + $0x468] sm:$0xff] }
 0x170   : > { %5737 = vmatpush3.bf16.msra.mxu0 %v5734_v56  ;;  %6025 = vmatpush3.bf16.msra.mxu1 %v5734_v56  ;;  %v5758_v60 = vpack.c.bf16 %v1756_v53, %v1755_v52 }
 0x171   : > { %4897 = vmatprep.mubr.f32.mxu0 %v7223_v55  ;;  %5401 = vmatprep.mubr.f32.mxu1 %v7226_v59 }
 0x172   : > { %5739 = vmatprep.subr.bf16.mxu0 %v5738_v6  ;;  %6027 = vmatprep.subr.bf16.mxu1 %v5738_v6 }
 0x173   : > { %4898 = vmatmul.mubr.f32.gmra.mrb[2].mxu0 %v7231_v2  ;;  %5402 = vmatmul.mubr.f32.gmra.mrb[2].mxu1 %v7234_v3 }
 0x174   : > { %5741 = vmatpush3.bf16.msra.mxu0 %v5738_v6  ;;  %6029 = vmatpush3.bf16.msra.mxu1 %v5738_v6 }
 0x175   : > { %4900 = vmatprep.mubr.f32.mxu0 %v7239_v5  ;;  %5404 = vmatprep.mubr.f32.mxu1 %v7242_v11 }
 0x176   : > { %5743 = vmatprep.subr.bf16.mxu0 %v5742_v15  ;;  %6031 = vmatprep.subr.bf16.mxu1 %v5742_v15 }
 0x177   : > { %4901 = vmatmul.mubr.f32.gmra.mrb[4].mxu0 %v7247_v17  ;;  %5405 = vmatmul.mubr.f32.gmra.mrb[4].mxu1 %v7250_v18 }
 0x178   : > { %5745 = vmatpush3.bf16.msra.mxu0 %v5742_v15  ;;  %6033 = vmatpush3.bf16.msra.mxu1 %v5742_v15 }
 0x179   : > { %4903 = vmatprep.mubr.f32.mxu0 %v7255_v19  ;;  %5407 = vmatprep.mubr.f32.mxu1 %v7258_v20 }
 0x17a   : > { %5747 = vmatprep.subr.bf16.mxu0 %v5746_v10  ;;  %6035 = vmatprep.subr.bf16.mxu1 %v5746_v10 }
 0x17b   : > { %4904 = vmatmul.mubr.f32.gmra.mrb[6].mxu0 %v7263_v9  ;;  %5408 = vmatmul.mubr.f32.gmra.mrb[6].mxu1 %v7266_v35 }
 0x17c   : > { %5749 = vmatpush3.bf16.msra.mxu0 %v5746_v10  ;;  %6037 = vmatpush3.bf16.msra.mxu1 %v5746_v10 }
 0x17d   : > { %4906 = vmatprep.mubr.f32.mxu0 %v7271_v36  ;;  %5410 = vmatprep.mubr.f32.mxu1 %v7274_v44 }
 0x17e   : > { %5751 = vmatprep.subr.bf16.mxu0 %v5750_v45  ;;  %6039 = vmatprep.subr.bf16.mxu1 %v5750_v45 }
 0x17f   : > { %4907 = vmatmul.mubr.f32.gmra.mrb[8].mxu0 %v7279_v0  ;;  %5411 = vmatmul.mubr.f32.gmra.mrb[8].mxu1 %v7282_v1 }
 0x180   : > { %5753 = vmatpush3.bf16.msra.mxu0 %v5750_v45  ;;  %6041 = vmatpush3.bf16.msra.mxu1 %v5750_v45 }
 0x181   : > { %4909 = vmatprep.mubr.f32.mxu0 %v7287_v33  ;;  %5413 = vmatprep.mubr.f32.mxu1 %v7290_v34 }
 0x182   : > { %5755 = vmatprep.subr.bf16.mxu0 %v5754_v48  ;;  %6043 = vmatprep.subr.bf16.mxu1 %v5754_v48 }
 0x183   : > { %4910 = vmatmul.mubr.f32.gmra.mrb[10].mxu0 %v7295_v27  ;;  %5414 = vmatmul.mubr.f32.gmra.mrb[10].mxu1 %v7298_v28 }
 0x184   : > { %5757 = vmatpush3.bf16.msra.mxu0 %v5754_v48  ;;  %6045 = vmatpush3.bf16.msra.mxu1 %v5754_v48 }
 0x185   : > { %4912 = vmatprep.mubr.f32.mxu0 %v7303_v29  ;;  %5416 = vmatprep.mubr.f32.mxu1 %v7306_v30 }
 0x186   : > { %5759 = vmatprep.subr.bf16.mxu0 %v5758_v60  ;;  %6047 = vmatprep.subr.bf16.mxu1 %v5758_v60 }
 0x187   : > { %4913 = vmatmul.mubr.f32.gmra.mrb[12].mxu0 %v7311_v43  ;;  %5417 = vmatmul.mubr.f32.gmra.mrb[12].mxu1 %v7314_v51 }
 0x188   : > { %5761 = vmatpush3.bf16.msra.mxu0 %v5758_v60  ;;  %6049 = vmatpush3.bf16.msra.mxu1 %v5758_v60 }
 0x189   : > { %4915 = vmatprep.mubr.f32.mxu0 %v7199_v39  ;;  %5419 = vmatprep.mubr.f32.mxu1 %v3870_v12 }
 0x18a   : > { %5763 = vmatprep.subr.bf16.mxu0 %v5762_v13  ;;  %6051 = vmatprep.subr.bf16.mxu1 %v5762_v13 }
 0x18b   : > { %4916 = vmatmul.mubr.f32.gmra.mrb[14].mxu0 %v7204_v32  ;;  %5420 = vmatmul.mubr.f32.gmra.mrb[14].mxu1 %v3871_v14 }
 0x18c   : > { %5765 = vmatpush3.bf16.msra.mxu0 %v5762_v13  ;;  %6053 = vmatpush3.bf16.msra.mxu1 %v5762_v13 }
 0x18d   : > { %4950 = vmatprep.mubr.f32.mxu0 %v7223_v55  ;;  %5454 = vmatprep.mubr.f32.mxu1 %v7226_v59  ;;  %v3872_v55 = vld [vmem:[%s6804_s5 + $0x229] sm:$0xff]  ;;  %v3873_v59 = vld [vmem:[%s6804_s5 + $0x231] sm:$0xff] }
 0x18f   : > { %4951 = vmatmul.mubr.f32.vlgmr.msra.gmra.mrb[0].mxu0 %v7231_v2  ;;  %5455 = vmatmul.mubr.f32.vlgmr.msra.gmra.mrb[0].mxu1 %v7234_v3 }
 0x190   : > { %4953 = vmatprep.mubr.f32.mxu0 %v7239_v5  ;;  %5457 = vmatprep.mubr.f32.mxu1 %v7242_v11 }
 0x193   : > { %4954 = vmatmul.mubr.f32.gmra.mrb[2].mxu0 %v7247_v17  ;;  %5458 = vmatmul.mubr.f32.gmra.mrb[2].mxu1 %v7250_v18 }
 0x194   : > { %4956 = vmatprep.mubr.f32.mxu0 %v7255_v19  ;;  %5460 = vmatprep.mubr.f32.mxu1 %v7258_v20 }
 0x197   : > { %4957 = vmatmul.mubr.f32.gmra.mrb[4].mxu0 %v7263_v9  ;;  %5461 = vmatmul.mubr.f32.gmra.mrb[4].mxu1 %v7266_v35 }
 0x198   : > { %4959 = vmatprep.mubr.f32.mxu0 %v7271_v36  ;;  %5463 = vmatprep.mubr.f32.mxu1 %v7274_v44 }
 0x19b   : > { %4960 = vmatmul.mubr.f32.gmra.mrb[6].mxu0 %v7279_v0  ;;  %5464 = vmatmul.mubr.f32.gmra.mrb[6].mxu1 %v7282_v1 }
 0x19c   : > { %4962 = vmatprep.mubr.f32.mxu0 %v7287_v33  ;;  %5466 = vmatprep.mubr.f32.mxu1 %v7290_v34 }
 0x19f   : > { %4963 = vmatmul.mubr.f32.gmra.mrb[8].mxu0 %v7295_v27  ;;  %5467 = vmatmul.mubr.f32.gmra.mrb[8].mxu1 %v7298_v28 }
 0x1a0   : > { %4965 = vmatprep.mubr.f32.mxu0 %v7303_v29  ;;  %5469 = vmatprep.mubr.f32.mxu1 %v7306_v30 }
 0x1a3   : > { %4966 = vmatmul.mubr.f32.gmra.mrb[10].mxu0 %v7311_v43  ;;  %5470 = vmatmul.mubr.f32.gmra.mrb[10].mxu1 %v7314_v51 }
 0x1a4   : > { %4968 = vmatprep.mubr.f32.mxu0 %v7199_v39  ;;  %5472 = vmatprep.mubr.f32.mxu1 %v3870_v12  ;;  %v6581_v39 = vmov 0.0  }
 0x1a5   : > { %245 = vst [vmem:[%s7384_s20 + $0x8] sm:$0xff] %v6581_v39  ;;  %246 = vst [vmem:[%s7384_s20 + $0x10] sm:$0xff] %v6581_v39 }
 0x1a6   : > { %3794 = vst [vmem:[%s7384_s20 + $0x228] sm:$0xff] %v6581_v39  ;;  %3795 = vst [vmem:[%s7384_s20 + $0x230] sm:$0xff] %v6581_v39 }
 0x1a7   : > { %4969 = vmatmul.mubr.f32.gmra.mrb[12].mxu0 %v7204_v32  ;;  %5473 = vmatmul.mubr.f32.gmra.mrb[12].mxu1 %v3871_v14  ;;  %253 = vst [vmem:[%s7384_s20] sm:$0xff] %v6581_v39  ;;  %254 = vst [vmem:[%s7384_s20 + $0x20] sm:$0xff] %v6581_v39  ;;  %v7426_v32 = vld [vmem:[#allocation7] ss:$0 sm:$0xff] }
 0x1a8   : > { %4971 = vmatprep.mubr.f32.mxu0 %v7211_v21  ;;  %5475 = vmatprep.mubr.f32.mxu1 %v3872_v55  ;;  %255 = vst [vmem:[%s7384_s20 + $0x40] sm:$0xff] %v6581_v39  ;;  %256 = vst [vmem:[%s7384_s20 + $0x60] sm:$0xff] %v6581_v39 }
 0x1a9   : > { %257 = vst [vmem:[%s7384_s20 + $0x80] sm:$0xff] %v6581_v39  ;;  %258 = vst [vmem:[%s7384_s20 + $0xa0] sm:$0xff] %v6581_v39 }
 0x1aa   : > { %259 = vst [vmem:[%s7384_s20 + $0xc0] sm:$0xff] %v6581_v39  ;;  %260 = vst [vmem:[%s7384_s20 + $0xe0] sm:$0xff] %v6581_v39 }
 0x1ab   : > { %4972 = vmatmul.mubr.f32.gmra.mrb[14].mxu0 %v7218_v54  ;;  %5476 = vmatmul.mubr.f32.gmra.mrb[14].mxu1 %v3873_v59  ;;  %261 = vst [vmem:[%s7384_s20 + $0x100] sm:$0xff] %v6581_v39  ;;  %262 = vst [vmem:[%s7384_s20 + $0x120] sm:$0xff] %v6581_v39 }
 0x1ac   : > { %263 = vst [vmem:[%s7384_s20 + $0x140] sm:$0xff] %v6581_v39  ;;  %264 = vst [vmem:[%s7384_s20 + $0x160] sm:$0xff] %v6581_v39 }
 0x1ad   : > { %265 = vst [vmem:[%s7384_s20 + $0x180] sm:$0xff] %v6581_v39  ;;  %266 = vst [vmem:[%s7384_s20 + $0x1a0] sm:$0xff] %v6581_v39 }
 0x1ae   : > { %267 = vst [vmem:[%s7384_s20 + $0x1c0] sm:$0xff] %v6581_v39  ;;  %268 = vst [vmem:[%s7384_s20 + $0x1e0] sm:$0xff] %v6581_v39 }
 0x1af   : > { %269 = vst [vmem:[%s7384_s20 + $0x200] sm:$0xff] %v6581_v39  ;;  %270 = vst [vmem:[%s7384_s20 + $0x220] sm:$0xff] %v6581_v39 }
 0x1b0   : > { %271 = vst [vmem:[%s7384_s20 + $0x18] sm:$0xff] %v6581_v39  ;;  %272 = vst [vmem:[%s7384_s20 + $0x38] sm:$0xff] %v6581_v39 }
 0x1b1   : > { %273 = vst [vmem:[%s7384_s20 + $0x58] sm:$0xff] %v6581_v39  ;;  %274 = vst [vmem:[%s7384_s20 + $0x78] sm:$0xff] %v6581_v39 }
 0x1b2   : > { %275 = vst [vmem:[%s7384_s20 + $0x98] sm:$0xff] %v6581_v39  ;;  %276 = vst [vmem:[%s7384_s20 + $0xb8] sm:$0xff] %v6581_v39 }
 0x1b3   : > { %277 = vst [vmem:[%s7384_s20 + $0xd8] sm:$0xff] %v6581_v39  ;;  %278 = vst [vmem:[%s7384_s20 + $0xf8] sm:$0xff] %v6581_v39 }
 0x1b4   : > { %279 = vst [vmem:[%s7384_s20 + $0x118] sm:$0xff] %v6581_v39  ;;  %280 = vst [vmem:[%s7384_s20 + $0x138] sm:$0xff] %v6581_v39 }
 0x1b5   : > { %281 = vst [vmem:[%s7384_s20 + $0x158] sm:$0xff] %v6581_v39  ;;  %282 = vst [vmem:[%s7384_s20 + $0x178] sm:$0xff] %v6581_v39 }
 0x1b6   : > { %283 = vst [vmem:[%s7384_s20 + $0x198] sm:$0xff] %v6581_v39  ;;  %284 = vst [vmem:[%s7384_s20 + $0x1b8] sm:$0xff] %v6581_v39 }
 0x1b7   : > { %285 = vst [vmem:[%s7384_s20 + $0x1d8] sm:$0xff] %v6581_v39  ;;  %286 = vst [vmem:[%s7384_s20 + $0x1f8] sm:$0xff] %v6581_v39 }
 0x1b8   : > { %287 = vst [vmem:[%s7384_s20 + $0x218] sm:$0xff] %v6581_v39  ;;  %288 = vst [vmem:[%s7384_s20 + $0x238] sm:$0xff] %v6581_v39 }
 0x262   : > { %v4952_v21 = vpop.f32.mrb[0].mxu0  ;;  %v5456_v54 = vpop.f32.mrb[0].mxu1 }
 0x263   : > { %v1928_v2 = vadd.f32 %v4952_v21, %v7426_v32  ;;  %v3609_v3 = vadd.f32 %v5456_v54, %v7426_v32  ;;  %v1825_v5 = vpop.f32.mrb[1].mxu0  ;;  %v3506_v11 = vpop.f32.mrb[1].mxu1 }
 0x264   : > { %v1927_v17 = vadd.f32 %v7426_v32, %v1825_v5  ;;  %v3608_v18 = vadd.f32 %v7426_v32, %v3506_v11 }
 0x265   : > { %v1944_v19 = vmax.f32 %v1928_v2, 0.0  ;;  %v3625_v20 = vmax.f32 %v3609_v3, 0.0 }
 0x266   : > { %v1943_v24 = vmax.f32 %v1927_v17, 0.0  ;;  %v3624_v25 = vmax.f32 %v3608_v18, 0.0  ;;  %v4955_v26 = vpop.f32.mrb[2].mxu0  ;;  %v5459_v9 = vpop.f32.mrb[2].mxu1 }
 0x267   : > { %3799 = vst [vmem:[%s7384_s20 + $0x30] sm:$0xff] %v1944_v19  ;;  %3876 = vst [vmem:[%s7384_s20 + $0x130] sm:$0xff] %v3625_v20  ;;  %v1930_v35 = vadd.f32 %v4955_v26, %v7426_v32  ;;  %v3611_v36 = vadd.f32 %v5459_v9, %v7426_v32  ;;  %v1835_v44 = vpop.f32.mrb[3].mxu0  ;;  %v3516_v49 = vpop.f32.mrb[3].mxu1 }
 0x268   : > { %3798 = vst [vmem:[%s7384_s20 + $0x28] sm:$0xff] %v1943_v24  ;;  %3875 = vst [vmem:[%s7384_s20 + $0x128] sm:$0xff] %v3624_v25  ;;  %v1929_v50 = vadd.f32 %v7426_v32, %v1835_v44  ;;  %v3610_v63 = vadd.f32 %v7426_v32, %v3516_v49 }
 0x269   : > { %v1946_v0 = vmax.f32 %v1930_v35, 0.0  ;;  %v3627_v1 = vmax.f32 %v3611_v36, 0.0 }
 0x26a   : > { %v1945_v33 = vmax.f32 %v1929_v50, 0.0  ;;  %v3626_v34 = vmax.f32 %v3610_v63, 0.0  ;;  %v4958_v22 = vpop.f32.mrb[4].mxu0  ;;  %v5462_v23 = vpop.f32.mrb[4].mxu1 }
 0x26b   : > { %3801 = vst [vmem:[%s7384_s20 + $0x50] sm:$0xff] %v1946_v0  ;;  %3878 = vst [vmem:[%s7384_s20 + $0x150] sm:$0xff] %v3627_v1  ;;  %v1932_v16 = vadd.f32 %v4958_v22, %v7426_v32  ;;  %v3613_v27 = vadd.f32 %v5462_v23, %v7426_v32  ;;  %v1845_v28 = vpop.f32.mrb[5].mxu0  ;;  %v3526_v29 = vpop.f32.mrb[5].mxu1 }
 0x26c   : > { %3800 = vst [vmem:[%s7384_s20 + $0x48] sm:$0xff] %v1945_v33  ;;  %3877 = vst [vmem:[%s7384_s20 + $0x148] sm:$0xff] %v3626_v34  ;;  %v1931_v30 = vadd.f32 %v7426_v32, %v1845_v28  ;;  %v3612_v31 = vadd.f32 %v7426_v32, %v3526_v29 }
 0x26d   : > { %v1948_v37 = vmax.f32 %v1932_v16, 0.0  ;;  %v3629_v42 = vmax.f32 %v3613_v27, 0.0 }
 0x26e   : > { %v1947_v43 = vmax.f32 %v1931_v30, 0.0  ;;  %v3628_v51 = vmax.f32 %v3612_v31, 0.0  ;;  %v4961_v56 = vpop.f32.mrb[6].mxu0  ;;  %v5465_v57 = vpop.f32.mrb[6].mxu1 }
 0x26f   : > { %3803 = vst [vmem:[%s7384_s20 + $0x70] sm:$0xff] %v1948_v37  ;;  %3880 = vst [vmem:[%s7384_s20 + $0x170] sm:$0xff] %v3629_v42  ;;  %v1934_v58 = vadd.f32 %v4961_v56, %v7426_v32  ;;  %v3615_v6 = vadd.f32 %v5465_v57, %v7426_v32  ;;  %v1855_v7 = vpop.f32.mrb[7].mxu0  ;;  %v3536_v8 = vpop.f32.mrb[7].mxu1 }
 0x270   : > { %3802 = vst [vmem:[%s7384_s20 + $0x68] sm:$0xff] %v1947_v43  ;;  %3879 = vst [vmem:[%s7384_s20 + $0x168] sm:$0xff] %v3628_v51  ;;  %v1933_v15 = vadd.f32 %v7426_v32, %v1855_v7  ;;  %v3614_v38 = vadd.f32 %v7426_v32, %v3536_v8 }
 0x271   : > { %v1950_v4 = vmax.f32 %v1934_v58, 0.0  ;;  %v3631_v10 = vmax.f32 %v3615_v6, 0.0 }
 0x272   : > { %v1949_v40 = vmax.f32 %v1933_v15, 0.0  ;;  %v3630_v41 = vmax.f32 %v3614_v38, 0.0  ;;  %v4964_v45 = vpop.f32.mrb[8].mxu0  ;;  %v5468_v46 = vpop.f32.mrb[8].mxu1 }
 0x273   : > { %3805 = vst [vmem:[%s7384_s20 + $0x90] sm:$0xff] %v1950_v4  ;;  %3882 = vst [vmem:[%s7384_s20 + $0x190] sm:$0xff] %v3631_v10  ;;  %v1936_v47 = vadd.f32 %v4964_v45, %v7426_v32  ;;  %v3617_v48 = vadd.f32 %v5468_v46, %v7426_v32  ;;  %v1865_v52 = vpop.f32.mrb[9].mxu0  ;;  %v3546_v53 = vpop.f32.mrb[9].mxu1 }
 0x274   : > { %3804 = vst [vmem:[%s7384_s20 + $0x88] sm:$0xff] %v1949_v40  ;;  %3881 = vst [vmem:[%s7384_s20 + $0x188] sm:$0xff] %v3630_v41  ;;  %v1935_v60 = vadd.f32 %v7426_v32, %v1865_v52  ;;  %v3616_v61 = vadd.f32 %v7426_v32, %v3546_v53 }
 0x275   : > { %v1952_v62 = vmax.f32 %v1936_v47, 0.0  ;;  %v3633_v12 = vmax.f32 %v3617_v48, 0.0 }
 0x276   : > { %v1951_v13 = vmax.f32 %v1935_v60, 0.0  ;;  %v3632_v14 = vmax.f32 %v3616_v61, 0.0  ;;  %v4967_v55 = vpop.f32.mrb[10].mxu0  ;;  %v5471_v59 = vpop.f32.mrb[10].mxu1 }
 0x277   : > { %3807 = vst [vmem:[%s7384_s20 + $0xb0] sm:$0xff] %v1952_v62  ;;  %3884 = vst [vmem:[%s7384_s20 + $0x1b0] sm:$0xff] %v3633_v12  ;;  %v1938_v39 = vadd.f32 %v4967_v55, %v7426_v32  ;;  %v3619_v21 = vadd.f32 %v5471_v59, %v7426_v32  ;;  %v1875_v54 = vpop.f32.mrb[11].mxu0  ;;  %v3556_v2 = vpop.f32.mrb[11].mxu1 }
 0x278   : > { %3806 = vst [vmem:[%s7384_s20 + $0xa8] sm:$0xff] %v1951_v13  ;;  %3883 = vst [vmem:[%s7384_s20 + $0x1a8] sm:$0xff] %v3632_v14  ;;  %v1937_v3 = vadd.f32 %v7426_v32, %v1875_v54  ;;  %v3618_v5 = vadd.f32 %v7426_v32, %v3556_v2 }
 0x279   : > { %v1954_v11 = vmax.f32 %v1938_v39, 0.0  ;;  %v3635_v17 = vmax.f32 %v3619_v21, 0.0 }
 0x27a   : > { %v1953_v18 = vmax.f32 %v1937_v3, 0.0  ;;  %v3634_v19 = vmax.f32 %v3618_v5, 0.0  ;;  %v4970_v20 = vpop.f32.mrb[12].mxu0  ;;  %v5474_v24 = vpop.f32.mrb[12].mxu1 }
 0x27b   : > { %3809 = vst [vmem:[%s7384_s20 + $0xd0] sm:$0xff] %v1954_v11  ;;  %3886 = vst [vmem:[%s7384_s20 + $0x1d0] sm:$0xff] %v3635_v17  ;;  %v1940_v25 = vadd.f32 %v4970_v20, %v7426_v32  ;;  %v3621_v26 = vadd.f32 %v5474_v24, %v7426_v32  ;;  %v1885_v9 = vpop.f32.mrb[13].mxu0  ;;  %v3566_v35 = vpop.f32.mrb[13].mxu1 }
 0x27c   : > { %3808 = vst [vmem:[%s7384_s20 + $0xc8] sm:$0xff] %v1953_v18  ;;  %3885 = vst [vmem:[%s7384_s20 + $0x1c8] sm:$0xff] %v3634_v19  ;;  %v1939_v36 = vadd.f32 %v7426_v32, %v1885_v9  ;;  %v3620_v44 = vadd.f32 %v7426_v32, %v3566_v35 }
 0x27d   : > { %v1956_v49 = vmax.f32 %v1940_v25, 0.0  ;;  %v3637_v50 = vmax.f32 %v3621_v26, 0.0 }
 0x27e   : > { %v1955_v63 = vmax.f32 %v1939_v36, 0.0  ;;  %v3636_v0 = vmax.f32 %v3620_v44, 0.0  ;;  %v4973_v1 = vpop.f32.mrb[14].mxu0  ;;  %v5477_v33 = vpop.f32.mrb[14].mxu1 }
 0x27f   : > { %3811 = vst [vmem:[%s7384_s20 + $0xf0] sm:$0xff] %v1956_v49  ;;  %3888 = vst [vmem:[%s7384_s20 + $0x1f0] sm:$0xff] %v3637_v50  ;;  %v1942_v34 = vadd.f32 %v4973_v1, %v7426_v32  ;;  %v3623_v22 = vadd.f32 %v5477_v33, %v7426_v32  ;;  %v1895_v23 = vpop.f32.mrb[15].mxu0  ;;  %v3576_v16 = vpop.f32.mrb[15].mxu1 }
 0x280   : > { %3810 = vst [vmem:[%s7384_s20 + $0xe8] sm:$0xff] %v1955_v63  ;;  %3887 = vst [vmem:[%s7384_s20 + $0x1e8] sm:$0xff] %v3636_v0  ;;  %v1941_v27 = vadd.f32 %v7426_v32, %v1895_v23  ;;  %v3622_v28 = vadd.f32 %v7426_v32, %v3576_v16 }
 0x281   : > { %v1958_v29 = vmax.f32 %v1942_v34, 0.0  ;;  %v3639_v30 = vmax.f32 %v3623_v22, 0.0 }
 0x282   : > { %v1957_v31 = vmax.f32 %v1941_v27, 0.0  ;;  %v3638_v37 = vmax.f32 %v3622_v28, 0.0 }
 0x283   : > { %3813 = vst [vmem:[%s7384_s20 + $0x110] sm:$0xff] %v1958_v29  ;;  %3890 = vst [vmem:[%s7384_s20 + $0x210] sm:$0xff] %v3639_v30 }
 0x284   : > { %3812 = vst [vmem:[%s7384_s20 + $0x108] sm:$0xff] %v1957_v31  ;;  %3889 = vst [vmem:[%s7384_s20 + $0x208] sm:$0xff] %v3638_v37 }
 0x285   : > { %6501 = shalt.err (!%p6498_p2)
}
 0x286   : > { %s6502_s9 = scalar_lea.hbm %s7493_s18, 9216  ;;  %s6506_s7 = scalar_lea.hbm %s7551_s3, 18432 }
 0x287   : > { %p6503_p0 = scmp.ne.s32.totalorder %s7493_s18, %s6502_s9  ;;  %p6507_p6 = scmp.lt.u32.totalorder %s7493_s18, %s7551_s3 }
 0x288   : > { %p6508_p7 = scmp.lt.u32.totalorder %s6506_s7, %s6502_s9  ;;  %p6510_p8 = scmp.lt.u32.totalorder %s6502_s9, %s7493_s18 }
 0x289   : > { %p6504_p4 = pnand %p6503_p0, %p7566_p12 }
 0x28a   : > { %p6509_p11 = por %p6508_p7, %p6507_p6 }
 0x28b   : > { %p6505_p13 = pneg %p6504_p4 }
 0x28c   : > { %p6511_p1 = por %p6510_p8, %p6509_p11 }
 0x28e   : > { %p6512_p10 = pnand %p6511_p1, %p6505_p13 }
 0x290   : > { %6515 = shalt.err (!%p6512_p10)
}
 0x291   : > { %s6583_s20 = smov 128   ;;  %s6584_s22 = smov 8  }
 0x292   : > { %6324 = dma.vmem_to_hbm [thread:$0]  (%p7566_p12), %s7495_s24, 9216, %s7493_s18, %s3660_s26, %s6583_s20, %s6583_s20, %s6584_s22  }
 0x293 PF: > { %s3689_s15 = sand.u32 1, %s6554_s12   ;;  %p7567_p3 = scmp.ne.s32.totalorder %s7559_s23, 0 }
 0x294   : > { %p7568_p5 = scmp.ge.s32.totalorder %s6574_s17, 2  ;;  %s3690_s11 = scalar_lea.sflag [#allocation4], %s3689_s15 }
 0x296   : > { %p6338_p9 = pnand %p7568_p5, %p7567_p3 }
 0x298   : > { %6549 = dma.done.wait (!%p6338_p9), %s3690_s11, 9216  }
 0x299   : > { %6551 = vsyncadd (!%p6338_p9), %s3690_s11, 4294958080  ;;  %s20_s17 = sadd.s32 1, %s6574_s17   ;;  %s7569_s12 = smov %s6558_s13 }
 0x29a   : > { %p17_p2 = scmp.ge.s32.totalorder %s20_s17, 4   ;;  %s7570_s13 = smov %s6562_s14 }
 0x29b   : > { %s7571_s14 = smov %s6754_s6  ;;  %s7572_s15 = smov %s6570_s16 }
 0x29c   : > { %s7573_s16 = smov %s7575_s25  ;;  %19 = sbr.rel (!%p17_p2) target bundleno = 7 (0x7), region = 100 }
 0x2a3   :  { %3695 = vsyncpa [#allocation3], 1 }
 0x2a4   :  { %3697 = vsyncpa [#allocation3 + $0x1], 1 }
 0x2a5   :  { %3698 = vsyncpa [#allocation6], 1 }
 0x2a6   :  { %3699 = vsyncpa [#allocation4], 1 }
 0x2a7   :  { %3701 = vsyncpa [#allocation4 + $0x1], 1 }

// kernel: basic_block_forward.3
= control target key start
LH: loop header
LB: loop body
LE: loop exit
PB: predicated region body
PF: predicated region fallthrough
CT: control target
= control target key end

     0   :  { %s7771_s0 = inlined_call_operand.hbm [shape: f32[2,18,32,128], index: 0, kind: input, shape index: {}]   ;;  %s7772_s1 = inlined_call_operand.hbm [shape: f32[9,128,128], index: 1, kind: input, shape index: {}]   ;;  %s7773_s2 = inlined_call_operand.hbm [shape: f32[1,128], index: 2, kind: input, shape index: {}]   ;;  %s7774_s3 = inlined_call_operand.hbm [shape: f32[2,18,32,128], index: 3, kind: input, shape index: {}]   ;;  %s7775_s4 = inlined_call_operand.hbm [shape: f32[2,16,16,128], index: 4, kind: output, shape index: {}]  }
   0x1   :  { %7784 = sst [smem:[#allocation15_spill]] %s7771_s0 }
   0x2   :  { %7785 = sst [smem:[#allocation16_spill]] %s7772_s1 }
   0x3   :  { %7786 = sst [smem:[#allocation17_spill]] %s7773_s2 }
   0x4   :  { %9 = vsyncpa [#allocation3], 0 }
   0x5   :  { %11 = vsyncpa [#allocation3 + $0x1], 0 }
   0x6   :  { %12 = vsyncpa [#allocation6], 0 }
   0x7   :  { %13 = vsyncpa [#allocation9], 0 }
   0x8   :  { %15 = vsyncpa [#allocation9 + $0x1], 0 }
   0x9   :  { %16 = vsyncpa [#allocation4], 0 }
   0xa   :  { %18 = vsyncpa [#allocation4 + $0x1], 0  ;;  %s6785_s15 = smov 0   ;;  %s6787_s16 = smov 0  }
   0xb   :  { %s6789_s17 = smov 0   ;;  %s6791_s18 = smov 0  }
   0xc   :  { %s6793_s19 = smov 0   ;;  %s6795_s20 = smov 0  }
   0xd LB: > { %s3902_s21 = sadd.s32 4294967295, %s6749_s20   ;;  %s3903_s22 = sadd.s32 4294967294, %s6749_s20   ;;  %s6749_s20 = sphi %s6795_s20, %s24_s20   ;;  %s6745_s19 = sphi %s6793_s19, %s7810_s19   ;;  %s6741_s18 = sphi %s6791_s18, %s7809_s18   ;;  %s6737_s17 = sphi %s6789_s17, %s7808_s17   ;;  %s6733_s16 = sphi %s6787_s16, %s7807_s16   ;;  %s6729_s15 = sphi %s6785_s15, %s7806_s15  }
   0xe   : > { %p56_p0 = scmp.ne.s32.totalorder %s6733_s16, %s6729_s15  ;;  %p6819_p1 = scmp.eq.s32.totalorder %s3902_s21, 0 }
   0xf   : > { %p6823_p2 = scmp.eq.s32.totalorder %s3902_s21, 1  ;;  %p168_p3 = scmp.eq.s32.totalorder %s3903_s22, 1 }
  0x10   : > { %s7787_s23 = scalar_select %p6819_p1, 1, 0 }
  0x11   : > { %p6829_p4 = por %p6819_p1, %p56_p0  ;;  %p3904_p5 = scmp.ge.s32.totalorder %s6749_s20, 1 }
  0x12   : > { %p6834_p6 = por %p168_p3, %p56_p0  ;;  %p175_p7 = scmp.lt.s32.totalorder %s6749_s20, 3 }
  0x13   : > { %s7789_s25 = scalar_select %p6829_p4, 1, 0 }
  0x14   : > { %s7790_s26 = scalar_select %p6834_p6, 1, 0 }
  0x15   : > { %p6839_p8 = pnand %p3904_p5, %p175_p7  ;;  %s6751_s28 = smov [#allocation5]  }
  0x16   : > { %s189_s29 = sshll.u32 %s6751_s28, 4  ;;  %s6752_s5 = smov [#allocation7]   ;;  %s6843_s29 = int_to_ptr.vmem [resolvable:$true] %s189_s29 }
  0x17   : > { %p6465_p9 = pneg %p6839_p8  ;;  %s205_s6 = sshll.u32 %s6752_s5, 4  ;;  %s6854_s6 = int_to_ptr.vmem [resolvable:$true] %s205_s6 }
  0x18   : > { %s7793_s1 = sld [smem:[#allocation16_spill]] }
  0x19   : > { %p6850_p11 = pnand %p6465_p9, %p6819_p1 }
  0x1b   : > { %p6545_p13 = pneg %p6850_p11 }
  0x1e   : > { %s6543_s9 = scalar_lea.hbm %s7793_s1, 18432 }
  0x1f   : > { %p6544_p12 = scmp.ne.s32.totalorder %s7793_s1, %s6543_s9  ;;  %p6550_p5 = scmp.lt.u32.totalorder %s6543_s9, %s7793_s1 }
  0x21   : > { %p6546_p0 = pnand %p6545_p13, %p6544_p12 }
  0x23   : > { %p6547_p3 = pneg %p6546_p0 }
  0x25   : > { %p6552_p7 = pnand %p6550_p5, %p6547_p3 }
  0x27   : > { %6555 = shalt.err (!%p6552_p7)
}
  0x28   : > { %s6556_s14 = scalar_lea.vmem %s6843_s29, 18432  ;;  %p6564_p1 = scmp.lt.s32.totalorder %s6843_s29, %s6843_s29 }
  0x29   : > { %p6557_p9 = scmp.ne.s32.totalorder %s6843_s29, %s6556_s14  ;;  %p6565_p12 = scmp.lt.s32.totalorder %s6556_s14, %s6556_s14 }
  0x2b   : > { %p6559_p10 = pnand %p6557_p9, %p6545_p13  ;;  %p6566_p0 = por %p6565_p12, %p6564_p1 }
  0x2d   : > { %p6560_p6 = pneg %p6559_p10 }
  0x2f   : > { %p6567_p4 = pnand %p6566_p0, %p6560_p6 }
  0x31   : > { %6570 = shalt.err (!%p6567_p4)
}
  0x32   : > { %s7779_s21 = smov 128   ;;  %s6754_s22 = smov 8  }
  0x33   : > { %6468 = dma.hbm_to_vmem [thread:$0]  (!%p6850_p11), %s7793_s1, 18432, %s6843_s29, [#allocation6], %s7779_s21, %s7779_s21, %s6754_s22  }
  0x34   : > { %s7794_s2 = sld [smem:[#allocation17_spill]] }
  0x3a   : > { %s6571_s9 = scalar_lea.hbm %s7794_s2, 16 }
  0x3b   : > { %p6572_p1 = scmp.ne.s32.totalorder %s7794_s2, %s6571_s9  ;;  %p6578_p10 = scmp.lt.u32.totalorder %s6571_s9, %s7794_s2 }
  0x3d   : > { %p6574_p4 = pnand %p6572_p1, %p6545_p13 }
  0x3f   : > { %p6575_p6 = pneg %p6574_p4 }
  0x41   : > { %p6580_p3 = pnand %p6578_p10, %p6575_p6 }
  0x43   : > { %6583 = shalt.err (!%p6580_p3)
}
  0x44   : > { %s6584_s29 = scalar_lea.vmem %s6854_s6, 16  ;;  %s6591_s14 = scalar_lea.vmem %s6854_s6, 32 }
  0x45   : > { %p6585_p5 = scmp.ne.s32.totalorder %s6854_s6, %s6584_s29  ;;  %p6592_p12 = scmp.lt.s32.totalorder %s6854_s6, %s6854_s6 }
  0x46   : > { %p6593_p0 = scmp.lt.s32.totalorder %s6591_s14, %s6584_s29 }
  0x47   : > { %p6587_p7 = pnand %p6585_p5, %p6545_p13 }
  0x48   : > { %p6594_p1 = por %p6593_p0, %p6592_p12 }
  0x49   : > { %p6588_p9 = pneg %p6587_p7 }
  0x4b   : > { %p6595_p4 = pnand %p6594_p1, %p6588_p9 }
  0x4d   : > { %6598 = shalt.err (!%p6595_p4)
}
  0x4e   : > { %6471 = dma.hbm_to_vmem [thread:$0]  (!%p6850_p11), %s7794_s2, 16, %s6854_s6, [#allocation6]  }
  0x4f   : > { %s33_s7 = sadd.s32 1, %s6745_s19  ;;  %s43_s8 = sadd.s32 1, %s6737_s17 }
  0x50   : > { %p34_p13 = scmp.ge.s32.totalorder %s33_s7, 2  ;;  %p50_p6 = scmp.ne.s32.totalorder %s6737_s17, %s6733_s16 }
  0x51   : > { %p51_p10 = scmp.eq.s32.totalorder %s6749_s20, 0  ;;  %p6485_p3 = scmp.lt.s32.totalorder %s6749_s20, 2 }
  0x52   : > { %s7812_s7 = smov (%p34_p13, %s33_s7), 0  ;;  %p6922_p7 = por %p6823_p2, %p50_p6 }
  0x53   : > { %p52_p5 = por %p51_p10, %p50_p6  ;;  %s40_s9 = ssub.s32 %s6745_s19, %s7812_s7 }
  0x54   : > { %s7795_s30 = scalar_select %p6922_p7, 1, 0 }
  0x55   : > { %s6929_s10 = sand.u32 1, %s6737_s17   ;;  %p41_p11 = scmp.eq.s32.totalorder %s40_s9, 0 }
  0x56   : > { %s7781_s6 = smul.u32 576, %s6929_s10  ;;  %p6932_p9 = pnand %p6485_p3, %p52_p5 }
  0x57   : > { %s6937_s12 = scalar_select %p41_p11, %s6737_s17, %s43_s8  }
  0x58   : > { %s7782_s24 = smul.u32 9216, %s6745_s19  ;;  %s220_s13 = scalar_lea.vmem [#allocation2], %s7781_s6 }
  0x59   : > { %s227_s29 = sshll.u32 %s220_s13, 4  ;;  %s7797_s0 = sld [smem:[#allocation15_spill]]  ;;  %s6949_s29 = int_to_ptr.vmem [resolvable:$true] %s227_s29 }
  0x5a   : > { %s217_s9 = scalar_lea.sflag [#allocation3], %s6929_s10  ;;  %p6601_p12 = pneg %p6932_p9 }
  0x5f   : > { %s6947_s5 = scalar_lea.hbm %s7797_s0, %s7782_s24  ;;  %s6604_s14 = scalar_lea.hbm %s7797_s0, 18432 }
  0x60   : > { %s6599_s21 = scalar_lea.hbm %s6947_s5, 9216  ;;  %p6605_p4 = scmp.lt.u32.totalorder %s6947_s5, %s7797_s0 }
  0x61   : > { %p6600_p2 = scmp.ne.s32.totalorder %s6947_s5, %s6599_s21  ;;  %p6606_p13 = scmp.lt.u32.totalorder %s6604_s14, %s6599_s21 }
  0x62   : > { %p6608_p10 = scmp.lt.u32.totalorder %s6599_s21, %s6947_s5 }
  0x63   : > { %p6602_p0 = pnand %p6601_p12, %p6600_p2  ;;  %p6607_p6 = por %p6606_p13, %p6605_p4 }
  0x65   : > { %p6603_p1 = pneg %p6602_p0  ;;  %p6609_p3 = por %p6608_p10, %p6607_p6 }
  0x67   : > { %p6610_p5 = pnand %p6609_p3, %p6603_p1 }
  0x69   : > { %6613 = shalt.err (!%p6610_p5)
}
  0x6a   : > { %s6614_s24 = scalar_lea.vmem %s6949_s29, 9216  ;;  %s6755_s8 = smov [#allocation2]  }
  0x6b   : > { %p6615_p11 = scmp.ne.s32.totalorder %s6949_s29, %s6614_s24  ;;  %s6619_s13 = sshll.u32 %s6755_s8, 4  ;;  %s6620_s13 = int_to_ptr.vmem [resolvable:$false] %s6619_s13 }
  0x6c   : > { %s6621_s6 = scalar_lea.vmem %s6620_s13, 18432  ;;  %p6622_p7 = scmp.lt.s32.totalorder %s6949_s29, %s6620_s13 }
  0x6d   : > { %p6617_p2 = pnand %p6615_p11, %p6601_p12  ;;  %p6623_p4 = scmp.lt.s32.totalorder %s6621_s6, %s6614_s24 }
  0x6f   : > { %p6618_p0 = pneg %p6617_p2  ;;  %p6624_p13 = por %p6623_p4, %p6622_p7 }
  0x71   : > { %p6625_p6 = pnand %p6624_p13, %p6618_p0 }
  0x73   : > { %6628 = shalt.err (!%p6625_p6)
}
  0x74   : > { %s7798_s21 = smov 128   ;;  %s7799_s14 = smul.u32 9216, %s6745_s19 }
  0x75   : > { %6475 = dma.hbm_to_vmem [thread:$0]  (!%p6932_p9), %s6947_s5, 9216, %s6949_s29, %s217_s9, %s7798_s21, %s7798_s21, %s6754_s22  }
  0x76   : > { %s6987_s8 = scalar_lea.hbm %s7774_s3, %s7799_s14  ;;  %s7800_s13 = smul.u32 576, %s6929_s10 }
  0x77   : > { %s238_s1 = scalar_lea.sflag [#allocation9], %s6929_s10  ;;  %s6629_s2 = scalar_lea.hbm %s6987_s8, 9216 }
  0x78   : > { %s241_s6 = scalar_lea.vmem [#allocation8], %s7800_s13  ;;  %p6630_p7 = scmp.ne.s32.totalorder %s6987_s8, %s6629_s2 }
  0x79   : > { %s249_s0 = sshll.u32 %s241_s6, 4  ;;  %s6634_s9 = scalar_lea.hbm %s7774_s3, 18432  ;;  %s6991_s0 = int_to_ptr.vmem [resolvable:$true] %s249_s0 }
  0x7a   : > { %p6632_p1 = pnand %p6630_p7, %p6601_p12  ;;  %p6635_p3 = scmp.lt.u32.totalorder %s6987_s8, %s7774_s3 }
  0x7b   : > { %p6636_p5 = scmp.lt.u32.totalorder %s6634_s9, %s6629_s2  ;;  %p6638_p2 = scmp.lt.u32.totalorder %s6629_s2, %s6987_s8 }
  0x7c   : > { %p6633_p10 = pneg %p6632_p1 }
  0x7d   : > { %p6637_p11 = por %p6636_p5, %p6635_p3 }
  0x7f   : > { %p6639_p0 = por %p6638_p2, %p6637_p11 }
  0x81   : > { %p6640_p4 = pnand %p6639_p0, %p6633_p10 }
  0x83   : > { %6643 = shalt.err (!%p6640_p4)
}
  0x84   : > { %s6644_s24 = scalar_lea.vmem %s6991_s0, 9216  ;;  %s6756_s13 = smov [#allocation8]  }
  0x85   : > { %p6645_p13 = scmp.ne.s32.totalorder %s6991_s0, %s6644_s24  ;;  %s6649_s6 = sshll.u32 %s6756_s13, 4  ;;  %s6650_s6 = int_to_ptr.vmem [resolvable:$false] %s6649_s6 }
  0x86   : > { %s6651_s29 = scalar_lea.vmem %s6650_s6, 18432  ;;  %p6652_p1 = scmp.lt.s32.totalorder %s6991_s0, %s6650_s6 }
  0x87   : > { %p6647_p6 = pnand %p6645_p13, %p6601_p12  ;;  %p6653_p3 = scmp.lt.s32.totalorder %s6651_s29, %s6644_s24 }
  0x89   : > { %p6648_p7 = pneg %p6647_p6  ;;  %p6654_p5 = por %p6653_p3, %p6652_p1 }
  0x8b   : > { %p6655_p11 = pnand %p6654_p5, %p6648_p7 }
  0x8d   : > { %6658 = shalt.err (!%p6655_p11)
}
  0x8e   : > { %6478 = dma.hbm_to_vmem [thread:$0]  (!%p6932_p9), %s6987_s8, 9216, %s6991_s0, %s238_s1, %s7798_s21, %s7798_s21, %s6754_s22  }
  0x8f   : > { %261 = sbr.rel (%p6839_p8) target bundleno = 709 (0x2c5), region = 36  ;;  %s7025_s2 = sand.u32 (!%p6839_p8), 1, %s6733_s16  }
  0x90   : > { %s6450_s5 = smul.u32 (!%p6839_p8), 576, %s7025_s2  ;;  %s264_s9 = scalar_lea.sflag (!%p6839_p8), [#allocation3], %s7025_s2 }
  0x91   : > { %p7801_p12 = scmp.ne.s32.totalorder (!%p6839_p8), %s7789_s25, 0 }
  0x92   : > { %s7029_s11 = scalar_lea.vmem (!%p6839_p8), [#allocation2], %s6450_s5 }
  0x96   : > { %6712 = dma.done.wait (%p7801_p12), %s264_s9, 9216  }
  0x97   : > { %6714 = vsyncadd (%p7801_p12), %s264_s9, 4294958080  ;;  %p7802_p9 = scmp.ne.s32.totalorder %s7787_s23, 0 }
  0x99   : > { %6716 = dma.done.wait (%p7802_p9), [#allocation6], 18448  }
  0x9a   : > { %6718 = vsyncadd (%p7802_p9), [#allocation6], 4294948848  ;;  %s281_s0 = scalar_lea.sflag [#allocation9], %s7025_s2  ;;  %s7040_s1 = scalar_lea.vmem [#allocation8], %s6450_s5 }
  0x9b   : > { %6720 = dma.done.wait (%p7801_p12), %s281_s0, 9216  }
  0x9c   : > { %6722 = vsyncadd (%p7801_p12), %s281_s0, 4294958080  ;;  %v353_v0 = vld [vmem:[#allocation5 + $0x180] sm:$0xff]  ;;  %v354_v1 = vld [vmem:[#allocation5 + $0x188] sm:$0xff]  ;;  %s3913_s23 = sshll.u32 %s7025_s2, 8  ;;  %s4029_s27 = sshll.u32 %s6741_s18, 12 }
  0x9d   : > { %v355_v2 = vld [vmem:[#allocation5 + $0x190] sm:$0xff]  ;;  %v5614_v3 = vpack.c.bf16 %v354_v1, %v353_v0  ;;  %v356_v4 = vld [vmem:[#allocation5 + $0x198] sm:$0xff]  ;;  %v357_v6 = vld [vmem:[#allocation5 + $0x1a0] sm:$0xff]  ;;  %s7633_s25 = scalar_lea.vmem [#allocation10], %s3913_s23  ;;  %s7716_s18 = scalar_lea.hbm %s7775_s4, %s4029_s27 }
  0x9e   : > { %v5618_v5 = vpack.c.bf16 %v356_v4, %v355_v2  ;;  %v358_v7 = vld [vmem:[#allocation5 + $0x1a8] sm:$0xff]  ;;  %v359_v11 = vld [vmem:[#allocation5 + $0x1b0] sm:$0xff]  ;;  %v360_v12 = vld [vmem:[#allocation5 + $0x1b8] sm:$0xff]  ;;  %s3767_s22 = sshll.u32 %s7633_s25, 4  ;;  %s3753_s8 = scalar_lea.sflag [#allocation4], %s7025_s2  ;;  %s7718_s22 = int_to_ptr.vmem [resolvable:$true] %s3767_s22 }
  0x9f   : > { %5615 = vmatprep.subr.bf16.mxu0 %v5614_v3  ;;  %5903 = vmatprep.subr.bf16.mxu1 %v5614_v3  ;;  %v5622_v8 = vpack.c.bf16 %v358_v7, %v357_v6  ;;  %v7047_v9 = vld [vmem:[%s7029_s11 + $0x27] sm:$0xff]  ;;  %v5626_v13 = vpack.c.bf16 %v360_v12, %v359_v11  ;;  %v363_v17 = vld [vmem:[#allocation5 + $0x1d0] sm:$0xff]  ;;  %v364_v18 = vld [vmem:[#allocation5 + $0x1d8] sm:$0xff]  ;;  %s6659_s14 = scalar_lea.vmem %s7718_s22, 4096  ;;  %p7803_p10 = scmp.ne.s32.totalorder %s7795_s30, 0 }
  0xa0   : > { %5617 = vmatpush3.bf16.msra.mxu0 %v5614_v3  ;;  %5905 = vmatpush3.bf16.msra.mxu1 %v5614_v3  ;;  %v7050_v10 = vld [vmem:[%s7029_s11 + $0x127] sm:$0xff]  ;;  %v5634_v19 = vpack.c.bf16 %v364_v18, %v363_v17  ;;  %v367_v23 = vld [vmem:[#allocation5 + $0x1f0] sm:$0xff]  ;;  %v368_v24 = vld [vmem:[#allocation5 + $0x1f8] sm:$0xff]  ;;  %p6660_p8 = scmp.ne.s32.totalorder %s7718_s22, %s6659_s14  ;;  %s6757_s28 = smov [#allocation10]  }
  0xa1   : > { %5619 = vmatprep.subr.bf16.mxu0 %v5618_v5  ;;  %5907 = vmatprep.subr.bf16.mxu1 %v5618_v5  ;;  %v361_v14 = vld [vmem:[#allocation5 + $0x1c0] sm:$0xff]  ;;  %v362_v15 = vld [vmem:[#allocation5 + $0x1c8] sm:$0xff]  ;;  %v5642_v25 = vpack.c.bf16 %v368_v24, %v367_v23  ;;  %v338_v29 = vld [vmem:[#allocation5 + $0x10] sm:$0xff]  ;;  %s6663_s24 = sshll.u32 %s6757_s28, 4  ;;  %s6664_s24 = int_to_ptr.vmem [resolvable:$false] %s6663_s24 }
  0xa2   : > { %4638 = vmatprep.mubr.f32.mxu0 %v7047_v9  ;;  %5142 = vmatprep.mubr.f32.mxu1 %v7050_v10  ;;  %v5630_v16 = vpack.c.bf16 %v362_v15, %v361_v14  ;;  %v365_v20 = vld [vmem:[#allocation5 + $0x1e0] sm:$0xff]  ;;  %v366_v21 = vld [vmem:[#allocation5 + $0x1e8] sm:$0xff]  ;;  %v339_v30 = vld [vmem:[#allocation5 + $0x18] sm:$0xff]  ;;  %p6661_p2 = pnand %p6660_p8, %p7803_p10  ;;  %s6665_s13 = scalar_lea.vmem %s6664_s24, 8192 }
  0xa3   : > { %v5638_v22 = vpack.c.bf16 %v366_v21, %v365_v20  ;;  %v336_v26 = vld [vmem:[#allocation5] sm:$0xff]  ;;  %v337_v27 = vld [vmem:[#allocation5 + $0x8] sm:$0xff]  ;;  %v5650_v35 = vpack.c.bf16 %v339_v30, %v338_v29  ;;  %v342_v43 = vld [vmem:[#allocation5 + $0x30] sm:$0xff]  ;;  %p6666_p4 = scmp.lt.s32.totalorder %s7718_s22, %s6664_s24  ;;  %p6667_p13 = scmp.lt.s32.totalorder %s6665_s13, %s6659_s14 }
  0xa4   : > { %5621 = vmatpush3.bf16.msra.mxu0 %v5618_v5  ;;  %5909 = vmatpush3.bf16.msra.mxu1 %v5618_v5  ;;  %v5646_v28 = vpack.c.bf16 %v337_v27, %v336_v26  ;;  %v7055_v31 = vld [vmem:[%s7029_s11 + $0x2f] sm:$0xff]  ;;  %v7061_v33 = vld [vmem:[%s7029_s11 + $0x47] sm:$0xff]  ;;  %v343_v44 = vld [vmem:[#allocation5 + $0x38] sm:$0xff]  ;;  %p6662_p0 = pneg %p6661_p2 }
  0xa5   : > { %5623 = vmatprep.subr.bf16.mxu0 %v5622_v8  ;;  %5911 = vmatprep.subr.bf16.mxu1 %v5622_v8  ;;  %v7058_v32 = vld [vmem:[%s7029_s11 + $0x12f] sm:$0xff]  ;;  %v7064_v34 = vld [vmem:[%s7029_s11 + $0x147] sm:$0xff]  ;;  %v5658_v49 = vpack.c.bf16 %v343_v44, %v342_v43  ;;  %v347_v58 = vld [vmem:[#allocation5 + $0x58] sm:$0xff]  ;;  %p6668_p6 = por %p6667_p13, %p6666_p4 }
  0xa6   : > { %v340_v36 = vld [vmem:[#allocation5 + $0x20] sm:$0xff]  ;;  %v341_v37 = vld [vmem:[#allocation5 + $0x28] sm:$0xff]  ;;  %v346_v57 = vld [vmem:[#allocation5 + $0x50] sm:$0xff] }
  0xa7   : > { %v7069_v38 = vld [vmem:[%s7029_s11 + $0x4f] sm:$0xff]  ;;  %v7077_v40 = vld [vmem:[%s7029_s11 + $0x67] sm:$0xff]  ;;  %v5654_v42 = vpack.c.bf16 %v341_v37, %v340_v36  ;;  %v5666_v63 = vpack.c.bf16 %v347_v58, %v346_v57  ;;  %v663_v23 = vld [vmem:[#allocation5 + $0x318] sm:$0xff]  ;;  %p6669_p7 = pnand %p6668_p6, %p6662_p0 }
  0xa8   : > { %5625 = vmatpush3.bf16.msra.mxu0 %v5622_v8  ;;  %5913 = vmatpush3.bf16.msra.mxu1 %v5622_v8  ;;  %v7072_v39 = vld [vmem:[%s7029_s11 + $0x14f] sm:$0xff]  ;;  %v7080_v41 = vld [vmem:[%s7029_s11 + $0x167] sm:$0xff]  ;;  %v351_v8 = vld [vmem:[#allocation5 + $0x78] sm:$0xff] }
  0xa9   : > { %5627 = vmatprep.subr.bf16.mxu0 %v5626_v13  ;;  %5915 = vmatprep.subr.bf16.mxu1 %v5626_v13  ;;  %v7085_v45 = vld [vmem:[%s7029_s11 + $0x6f] sm:$0xff]  ;;  %v7093_v47 = vld [vmem:[%s7029_s11 + $0x87] sm:$0xff]  ;;  %v667_v30 = vld [vmem:[#allocation5 + $0x338] sm:$0xff] }
  0xaa   : > { %v7088_v46 = vld [vmem:[%s7029_s11 + $0x16f] sm:$0xff]  ;;  %v7096_v48 = vld [vmem:[%s7029_s11 + $0x187] sm:$0xff] }
  0xab   : > { %v344_v50 = vld [vmem:[#allocation5 + $0x40] sm:$0xff]  ;;  %v345_v51 = vld [vmem:[#allocation5 + $0x48] sm:$0xff]  ;;  %v350_v7 = vld [vmem:[#allocation5 + $0x70] sm:$0xff] }
  0xac   : > { %5629 = vmatpush3.bf16.msra.mxu0 %v5626_v13  ;;  %5917 = vmatpush3.bf16.msra.mxu1 %v5626_v13  ;;  %v7101_v52 = vld [vmem:[%s7029_s11 + $0x8f] sm:$0xff]  ;;  %v7109_v54 = vld [vmem:[%s7029_s11 + $0xa7] sm:$0xff]  ;;  %v5662_v56 = vpack.c.bf16 %v345_v51, %v344_v50  ;;  %v5674_v15 = vpack.c.bf16 %v351_v8, %v350_v7 }
  0xad   : > { %5631 = vmatprep.subr.bf16.mxu0 %v5630_v16  ;;  %5919 = vmatprep.subr.bf16.mxu1 %v5630_v16  ;;  %v7104_v53 = vld [vmem:[%s7029_s11 + $0x18f] sm:$0xff]  ;;  %v7112_v55 = vld [vmem:[%s7029_s11 + $0x1a7] sm:$0xff] }
  0xae   : > { %v7117_v59 = vld [vmem:[%s7029_s11 + $0xaf] sm:$0xff]  ;;  %v7125_v61 = vld [vmem:[%s7029_s11 + $0xc7] sm:$0xff] }
  0xaf   : > { %v7120_v60 = vld [vmem:[%s7029_s11 + $0x1af] sm:$0xff]  ;;  %v7128_v62 = vld [vmem:[%s7029_s11 + $0x1c7] sm:$0xff] }
  0xb0   : > { %5633 = vmatpush3.bf16.msra.mxu0 %v5630_v16  ;;  %5921 = vmatpush3.bf16.msra.mxu1 %v5630_v16  ;;  %v348_v0 = vld [vmem:[#allocation5 + $0x60] sm:$0xff]  ;;  %v349_v1 = vld [vmem:[#allocation5 + $0x68] sm:$0xff]  ;;  %v666_v29 = vld [vmem:[#allocation5 + $0x330] sm:$0xff] }
  0xb1   : > { %5635 = vmatprep.subr.bf16.mxu0 %v5634_v19  ;;  %5923 = vmatprep.subr.bf16.mxu1 %v5634_v19  ;;  %v7133_v2 = vld [vmem:[%s7029_s11 + $0xcf] sm:$0xff]  ;;  %v7141_v4 = vld [vmem:[%s7029_s11 + $0xe7] sm:$0xff]  ;;  %v5670_v6 = vpack.c.bf16 %v349_v1, %v348_v0 }
  0xb2   : > { %v7136_v3 = vld [vmem:[%s7029_s11 + $0x1cf] sm:$0xff]  ;;  %v7144_v5 = vld [vmem:[%s7029_s11 + $0x1e7] sm:$0xff] }
  0xb3   : > { %v7149_v11 = vld [vmem:[%s7029_s11 + $0xef] sm:$0xff]  ;;  %v7157_v13 = vld [vmem:[%s7029_s11 + $0x107] sm:$0xff] }
  0xb4   : > { %5637 = vmatpush3.bf16.msra.mxu0 %v5634_v19  ;;  %5925 = vmatpush3.bf16.msra.mxu1 %v5634_v19  ;;  %v7152_v12 = vld [vmem:[%s7029_s11 + $0x1ef] sm:$0xff]  ;;  %v7160_v14 = vld [vmem:[%s7029_s11 + $0x207] sm:$0xff] }
  0xb5   : > { %5639 = vmatprep.subr.bf16.mxu0 %v5638_v22  ;;  %5927 = vmatprep.subr.bf16.mxu1 %v5638_v22  ;;  %v660_v16 = vld [vmem:[#allocation5 + $0x300] sm:$0xff]  ;;  %v661_v17 = vld [vmem:[#allocation5 + $0x308] sm:$0xff]  ;;  %v670_v37 = vld [vmem:[#allocation5 + $0x350] sm:$0xff] }
  0xb6   : > { %v7165_v18 = vld [vmem:[%s7029_s11 + $0x10f] sm:$0xff]  ;;  %v316_v20 = vld [vmem:[%s7029_s11 + $0x7] sm:$0xff]  ;;  %v5678_v21 = vpack.c.bf16 %v661_v17, %v660_v16  ;;  %v865_v16 = vld [vmem:[#allocation5 + $0xb8] sm:$0xff] }
  0xb7   : > { %v7168_v19 = vld [vmem:[%s7029_s11 + $0x20f] sm:$0xff]  ;;  %v664_v26 = vld [vmem:[#allocation5 + $0x320] sm:$0xff] }
  0xb8   : > { %5641 = vmatpush3.bf16.msra.mxu0 %v5638_v22  ;;  %5929 = vmatpush3.bf16.msra.mxu1 %v5638_v22  ;;  %v662_v22 = vld [vmem:[#allocation5 + $0x310] sm:$0xff]  ;;  %v665_v27 = vld [vmem:[#allocation5 + $0x328] sm:$0xff]  ;;  %v672_v44 = vld [vmem:[#allocation5 + $0x360] sm:$0xff] }
  0xb9   : > { %5643 = vmatprep.subr.bf16.mxu0 %v5642_v25  ;;  %5931 = vmatprep.subr.bf16.mxu1 %v5642_v25  ;;  %v317_v24 = vld [vmem:[%s7029_s11 + $0xf] sm:$0xff]  ;;  %v858_v58 = vld [vmem:[#allocation5 + $0x80] sm:$0xff] }
  0xba   : > { %v669_v36 = vld [vmem:[#allocation5 + $0x348] sm:$0xff]  ;;  %v674_v51 = vld [vmem:[#allocation5 + $0x370] sm:$0xff]  ;;  %v862_v8 = vld [vmem:[#allocation5 + $0xa0] sm:$0xff] }
  0xbb   : > { %v860_v1 = vld [vmem:[#allocation5 + $0x90] sm:$0xff] }
  0xbc   : > { %5645 = vmatpush3.bf16.msra.mxu0 %v5642_v25  ;;  %5933 = vmatpush3.bf16.msra.mxu1 %v5642_v25  ;;  %v5682_v25 = vpack.c.bf16 %v663_v23, %v662_v22  ;;  %v7263_v22 = vld [vmem:[%s7029_s11 + $0x48] sm:$0xff] }
  0xbd   : > { %5647 = vmatprep.subr.bf16.mxu0 %v5646_v28  ;;  %5935 = vmatprep.subr.bf16.mxu1 %v5646_v28  ;;  %v7266_v23 = vld [vmem:[%s7029_s11 + $0x148] sm:$0xff] }
  0xbf   : > { %4639 = vmatmul.mubr.f32.vlgmr.msra.gmra.mrb[0].mxu0 %v7055_v31  ;;  %5143 = vmatmul.mubr.f32.vlgmr.msra.gmra.mrb[0].mxu1 %v7058_v32 }
  0xc0   : > { %5649 = vmatpush3.bf16.msra.mxu0 %v5646_v28  ;;  %5937 = vmatpush3.bf16.msra.mxu1 %v5646_v28  ;;  %v5686_v28 = vpack.c.bf16 %v665_v27, %v664_v26  ;;  %v1043_v26 = vld [vmem:[#allocation5 + $0x238] sm:$0xff]  ;;  %v7271_v27 = vld [vmem:[%s7029_s11 + $0x50] sm:$0xff] }
  0xc1   : > { %4641 = vmatprep.mubr.f32.mxu0 %v7061_v33  ;;  %5145 = vmatprep.mubr.f32.mxu1 %v7064_v34 }
  0xc2   : > { %5651 = vmatprep.subr.bf16.mxu0 %v5650_v35  ;;  %5939 = vmatprep.subr.bf16.mxu1 %v5650_v35 }
  0xc3   : > { %4642 = vmatmul.mubr.f32.gmra.mrb[2].mxu0 %v7069_v38  ;;  %5146 = vmatmul.mubr.f32.gmra.mrb[2].mxu1 %v7072_v39 }
  0xc4   : > { %5653 = vmatpush3.bf16.msra.mxu0 %v5650_v35  ;;  %5941 = vmatpush3.bf16.msra.mxu1 %v5650_v35  ;;  %v668_v35 = vld [vmem:[#allocation5 + $0x340] sm:$0xff] }
  0xc5   : > { %4644 = vmatprep.mubr.f32.mxu0 %v7077_v40  ;;  %5148 = vmatprep.mubr.f32.mxu1 %v7080_v41 }
  0xc6   : > { %5655 = vmatprep.subr.bf16.mxu0 %v5654_v42  ;;  %5943 = vmatprep.subr.bf16.mxu1 %v5654_v42 }
  0xc7   : > { %4645 = vmatmul.mubr.f32.gmra.mrb[4].mxu0 %v7085_v45  ;;  %5149 = vmatmul.mubr.f32.gmra.mrb[4].mxu1 %v7088_v46 }
  0xc8   : > { %5657 = vmatpush3.bf16.msra.mxu0 %v5654_v42  ;;  %5945 = vmatpush3.bf16.msra.mxu1 %v5654_v42  ;;  %v671_v42 = vld [vmem:[#allocation5 + $0x358] sm:$0xff] }
  0xc9   : > { %4647 = vmatprep.mubr.f32.mxu0 %v7093_v47  ;;  %5151 = vmatprep.mubr.f32.mxu1 %v7096_v48  ;;  %v5698_v43 = vpack.c.bf16 %v671_v42, %v670_v37  ;;  %v7290_v37 = vld [vmem:[%s7029_s11 + $0x170] sm:$0xff]  ;;  %v7295_v42 = vld [vmem:[%s7029_s11 + $0x88] sm:$0xff] }
  0xca   : > { %5659 = vmatprep.subr.bf16.mxu0 %v5658_v49  ;;  %5947 = vmatprep.subr.bf16.mxu1 %v5658_v49 }
  0xcb   : > { %4648 = vmatmul.mubr.f32.gmra.mrb[6].mxu0 %v7101_v52  ;;  %5152 = vmatmul.mubr.f32.gmra.mrb[6].mxu1 %v7104_v53 }
  0xcc   : > { %5661 = vmatpush3.bf16.msra.mxu0 %v5658_v49  ;;  %5949 = vmatpush3.bf16.msra.mxu1 %v5658_v49  ;;  %v673_v49 = vld [vmem:[#allocation5 + $0x368] sm:$0xff] }
  0xcd   : > { %4650 = vmatprep.mubr.f32.mxu0 %v7109_v54  ;;  %5154 = vmatprep.mubr.f32.mxu1 %v7112_v55  ;;  %v5702_v50 = vpack.c.bf16 %v673_v49, %v672_v44  ;;  %v1046_v49 = vld [vmem:[#allocation5 + $0x250] sm:$0xff] }
  0xce   : > { %5663 = vmatprep.subr.bf16.mxu0 %v5662_v56  ;;  %5951 = vmatprep.subr.bf16.mxu1 %v5662_v56 }
  0xcf   : > { %4651 = vmatmul.mubr.f32.gmra.mrb[8].mxu0 %v7117_v59  ;;  %5155 = vmatmul.mubr.f32.gmra.mrb[8].mxu1 %v7120_v60 }
  0xd0   : > { %5665 = vmatpush3.bf16.msra.mxu0 %v5662_v56  ;;  %5953 = vmatpush3.bf16.msra.mxu1 %v5662_v56  ;;  %v675_v56 = vld [vmem:[#allocation5 + $0x378] sm:$0xff] }
  0xd1   : > { %4653 = vmatprep.mubr.f32.mxu0 %v7125_v61  ;;  %5157 = vmatprep.mubr.f32.mxu1 %v7128_v62  ;;  %v5706_v57 = vpack.c.bf16 %v675_v56, %v674_v51  ;;  %v7303_v51 = vld [vmem:[%s7029_s11 + $0x90] sm:$0xff] }
  0xd2   : > { %5667 = vmatprep.subr.bf16.mxu0 %v5666_v63  ;;  %5955 = vmatprep.subr.bf16.mxu1 %v5666_v63  ;;  %v7306_v56 = vld [vmem:[%s7029_s11 + $0x190] sm:$0xff] }
  0xd3   : > { %4654 = vmatmul.mubr.f32.gmra.mrb[10].mxu0 %v7133_v2  ;;  %5158 = vmatmul.mubr.f32.gmra.mrb[10].mxu1 %v7136_v3 }
  0xd4   : > { %5669 = vmatpush3.bf16.msra.mxu0 %v5666_v63  ;;  %5957 = vmatpush3.bf16.msra.mxu1 %v5666_v63  ;;  %v859_v63 = vld [vmem:[#allocation5 + $0x88] sm:$0xff] }
  0xd5   : > { %4656 = vmatprep.mubr.f32.mxu0 %v7141_v4  ;;  %5160 = vmatprep.mubr.f32.mxu1 %v7144_v5  ;;  %v5710_v0 = vpack.c.bf16 %v859_v63, %v858_v58  ;;  %v7314_v58 = vld [vmem:[%s7029_s11 + $0x1a8] sm:$0xff] }
  0xd6   : > { %5671 = vmatprep.subr.bf16.mxu0 %v5670_v6  ;;  %5959 = vmatprep.subr.bf16.mxu1 %v5670_v6 }
  0xd7   : > { %4657 = vmatmul.mubr.f32.gmra.mrb[12].mxu0 %v7149_v11  ;;  %5161 = vmatmul.mubr.f32.gmra.mrb[12].mxu1 %v7152_v12 }
  0xd8   : > { %5673 = vmatpush3.bf16.msra.mxu0 %v5670_v6  ;;  %5961 = vmatpush3.bf16.msra.mxu1 %v5670_v6  ;;  %v861_v6 = vld [vmem:[#allocation5 + $0x98] sm:$0xff] }
  0xd9   : > { %4659 = vmatprep.mubr.f32.mxu0 %v7157_v13  ;;  %5163 = vmatprep.mubr.f32.mxu1 %v7160_v14  ;;  %v5714_v7 = vpack.c.bf16 %v861_v6, %v860_v1  ;;  %v1049_v1 = vld [vmem:[#allocation5 + $0x268] sm:$0xff]  ;;  %v7319_v6 = vld [vmem:[%s7029_s11 + $0xb0] sm:$0xff] }
  0xda   : > { %5675 = vmatprep.subr.bf16.mxu0 %v5674_v15  ;;  %5963 = vmatprep.subr.bf16.mxu1 %v5674_v15 }
  0xdb   : > { %4660 = vmatmul.mubr.f32.gmra.mrb[14].mxu0 %v7165_v18  ;;  %5164 = vmatmul.mubr.f32.gmra.mrb[14].mxu1 %v7168_v19 }
  0xdc   : > { %5677 = vmatpush3.bf16.msra.mxu0 %v5674_v15  ;;  %5965 = vmatpush3.bf16.msra.mxu1 %v5674_v15  ;;  %v863_v15 = vld [vmem:[#allocation5 + $0xa8] sm:$0xff] }
  0xdd   : > { %4694 = vmatprep.mubr.f32.mxu0 %v316_v20  ;;  %5198 = vmatprep.mubr.f32.mxu1 %v7157_v13  ;;  %v7255_v20 = vld [vmem:[%s7029_s11 + $0x30] sm:$0xff] }
  0xde   : > { %5679 = vmatprep.subr.bf16.mxu0 %v5678_v21  ;;  %5967 = vmatprep.subr.bf16.mxu1 %v5678_v21 }
  0xdf   : > { %4695 = vmatmul.mubr.f32.vlgmr.msra.gmra.mrb[0].mxu0 %v317_v24  ;;  %5199 = vmatmul.mubr.f32.vlgmr.msra.gmra.mrb[0].mxu1 %v7165_v18 }
  0xe0   : > { %5681 = vmatpush3.bf16.msra.mxu0 %v5678_v21  ;;  %5969 = vmatpush3.bf16.msra.mxu1 %v5678_v21  ;;  %v7258_v21 = vld [vmem:[%s7029_s11 + $0x130] sm:$0xff] }
  0xe1   : > { %4697 = vmatprep.mubr.f32.mxu0 %v7047_v9  ;;  %5201 = vmatprep.mubr.f32.mxu1 %v7050_v10  ;;  %v5690_v9 = vpack.c.bf16 %v667_v30, %v666_v29  ;;  %v7279_v29 = vld [vmem:[%s7029_s11 + $0x68] sm:$0xff] }
  0xe2   : > { %5683 = vmatprep.subr.bf16.mxu0 %v5682_v25  ;;  %5971 = vmatprep.subr.bf16.mxu1 %v5682_v25  ;;  %v7282_v30 = vld [vmem:[%s7029_s11 + $0x168] sm:$0xff] }
  0xe3   : > { %4698 = vmatmul.mubr.f32.gmra.mrb[2].mxu0 %v7055_v31  ;;  %5202 = vmatmul.mubr.f32.gmra.mrb[2].mxu1 %v7058_v32  ;;  %v5694_v31 = vpack.c.bf16 %v669_v36, %v668_v35  ;;  %v1044_v35 = vld [vmem:[#allocation5 + $0x240] sm:$0xff]  ;;  %v1045_v36 = vld [vmem:[#allocation5 + $0x248] sm:$0xff] }
  0xe4   : > { %5685 = vmatpush3.bf16.msra.mxu0 %v5682_v25  ;;  %5973 = vmatpush3.bf16.msra.mxu1 %v5682_v25  ;;  %v1042_v25 = vld [vmem:[#allocation5 + $0x230] sm:$0xff]  ;;  %v5758_v44 = vpack.c.bf16 %v1045_v36, %v1044_v35  ;;  %v1412_v36 = vld [vmem:[#allocation5 + $0x100] sm:$0xff] }
  0xe5   : > { %4700 = vmatprep.mubr.f32.mxu0 %v7061_v33  ;;  %5204 = vmatprep.mubr.f32.mxu1 %v7064_v34 }
  0xe6   : > { %5687 = vmatprep.subr.bf16.mxu0 %v5686_v28  ;;  %5975 = vmatprep.subr.bf16.mxu1 %v5686_v28 }
  0xe7   : > { %4701 = vmatmul.mubr.f32.gmra.mrb[4].mxu0 %v7069_v38  ;;  %5205 = vmatmul.mubr.f32.gmra.mrb[4].mxu1 %v7072_v39 }
  0xe8   : > { %5689 = vmatpush3.bf16.msra.mxu0 %v5686_v28  ;;  %5977 = vmatpush3.bf16.msra.mxu1 %v5686_v28  ;;  %v7274_v28 = vld [vmem:[%s7029_s11 + $0x150] sm:$0xff] }
  0xe9   : > { %4703 = vmatprep.mubr.f32.mxu0 %v7077_v40  ;;  %5207 = vmatprep.mubr.f32.mxu1 %v7080_v41 }
  0xea   : > { %5691 = vmatprep.subr.bf16.mxu0 %v5690_v9  ;;  %5979 = vmatprep.subr.bf16.mxu1 %v5690_v9 }
  0xeb   : > { %4704 = vmatmul.mubr.f32.gmra.mrb[6].mxu0 %v7085_v45  ;;  %5208 = vmatmul.mubr.f32.gmra.mrb[6].mxu1 %v7088_v46 }
  0xec   : > { %5693 = vmatpush3.bf16.msra.mxu0 %v5690_v9  ;;  %5981 = vmatpush3.bf16.msra.mxu1 %v5690_v9  ;;  %v5754_v9 = vpack.c.bf16 %v1043_v26, %v1042_v25  ;;  %v1228_v25 = vld [vmem:[#allocation5 + $0x3f0] sm:$0xff]  ;;  %v1229_v26 = vld [vmem:[#allocation5 + $0x3f8] sm:$0xff] }
  0xed   : > { %4706 = vmatprep.mubr.f32.mxu0 %v7093_v47  ;;  %5210 = vmatprep.mubr.f32.mxu1 %v7096_v48  ;;  %v5802_v35 = vpack.c.bf16 %v1229_v26, %v1228_v25  ;;  %v1600_v25 = vld [vmem:[#allocation5 + $0x2d0] sm:$0xff]  ;;  %v1601_v26 = vld [vmem:[#allocation5 + $0x2d8] sm:$0xff] }
  0xee   : > { %5695 = vmatprep.subr.bf16.mxu0 %v5694_v31  ;;  %5983 = vmatprep.subr.bf16.mxu1 %v5694_v31 }
  0xef   : > { %4707 = vmatmul.mubr.f32.gmra.mrb[8].mxu0 %v7101_v52  ;;  %5211 = vmatmul.mubr.f32.gmra.mrb[8].mxu1 %v7104_v53 }
  0xf0   : > { %5697 = vmatpush3.bf16.msra.mxu0 %v5694_v31  ;;  %5985 = vmatpush3.bf16.msra.mxu1 %v5694_v31  ;;  %v7287_v31 = vld [vmem:[%s7029_s11 + $0x70] sm:$0xff] }
  0xf1   : > { %4709 = vmatprep.mubr.f32.mxu0 %v7109_v54  ;;  %5213 = vmatprep.mubr.f32.mxu1 %v7112_v55 }
  0xf2   : > { %5699 = vmatprep.subr.bf16.mxu0 %v5698_v43  ;;  %5987 = vmatprep.subr.bf16.mxu1 %v5698_v43 }
  0xf3   : > { %4710 = vmatmul.mubr.f32.gmra.mrb[10].mxu0 %v7117_v59  ;;  %5214 = vmatmul.mubr.f32.gmra.mrb[10].mxu1 %v7120_v60 }
  0xf4   : > { %5701 = vmatpush3.bf16.msra.mxu0 %v5698_v43  ;;  %5989 = vmatpush3.bf16.msra.mxu1 %v5698_v43  ;;  %v7298_v43 = vld [vmem:[%s7029_s11 + $0x188] sm:$0xff] }
  0xf5   : > { %4712 = vmatprep.mubr.f32.mxu0 %v7125_v61  ;;  %5216 = vmatprep.mubr.f32.mxu1 %v7128_v62 }
  0xf6   : > { %5703 = vmatprep.subr.bf16.mxu0 %v5702_v50  ;;  %5991 = vmatprep.subr.bf16.mxu1 %v5702_v50 }
  0xf7   : > { %4713 = vmatmul.mubr.f32.gmra.mrb[12].mxu0 %v7133_v2  ;;  %5217 = vmatmul.mubr.f32.gmra.mrb[12].mxu1 %v7136_v3 }
  0xf8   : > { %5705 = vmatpush3.bf16.msra.mxu0 %v5702_v50  ;;  %5993 = vmatpush3.bf16.msra.mxu1 %v5702_v50  ;;  %v1047_v50 = vld [vmem:[#allocation5 + $0x258] sm:$0xff] }
  0xf9   : > { %4715 = vmatprep.mubr.f32.mxu0 %v7141_v4  ;;  %5219 = vmatprep.mubr.f32.mxu1 %v7144_v5  ;;  %v5762_v63 = vpack.c.bf16 %v1047_v50, %v1046_v49  ;;  %v7392_v49 = vld [vmem:[%s7029_s11 + $0x210] sm:$0xff] }
  0xfa   : > { %5707 = vmatprep.subr.bf16.mxu0 %v5706_v57  ;;  %5995 = vmatprep.subr.bf16.mxu1 %v5706_v57 }
  0xfb   : > { %4716 = vmatmul.mubr.f32.gmra.mrb[14].mxu0 %v7149_v11  ;;  %5220 = vmatmul.mubr.f32.gmra.mrb[14].mxu1 %v7152_v12 }
  0xfc   : > { %5709 = vmatpush3.bf16.msra.mxu0 %v5706_v57  ;;  %5997 = vmatpush3.bf16.msra.mxu1 %v5706_v57  ;;  %v7311_v57 = vld [vmem:[%s7029_s11 + $0xa8] sm:$0xff] }
  0xfd   : > { %4750 = vmatprep.mubr.f32.mxu0 %v7061_v33  ;;  %5254 = vmatprep.mubr.f32.mxu1 %v7064_v34  ;;  %v5718_v33 = vpack.c.bf16 %v863_v15, %v862_v8  ;;  %v864_v34 = vld [vmem:[#allocation5 + $0xb0] sm:$0xff]  ;;  %v7327_v8 = vld [vmem:[%s7029_s11 + $0xc8] sm:$0xff] }
  0xfe   : > { %5711 = vmatprep.subr.bf16.mxu0 %v5710_v0  ;;  %5999 = vmatprep.subr.bf16.mxu1 %v5710_v0  ;;  %v7330_v15 = vld [vmem:[%s7029_s11 + $0x1c8] sm:$0xff] }
  0xff   : > { %4751 = vmatmul.mubr.f32.vlgmr.msra.gmra.mrb[0].mxu0 %v7069_v38  ;;  %5255 = vmatmul.mubr.f32.vlgmr.msra.gmra.mrb[0].mxu1 %v7072_v39  ;;  %v5722_v38 = vpack.c.bf16 %v865_v16, %v864_v34  ;;  %v866_v39 = vld [vmem:[#allocation5 + $0xc0] sm:$0xff]  ;;  %v1050_v34 = vld [vmem:[#allocation5 + $0x270] sm:$0xff]  ;;  %v1051_v16 = vld [vmem:[#allocation5 + $0x278] sm:$0xff] }
 0x100   : > { %5713 = vmatpush3.bf16.msra.mxu0 %v5710_v0  ;;  %6001 = vmatpush3.bf16.msra.mxu1 %v5710_v0  ;;  %v1048_v0 = vld [vmem:[#allocation5 + $0x260] sm:$0xff] }
 0x101   : > { %4753 = vmatprep.mubr.f32.mxu0 %v7077_v40  ;;  %5257 = vmatprep.mubr.f32.mxu1 %v7080_v41  ;;  %v867_v40 = vld [vmem:[#allocation5 + $0xc8] sm:$0xff] }
 0x102   : > { %5715 = vmatprep.subr.bf16.mxu0 %v5714_v7  ;;  %6003 = vmatprep.subr.bf16.mxu1 %v5714_v7  ;;  %v5726_v41 = vpack.c.bf16 %v867_v40, %v866_v39  ;;  %v7338_v39 = vld [vmem:[%s7029_s11 + $0x1d0] sm:$0xff]  ;;  %v7343_v40 = vld [vmem:[%s7029_s11 + $0xe8] sm:$0xff] }
 0x103   : > { %4754 = vmatmul.mubr.f32.gmra.mrb[2].mxu0 %v7085_v45  ;;  %5258 = vmatmul.mubr.f32.gmra.mrb[2].mxu1 %v7088_v46  ;;  %v868_v45 = vld [vmem:[#allocation5 + $0xd0] sm:$0xff]  ;;  %v869_v46 = vld [vmem:[#allocation5 + $0xd8] sm:$0xff] }
 0x104   : > { %5717 = vmatpush3.bf16.msra.mxu0 %v5714_v7  ;;  %6005 = vmatpush3.bf16.msra.mxu1 %v5714_v7  ;;  %v7322_v7 = vld [vmem:[%s7029_s11 + $0x1b0] sm:$0xff] }
 0x105   : > { %4756 = vmatprep.mubr.f32.mxu0 %v7093_v47  ;;  %5260 = vmatprep.mubr.f32.mxu1 %v7096_v48  ;;  %v5730_v47 = vpack.c.bf16 %v869_v46, %v868_v45  ;;  %v870_v48 = vld [vmem:[#allocation5 + $0xe0] sm:$0xff]  ;;  %v5770_v45 = vpack.c.bf16 %v1051_v16, %v1050_v34  ;;  %v1417_v34 = vld [vmem:[#allocation5 + $0x128] sm:$0xff]  ;;  %v1419_v16 = vld [vmem:[#allocation5 + $0x138] sm:$0xff] }
 0x106   : > { %5719 = vmatprep.subr.bf16.mxu0 %v5718_v33  ;;  %6007 = vmatprep.subr.bf16.mxu1 %v5718_v33  ;;  %v1214_v46 = vld [vmem:[#allocation5 + $0x380] sm:$0xff] }
 0x107   : > { %4757 = vmatmul.mubr.f32.gmra.mrb[4].mxu0 %v7101_v52  ;;  %5261 = vmatmul.mubr.f32.gmra.mrb[4].mxu1 %v7104_v53  ;;  %v871_v52 = vld [vmem:[#allocation5 + $0xe8] sm:$0xff] }
 0x108   : > { %5721 = vmatpush3.bf16.msra.mxu0 %v5718_v33  ;;  %6009 = vmatpush3.bf16.msra.mxu1 %v5718_v33  ;;  %v5734_v53 = vpack.c.bf16 %v871_v52, %v870_v48  ;;  %v5766_v33 = vpack.c.bf16 %v1049_v1, %v1048_v0  ;;  %v7351_v48 = vld [vmem:[%s7029_s11 + $0xf0] sm:$0xff]  ;;  %v1415_v0 = vld [vmem:[#allocation5 + $0x118] sm:$0xff] }
 0x109   : > { %4759 = vmatprep.mubr.f32.mxu0 %v7109_v54  ;;  %5263 = vmatprep.mubr.f32.mxu1 %v7112_v55  ;;  %v872_v54 = vld [vmem:[#allocation5 + $0xf0] sm:$0xff]  ;;  %v873_v55 = vld [vmem:[#allocation5 + $0xf8] sm:$0xff] }
 0x10a   : > { %5723 = vmatprep.subr.bf16.mxu0 %v5722_v38  ;;  %6011 = vmatprep.subr.bf16.mxu1 %v5722_v38  ;;  %v7354_v52 = vld [vmem:[%s7029_s11 + $0x1f0] sm:$0xff] }
 0x10b   : > { %4760 = vmatmul.mubr.f32.gmra.mrb[6].mxu0 %v7117_v59  ;;  %5264 = vmatmul.mubr.f32.gmra.mrb[6].mxu1 %v7120_v60  ;;  %v3949_v59 = vld [vmem:[%s7029_s11 + $0x227] sm:$0xff]  ;;  %v5738_v60 = vpack.c.bf16 %v873_v55, %v872_v54  ;;  %v1216_v54 = vld [vmem:[#allocation5 + $0x390] sm:$0xff]  ;;  %v1217_v55 = vld [vmem:[#allocation5 + $0x398] sm:$0xff] }
 0x10c   : > { %5725 = vmatpush3.bf16.msra.mxu0 %v5722_v38  ;;  %6013 = vmatpush3.bf16.msra.mxu1 %v5722_v38  ;;  %v7335_v38 = vld [vmem:[%s7029_s11 + $0xd0] sm:$0xff] }
 0x10d   : > { %4762 = vmatprep.mubr.f32.mxu0 %v7125_v61  ;;  %5266 = vmatprep.mubr.f32.mxu1 %v7128_v62  ;;  %v1036_v61 = vld [vmem:[#allocation5 + $0x200] sm:$0xff]  ;;  %v1037_v62 = vld [vmem:[#allocation5 + $0x208] sm:$0xff] }
 0x10e   : > { %5727 = vmatprep.subr.bf16.mxu0 %v5726_v41  ;;  %6015 = vmatprep.subr.bf16.mxu1 %v5726_v41 }
 0x10f   : > { %4763 = vmatmul.mubr.f32.gmra.mrb[8].mxu0 %v7133_v2  ;;  %5267 = vmatmul.mubr.f32.gmra.mrb[8].mxu1 %v7136_v3  ;;  %v3950_v2 = vld [vmem:[%s7029_s11 + $0x22f] sm:$0xff] }
 0x110   : > { %5729 = vmatpush3.bf16.msra.mxu0 %v5726_v41  ;;  %6017 = vmatpush3.bf16.msra.mxu1 %v5726_v41  ;;  %v837_v3 = vld [vmem:[%s7029_s11 + $0x8] sm:$0xff] }
 0x111   : > { %4765 = vmatprep.mubr.f32.mxu0 %v7141_v4  ;;  %5269 = vmatprep.mubr.f32.mxu1 %v7144_v5  ;;  %v7239_v4 = vld [vmem:[%s7029_s11 + $0x108] sm:$0xff]  ;;  %v5742_v5 = vpack.c.bf16 %v1037_v62, %v1036_v61 }
 0x112   : > { %5731 = vmatprep.subr.bf16.mxu0 %v5730_v47  ;;  %6019 = vmatprep.subr.bf16.mxu1 %v5730_v47  ;;  %v7346_v41 = vld [vmem:[%s7029_s11 + $0x1e8] sm:$0xff] }
 0x113   : > { %4766 = vmatmul.mubr.f32.gmra.mrb[10].mxu0 %v7149_v11  ;;  %5270 = vmatmul.mubr.f32.gmra.mrb[10].mxu1 %v7152_v12  ;;  %v1038_v11 = vld [vmem:[#allocation5 + $0x210] sm:$0xff]  ;;  %v1039_v12 = vld [vmem:[#allocation5 + $0x218] sm:$0xff]  ;;  %v1219_v61 = vld [vmem:[#allocation5 + $0x3a8] sm:$0xff] }
 0x114   : > { %5733 = vmatpush3.bf16.msra.mxu0 %v5730_v47  ;;  %6021 = vmatpush3.bf16.msra.mxu1 %v5730_v47  ;;  %v5746_v17 = vpack.c.bf16 %v1039_v12, %v1038_v11  ;;  %v1215_v47 = vld [vmem:[#allocation5 + $0x388] sm:$0xff]  ;;  %v1222_v11 = vld [vmem:[#allocation5 + $0x3c0] sm:$0xff] }
 0x115   : > { %4768 = vmatprep.mubr.f32.mxu0 %v7157_v13  ;;  %5272 = vmatprep.mubr.f32.mxu1 %v7160_v14  ;;  %v838_v13 = vld [vmem:[%s7029_s11 + $0x10] sm:$0xff]  ;;  %v7248_v14 = vld [vmem:[%s7029_s11 + $0x28] sm:$0xff] }
 0x116   : > { %5735 = vmatprep.subr.bf16.mxu0 %v5734_v53  ;;  %6023 = vmatprep.subr.bf16.mxu1 %v5734_v53  ;;  %v1223_v12 = vld [vmem:[#allocation5 + $0x3c8] sm:$0xff] }
 0x117   : > { %4769 = vmatmul.mubr.f32.gmra.mrb[12].mxu0 %v7165_v18  ;;  %5273 = vmatmul.mubr.f32.gmra.mrb[12].mxu1 %v7168_v19  ;;  %v1040_v18 = vld [vmem:[#allocation5 + $0x220] sm:$0xff]  ;;  %v1041_v19 = vld [vmem:[#allocation5 + $0x228] sm:$0xff] }
 0x118   : > { %5737 = vmatpush3.bf16.msra.mxu0 %v5734_v53  ;;  %6025 = vmatpush3.bf16.msra.mxu1 %v5734_v53  ;;  %v5750_v24 = vpack.c.bf16 %v1041_v19, %v1040_v18  ;;  %v5774_v53 = vpack.c.bf16 %v1215_v47, %v1214_v46  ;;  %v1226_v19 = vld [vmem:[#allocation5 + $0x3e0] sm:$0xff]  ;;  %v7440_v46 = vld [vmem:[%s7029_s11 + $0x29] sm:$0xff] }
 0x119   : > { %4771 = vmatprep.mubr.f32.mxu0 %v7050_v10  ;;  %5275 = vmatprep.mubr.f32.mxu1 %v3949_v59  ;;  %v7244_v10 = vld [vmem:[%s7029_s11 + $0x110] sm:$0xff]  ;;  %v5778_v59 = vpack.c.bf16 %v1217_v55, %v1216_v54 }
 0x11a   : > { %5739 = vmatprep.subr.bf16.mxu0 %v5738_v60  ;;  %6027 = vmatprep.subr.bf16.mxu1 %v5738_v60  ;;  %v7450_v54 = vld [vmem:[%s7029_s11 + $0x131] sm:$0xff]  ;;  %v7455_v55 = vld [vmem:[%s7029_s11 + $0x49] sm:$0xff] }
 0x11b   : > { %4772 = vmatmul.mubr.f32.gmra.mrb[14].mxu0 %v7058_v32  ;;  %5276 = vmatmul.mubr.f32.gmra.mrb[14].mxu1 %v3950_v2  ;;  %v7251_v32 = vld [vmem:[%s7029_s11 + $0x128] sm:$0xff]  ;;  %v1220_v2 = vld [vmem:[#allocation5 + $0x3b0] sm:$0xff] }
 0x11c   : > { %5741 = vmatpush3.bf16.msra.mxu0 %v5738_v60  ;;  %6029 = vmatpush3.bf16.msra.mxu1 %v5738_v60  ;;  %v1218_v60 = vld [vmem:[#allocation5 + $0x3a0] sm:$0xff] }
 0x11d   : > { %4806 = vmatprep.mubr.f32.mxu0 %v837_v3  ;;  %5310 = vmatprep.mubr.f32.mxu1 %v7239_v4  ;;  %v5782_v62 = vpack.c.bf16 %v1219_v61, %v1218_v60  ;;  %v1221_v3 = vld [vmem:[#allocation5 + $0x3b8] sm:$0xff]  ;;  %v1596_v61 = vld [vmem:[#allocation5 + $0x2b0] sm:$0xff] }
 0x11e   : > { %5743 = vmatprep.subr.bf16.mxu0 %v5742_v5  ;;  %6031 = vmatprep.subr.bf16.mxu1 %v5742_v5 }
 0x11f   : > { %4807 = vmatmul.mubr.f32.vlgmr.msra.gmra.mrb[0].mxu0 %v838_v13  ;;  %5311 = vmatmul.mubr.f32.vlgmr.msra.gmra.mrb[0].mxu1 %v7244_v10  ;;  %v5790_v13 = vpack.c.bf16 %v1223_v12, %v1222_v11  ;;  %v7474_v11 = vld [vmem:[%s7029_s11 + $0x169] sm:$0xff] }
 0x120   : > { %5745 = vmatpush3.bf16.msra.mxu0 %v5742_v5  ;;  %6033 = vmatpush3.bf16.msra.mxu1 %v5742_v5  ;;  %v5786_v5 = vpack.c.bf16 %v1221_v3, %v1220_v2  ;;  %v7463_v2 = vld [vmem:[%s7029_s11 + $0x51] sm:$0xff] }
 0x121   : > { %4809 = vmatprep.mubr.f32.mxu0 %v7248_v14  ;;  %5313 = vmatprep.mubr.f32.mxu1 %v7251_v32  ;;  %v7466_v3 = vld [vmem:[%s7029_s11 + $0x151] sm:$0xff] }
 0x122   : > { %5747 = vmatprep.subr.bf16.mxu0 %v5746_v17  ;;  %6035 = vmatprep.subr.bf16.mxu1 %v5746_v17 }
 0x123   : > { %4810 = vmatmul.mubr.f32.gmra.mrb[2].mxu0 %v7255_v20  ;;  %5314 = vmatmul.mubr.f32.gmra.mrb[2].mxu1 %v7258_v21 }
 0x124   : > { %5749 = vmatpush3.bf16.msra.mxu0 %v5746_v17  ;;  %6037 = vmatpush3.bf16.msra.mxu1 %v5746_v17  ;;  %v1225_v17 = vld [vmem:[#allocation5 + $0x3d8] sm:$0xff] }
 0x125   : > { %4812 = vmatprep.mubr.f32.mxu0 %v7263_v22  ;;  %5316 = vmatprep.mubr.f32.mxu1 %v7266_v23 }
 0x126   : > { %5751 = vmatprep.subr.bf16.mxu0 %v5750_v24  ;;  %6039 = vmatprep.subr.bf16.mxu1 %v5750_v24 }
 0x127   : > { %4813 = vmatmul.mubr.f32.gmra.mrb[4].mxu0 %v7271_v27  ;;  %5317 = vmatmul.mubr.f32.gmra.mrb[4].mxu1 %v7274_v28 }
 0x128   : > { %5753 = vmatpush3.bf16.msra.mxu0 %v5750_v24  ;;  %6041 = vmatpush3.bf16.msra.mxu1 %v5750_v24 }
 0x129   : > { %4815 = vmatprep.mubr.f32.mxu0 %v7279_v29  ;;  %5319 = vmatprep.mubr.f32.mxu1 %v7282_v30 }
 0x12a   : > { %5755 = vmatprep.subr.bf16.mxu0 %v5754_v9  ;;  %6043 = vmatprep.subr.bf16.mxu1 %v5754_v9 }
 0x12b   : > { %4816 = vmatmul.mubr.f32.gmra.mrb[6].mxu0 %v7287_v31  ;;  %5320 = vmatmul.mubr.f32.gmra.mrb[6].mxu1 %v7290_v37 }
 0x12c   : > { %5757 = vmatpush3.bf16.msra.mxu0 %v5754_v9  ;;  %6045 = vmatpush3.bf16.msra.mxu1 %v5754_v9  ;;  %v7387_v9 = vld [vmem:[%s7029_s11 + $0x208] sm:$0xff] }
 0x12d   : > { %4818 = vmatprep.mubr.f32.mxu0 %v7295_v42  ;;  %5322 = vmatprep.mubr.f32.mxu1 %v7298_v43 }
 0x12e   : > { %5759 = vmatprep.subr.bf16.mxu0 %v5758_v44  ;;  %6047 = vmatprep.subr.bf16.mxu1 %v5758_v44 }
 0x12f   : > { %4819 = vmatmul.mubr.f32.gmra.mrb[8].mxu0 %v7303_v51  ;;  %5323 = vmatmul.mubr.f32.gmra.mrb[8].mxu1 %v7306_v56 }
 0x130   : > { %5761 = vmatpush3.bf16.msra.mxu0 %v5758_v44  ;;  %6049 = vmatpush3.bf16.msra.mxu1 %v5758_v44  ;;  %v1413_v44 = vld [vmem:[#allocation5 + $0x108] sm:$0xff] }
 0x131   : > { %4821 = vmatprep.mubr.f32.mxu0 %v7311_v57  ;;  %5325 = vmatprep.mubr.f32.mxu1 %v7314_v58  ;;  %v5806_v50 = vpack.c.bf16 %v1413_v44, %v1412_v36  ;;  %v7503_v36 = vld [vmem:[%s7029_s11 + $0xa9] sm:$0xff] }
 0x132   : > { %5763 = vmatprep.subr.bf16.mxu0 %v5762_v63  ;;  %6051 = vmatprep.subr.bf16.mxu1 %v5762_v63  ;;  %v7506_v44 = vld [vmem:[%s7029_s11 + $0x1a9] sm:$0xff] }
 0x133   : > { %4822 = vmatmul.mubr.f32.gmra.mrb[10].mxu0 %v7319_v6  ;;  %5326 = vmatmul.mubr.f32.gmra.mrb[10].mxu1 %v7322_v7 }
 0x134   : > { %5765 = vmatpush3.bf16.msra.mxu0 %v5762_v63  ;;  %6053 = vmatpush3.bf16.msra.mxu1 %v5762_v63  ;;  %v1414_v63 = vld [vmem:[#allocation5 + $0x110] sm:$0xff] }
 0x135   : > { %4824 = vmatprep.mubr.f32.mxu0 %v7327_v8  ;;  %5328 = vmatprep.mubr.f32.mxu1 %v7330_v15  ;;  %v5810_v1 = vpack.c.bf16 %v1415_v0, %v1414_v63  ;;  %v1603_v63 = vld [vmem:[#allocation5 + $0x2e8] sm:$0xff]  ;;  %v7511_v0 = vld [vmem:[%s7029_s11 + $0xb1] sm:$0xff] }
 0x136   : > { %5767 = vmatprep.subr.bf16.mxu0 %v5766_v33  ;;  %6055 = vmatprep.subr.bf16.mxu1 %v5766_v33 }
 0x137   : > { %4825 = vmatmul.mubr.f32.gmra.mrb[12].mxu0 %v7335_v38  ;;  %5329 = vmatmul.mubr.f32.gmra.mrb[12].mxu1 %v7338_v39 }
 0x138   : > { %5769 = vmatpush3.bf16.msra.mxu0 %v5766_v33  ;;  %6057 = vmatpush3.bf16.msra.mxu1 %v5766_v33  ;;  %v1416_v33 = vld [vmem:[#allocation5 + $0x120] sm:$0xff] }
 0x139   : > { %4827 = vmatprep.mubr.f32.mxu0 %v7343_v40  ;;  %5331 = vmatprep.mubr.f32.mxu1 %v7346_v41 }
 0x13a   : > { %5771 = vmatprep.subr.bf16.mxu0 %v5770_v45  ;;  %6059 = vmatprep.subr.bf16.mxu1 %v5770_v45 }
 0x13b   : > { %4828 = vmatmul.mubr.f32.gmra.mrb[14].mxu0 %v7351_v48  ;;  %5332 = vmatmul.mubr.f32.gmra.mrb[14].mxu1 %v7354_v52 }
 0x13c   : > { %5773 = vmatpush3.bf16.msra.mxu0 %v5770_v45  ;;  %6061 = vmatpush3.bf16.msra.mxu1 %v5770_v45  ;;  %v1392_v45 = vld [vmem:[%s7029_s11 + $0x11] sm:$0xff] }
 0x13d   : > { %4862 = vmatprep.mubr.f32.mxu0 %v7248_v14  ;;  %5366 = vmatprep.mubr.f32.mxu1 %v7251_v32  ;;  %v1224_v14 = vld [vmem:[#allocation5 + $0x3d0] sm:$0xff] }
 0x13e   : > { %5775 = vmatprep.subr.bf16.mxu0 %v5774_v53  ;;  %6063 = vmatprep.subr.bf16.mxu1 %v5774_v53  ;;  %v5794_v18 = vpack.c.bf16 %v1225_v17, %v1224_v14  ;;  %v1599_v14 = vld [vmem:[#allocation5 + $0x2c8] sm:$0xff]  ;;  %v7479_v17 = vld [vmem:[%s7029_s11 + $0x71] sm:$0xff] }
 0x13f   : > { %4863 = vmatmul.mubr.f32.vlgmr.msra.gmra.mrb[0].mxu0 %v7255_v20  ;;  %5367 = vmatmul.mubr.f32.vlgmr.msra.gmra.mrb[0].mxu1 %v7258_v21  ;;  %v1227_v20 = vld [vmem:[#allocation5 + $0x3e8] sm:$0xff] }
 0x140   : > { %5777 = vmatpush3.bf16.msra.mxu0 %v5774_v53  ;;  %6065 = vmatpush3.bf16.msra.mxu1 %v5774_v53  ;;  %v5798_v24 = vpack.c.bf16 %v1227_v20, %v1226_v19  ;;  %v7447_v53 = vld [vmem:[%s7029_s11 + $0x31] sm:$0xff]  ;;  %v7487_v19 = vld [vmem:[%s7029_s11 + $0x89] sm:$0xff] }
 0x141   : > { %4865 = vmatprep.mubr.f32.mxu0 %v7263_v22  ;;  %5369 = vmatprep.mubr.f32.mxu1 %v7266_v23  ;;  %v7490_v20 = vld [vmem:[%s7029_s11 + $0x189] sm:$0xff] }
 0x142   : > { %5779 = vmatprep.subr.bf16.mxu0 %v5778_v59  ;;  %6067 = vmatprep.subr.bf16.mxu1 %v5778_v59 }
 0x143   : > { %4866 = vmatmul.mubr.f32.gmra.mrb[2].mxu0 %v7271_v27  ;;  %5370 = vmatmul.mubr.f32.gmra.mrb[2].mxu1 %v7274_v28 }
 0x144   : > { %5781 = vmatpush3.bf16.msra.mxu0 %v5778_v59  ;;  %6069 = vmatpush3.bf16.msra.mxu1 %v5778_v59  ;;  %v7458_v59 = vld [vmem:[%s7029_s11 + $0x149] sm:$0xff] }
 0x145   : > { %4868 = vmatprep.mubr.f32.mxu0 %v7279_v29  ;;  %5372 = vmatprep.mubr.f32.mxu1 %v7282_v30 }
 0x146   : > { %5783 = vmatprep.subr.bf16.mxu0 %v5782_v62  ;;  %6071 = vmatprep.subr.bf16.mxu1 %v5782_v62 }
 0x147   : > { %4869 = vmatmul.mubr.f32.gmra.mrb[4].mxu0 %v7287_v31  ;;  %5373 = vmatmul.mubr.f32.gmra.mrb[4].mxu1 %v7290_v37 }
 0x148   : > { %5785 = vmatpush3.bf16.msra.mxu0 %v5782_v62  ;;  %6073 = vmatpush3.bf16.msra.mxu1 %v5782_v62  ;;  %v1597_v62 = vld [vmem:[#allocation5 + $0x2b8] sm:$0xff] }
 0x149   : > { %4871 = vmatprep.mubr.f32.mxu0 %v7295_v42  ;;  %5375 = vmatprep.mubr.f32.mxu1 %v7298_v43  ;;  %v5850_v12 = vpack.c.bf16 %v1597_v62, %v1596_v61  ;;  %v1782_v61 = vld [vmem:[#allocation5 + $0x470] sm:$0xff]  ;;  %v1783_v62 = vld [vmem:[#allocation5 + $0x478] sm:$0xff] }
 0x14a   : > { %5787 = vmatprep.subr.bf16.mxu0 %v5786_v5  ;;  %6075 = vmatprep.subr.bf16.mxu1 %v5786_v5 }
 0x14b   : > { %4872 = vmatmul.mubr.f32.gmra.mrb[6].mxu0 %v7303_v51  ;;  %5376 = vmatmul.mubr.f32.gmra.mrb[6].mxu1 %v7306_v56 }
 0x14c   : > { %5789 = vmatpush3.bf16.msra.mxu0 %v5786_v5  ;;  %6077 = vmatpush3.bf16.msra.mxu1 %v5786_v5  ;;  %v7471_v5 = vld [vmem:[%s7029_s11 + $0x69] sm:$0xff] }
 0x14d   : > { %4874 = vmatprep.mubr.f32.mxu0 %v7311_v57  ;;  %5378 = vmatprep.mubr.f32.mxu1 %v7314_v58 }
 0x14e   : > { %5791 = vmatprep.subr.bf16.mxu0 %v5790_v13  ;;  %6079 = vmatprep.subr.bf16.mxu1 %v5790_v13 }
 0x14f   : > { %4875 = vmatmul.mubr.f32.gmra.mrb[8].mxu0 %v7319_v6  ;;  %5379 = vmatmul.mubr.f32.gmra.mrb[8].mxu1 %v7322_v7 }
 0x150   : > { %5793 = vmatpush3.bf16.msra.mxu0 %v5790_v13  ;;  %6081 = vmatpush3.bf16.msra.mxu1 %v5790_v13  ;;  %v1598_v13 = vld [vmem:[#allocation5 + $0x2c0] sm:$0xff] }
 0x151   : > { %4877 = vmatprep.mubr.f32.mxu0 %v7327_v8  ;;  %5381 = vmatprep.mubr.f32.mxu1 %v7330_v15 }
 0x152   : > { %5795 = vmatprep.subr.bf16.mxu0 %v5794_v18  ;;  %6083 = vmatprep.subr.bf16.mxu1 %v5794_v18 }
 0x153   : > { %4878 = vmatmul.mubr.f32.gmra.mrb[10].mxu0 %v7335_v38  ;;  %5382 = vmatmul.mubr.f32.gmra.mrb[10].mxu1 %v7338_v39 }
 0x154   : > { %5797 = vmatpush3.bf16.msra.mxu0 %v5794_v18  ;;  %6085 = vmatpush3.bf16.msra.mxu1 %v5794_v18  ;;  %v7482_v18 = vld [vmem:[%s7029_s11 + $0x171] sm:$0xff] }
 0x155   : > { %4880 = vmatprep.mubr.f32.mxu0 %v7343_v40  ;;  %5384 = vmatprep.mubr.f32.mxu1 %v7346_v41 }
 0x156   : > { %5799 = vmatprep.subr.bf16.mxu0 %v5798_v24  ;;  %6087 = vmatprep.subr.bf16.mxu1 %v5798_v24 }
 0x157   : > { %4881 = vmatmul.mubr.f32.gmra.mrb[12].mxu0 %v7351_v48  ;;  %5385 = vmatmul.mubr.f32.gmra.mrb[12].mxu1 %v7354_v52 }
 0x158   : > { %5801 = vmatpush3.bf16.msra.mxu0 %v5798_v24  ;;  %6089 = vmatpush3.bf16.msra.mxu1 %v5798_v24  ;;  %v5854_v24 = vpack.c.bf16 %v1599_v14, %v1598_v13  ;;  %v5898_v13 = vpack.c.bf16 %v1783_v62, %v1782_v61  ;;  %v3988_v14 = vld [vmem:[%s7029_s11 + $0x211] sm:$0xff] }
 0x159   : > { %4883 = vmatprep.mubr.f32.mxu0 %v7239_v4  ;;  %5387 = vmatprep.mubr.f32.mxu1 %v7387_v9  ;;  %v3921_v62 = vld [vmem:[%s7040_s1 + $0x90] sm:$0xff] }
 0x15a   : > { %5803 = vmatprep.subr.bf16.mxu0 %v5802_v35  ;;  %6091 = vmatprep.subr.bf16.mxu1 %v5802_v35 }
 0x15b   : > { %4884 = vmatmul.mubr.f32.gmra.mrb[14].mxu0 %v7244_v10  ;;  %5388 = vmatmul.mubr.f32.gmra.mrb[14].mxu1 %v7392_v49 }
 0x15c   : > { %5805 = vmatpush3.bf16.msra.mxu0 %v5802_v35  ;;  %6093 = vmatpush3.bf16.msra.mxu1 %v5802_v35  ;;  %v7498_v35 = vld [vmem:[%s7029_s11 + $0x191] sm:$0xff] }
 0x15d   : > { %4918 = vmatprep.mubr.f32.mxu0 %v7263_v22  ;;  %5422 = vmatprep.mubr.f32.mxu1 %v7266_v23  ;;  %v5814_v22 = vpack.c.bf16 %v1417_v34, %v1416_v33  ;;  %v1418_v23 = vld [vmem:[#allocation5 + $0x130] sm:$0xff] }
 0x15e   : > { %5807 = vmatprep.subr.bf16.mxu0 %v5806_v50  ;;  %6095 = vmatprep.subr.bf16.mxu1 %v5806_v50  ;;  %v7519_v33 = vld [vmem:[%s7029_s11 + $0xc9] sm:$0xff] }
 0x15f   : > { %4919 = vmatmul.mubr.f32.vlgmr.msra.gmra.mrb[0].mxu0 %v7271_v27  ;;  %5423 = vmatmul.mubr.f32.vlgmr.msra.gmra.mrb[0].mxu1 %v7274_v28  ;;  %v5818_v27 = vpack.c.bf16 %v1419_v16, %v1418_v23  ;;  %v1420_v28 = vld [vmem:[#allocation5 + $0x140] sm:$0xff]  ;;  %v7522_v34 = vld [vmem:[%s7029_s11 + $0x1c9] sm:$0xff]  ;;  %v1605_v16 = vld [vmem:[#allocation5 + $0x2f8] sm:$0xff] }
 0x160   : > { %5809 = vmatpush3.bf16.msra.mxu0 %v5806_v50  ;;  %6097 = vmatpush3.bf16.msra.mxu1 %v5806_v50  ;;  %v1602_v50 = vld [vmem:[#allocation5 + $0x2e0] sm:$0xff]  ;;  %v1604_v23 = vld [vmem:[#allocation5 + $0x2f0] sm:$0xff] }
 0x161   : > { %4921 = vmatprep.mubr.f32.mxu0 %v7279_v29  ;;  %5425 = vmatprep.mubr.f32.mxu1 %v7282_v30  ;;  %v1421_v29 = vld [vmem:[#allocation5 + $0x148] sm:$0xff] }
 0x162   : > { %5811 = vmatprep.subr.bf16.mxu0 %v5810_v1  ;;  %6099 = vmatprep.subr.bf16.mxu1 %v5810_v1  ;;  %v5822_v30 = vpack.c.bf16 %v1421_v29, %v1420_v28  ;;  %v7530_v28 = vld [vmem:[%s7029_s11 + $0x1d1] sm:$0xff]  ;;  %v7535_v29 = vld [vmem:[%s7029_s11 + $0xe9] sm:$0xff] }
 0x163   : > { %4922 = vmatmul.mubr.f32.gmra.mrb[2].mxu0 %v7287_v31  ;;  %5426 = vmatmul.mubr.f32.gmra.mrb[2].mxu1 %v7290_v37  ;;  %v1422_v31 = vld [vmem:[#allocation5 + $0x150] sm:$0xff]  ;;  %v1423_v37 = vld [vmem:[#allocation5 + $0x158] sm:$0xff] }
 0x164   : > { %5813 = vmatpush3.bf16.msra.mxu0 %v5810_v1  ;;  %6101 = vmatpush3.bf16.msra.mxu1 %v5810_v1  ;;  %v7514_v1 = vld [vmem:[%s7029_s11 + $0x1b1] sm:$0xff] }
 0x165   : > { %4924 = vmatprep.mubr.f32.mxu0 %v7295_v42  ;;  %5428 = vmatprep.mubr.f32.mxu1 %v7298_v43  ;;  %v5826_v42 = vpack.c.bf16 %v1423_v37, %v1422_v31  ;;  %v1424_v43 = vld [vmem:[#allocation5 + $0x160] sm:$0xff]  ;;  %v5866_v31 = vpack.c.bf16 %v1605_v16, %v1604_v23  ;;  %v3993_v16 = vld [vmem:[%s7040_s1 + $0x148] sm:$0xff] }
 0x166   : > { %5815 = vmatprep.subr.bf16.mxu0 %v5814_v22  ;;  %6103 = vmatprep.subr.bf16.mxu1 %v5814_v22  ;;  %v1768_v37 = vld [vmem:[#allocation5 + $0x400] sm:$0xff] }
 0x167   : > { %4925 = vmatmul.mubr.f32.gmra.mrb[4].mxu0 %v7303_v51  ;;  %5429 = vmatmul.mubr.f32.gmra.mrb[4].mxu1 %v7306_v56  ;;  %v1425_v51 = vld [vmem:[#allocation5 + $0x168] sm:$0xff] }
 0x168   : > { %5817 = vmatpush3.bf16.msra.mxu0 %v5814_v22  ;;  %6105 = vmatpush3.bf16.msra.mxu1 %v5814_v22  ;;  %v5830_v56 = vpack.c.bf16 %v1425_v51, %v1424_v43  ;;  %v5862_v22 = vpack.c.bf16 %v1603_v63, %v1602_v50  ;;  %v7543_v43 = vld [vmem:[%s7029_s11 + $0xf1] sm:$0xff] }
 0x169   : > { %4927 = vmatprep.mubr.f32.mxu0 %v7311_v57  ;;  %5431 = vmatprep.mubr.f32.mxu1 %v7314_v58  ;;  %v1426_v57 = vld [vmem:[#allocation5 + $0x170] sm:$0xff]  ;;  %v1427_v58 = vld [vmem:[#allocation5 + $0x178] sm:$0xff] }
 0x16a   : > { %5819 = vmatprep.subr.bf16.mxu0 %v5818_v27  ;;  %6107 = vmatprep.subr.bf16.mxu1 %v5818_v27  ;;  %v7546_v51 = vld [vmem:[%s7029_s11 + $0x1f1] sm:$0xff] }
 0x16b   : > { %4928 = vmatmul.mubr.f32.gmra.mrb[6].mxu0 %v7319_v6  ;;  %5432 = vmatmul.mubr.f32.gmra.mrb[6].mxu1 %v7322_v7  ;;  %v3969_v6 = vld [vmem:[%s7029_s11 + $0x228] sm:$0xff]  ;;  %v5834_v7 = vpack.c.bf16 %v1427_v58, %v1426_v57  ;;  %v1770_v57 = vld [vmem:[#allocation5 + $0x410] sm:$0xff]  ;;  %v1771_v58 = vld [vmem:[#allocation5 + $0x418] sm:$0xff] }
 0x16c   : > { %5821 = vmatpush3.bf16.msra.mxu0 %v5818_v27  ;;  %6109 = vmatpush3.bf16.msra.mxu1 %v5818_v27  ;;  %v7527_v27 = vld [vmem:[%s7029_s11 + $0xd1] sm:$0xff] }
 0x16d   : > { %4930 = vmatprep.mubr.f32.mxu0 %v7327_v8  ;;  %5434 = vmatprep.mubr.f32.mxu1 %v7330_v15  ;;  %v1590_v8 = vld [vmem:[#allocation5 + $0x280] sm:$0xff]  ;;  %v1591_v15 = vld [vmem:[#allocation5 + $0x288] sm:$0xff]  ;;  %v3994_v50 = vld [vmem:[%s7040_s1 + $0x150] sm:$0xff] }
 0x16e   : > { %5823 = vmatprep.subr.bf16.mxu0 %v5822_v30  ;;  %6111 = vmatprep.subr.bf16.mxu1 %v5822_v30 }
 0x16f   : > { %4931 = vmatmul.mubr.f32.gmra.mrb[8].mxu0 %v7335_v38  ;;  %5435 = vmatmul.mubr.f32.gmra.mrb[8].mxu1 %v7338_v39  ;;  %v3970_v38 = vld [vmem:[%s7029_s11 + $0x230] sm:$0xff] }
 0x170   : > { %5825 = vmatpush3.bf16.msra.mxu0 %v5822_v30  ;;  %6113 = vmatpush3.bf16.msra.mxu1 %v5822_v30  ;;  %v7431_v39 = vld [vmem:[%s7029_s11 + $0x109] sm:$0xff] }
 0x171   : > { %4933 = vmatprep.mubr.f32.mxu0 %v7343_v40  ;;  %5437 = vmatprep.mubr.f32.mxu1 %v7346_v41  ;;  %v1592_v40 = vld [vmem:[#allocation5 + $0x290] sm:$0xff]  ;;  %v1593_v41 = vld [vmem:[#allocation5 + $0x298] sm:$0xff] }
 0x172   : > { %5827 = vmatprep.subr.bf16.mxu0 %v5826_v42  ;;  %6115 = vmatprep.subr.bf16.mxu1 %v5826_v42  ;;  %v5842_v47 = vpack.c.bf16 %v1593_v41, %v1592_v40  ;;  %v7538_v30 = vld [vmem:[%s7029_s11 + $0x1e9] sm:$0xff]  ;;  %v1776_v40 = vld [vmem:[#allocation5 + $0x440] sm:$0xff] }
 0x173   : > { %4934 = vmatmul.mubr.f32.gmra.mrb[10].mxu0 %v7351_v48  ;;  %5438 = vmatmul.mubr.f32.gmra.mrb[10].mxu1 %v7354_v52  ;;  %v1594_v48 = vld [vmem:[#allocation5 + $0x2a0] sm:$0xff]  ;;  %v1595_v52 = vld [vmem:[#allocation5 + $0x2a8] sm:$0xff] }
 0x174   : > { %5829 = vmatpush3.bf16.msra.mxu0 %v5826_v42  ;;  %6117 = vmatpush3.bf16.msra.mxu1 %v5826_v42  ;;  %v5846_v60 = vpack.c.bf16 %v1595_v52, %v1594_v48  ;;  %v1769_v42 = vld [vmem:[#allocation5 + $0x408] sm:$0xff]  ;;  %v1780_v52 = vld [vmem:[#allocation5 + $0x460] sm:$0xff] }
 0x175   : > { %4936 = vmatprep.mubr.f32.mxu0 %v7239_v4  ;;  %5440 = vmatprep.mubr.f32.mxu1 %v7387_v9  ;;  %v1391_v4 = vld [vmem:[%s7029_s11 + $0x9] sm:$0xff]  ;;  %v7495_v9 = vld [vmem:[%s7029_s11 + $0x91] sm:$0xff] }
 0x176   : > { %5831 = vmatprep.subr.bf16.mxu0 %v5830_v56  ;;  %6119 = vmatprep.subr.bf16.mxu1 %v5830_v56  ;;  %v1777_v41 = vld [vmem:[#allocation5 + $0x448] sm:$0xff] }
 0x177   : > { %4937 = vmatmul.mubr.f32.gmra.mrb[12].mxu0 %v7244_v10  ;;  %5441 = vmatmul.mubr.f32.gmra.mrb[12].mxu1 %v7392_v49  ;;  %v5838_v10 = vpack.c.bf16 %v1591_v15, %v1590_v8  ;;  %v5858_v49 = vpack.c.bf16 %v1601_v26, %v1600_v25  ;;  %v1773_v8 = vld [vmem:[#allocation5 + $0x428] sm:$0xff] }
 0x178   : > { %5833 = vmatpush3.bf16.msra.mxu0 %v5830_v56  ;;  %6121 = vmatpush3.bf16.msra.mxu1 %v5830_v56  ;;  %v5870_v56 = vpack.c.bf16 %v1769_v42, %v1768_v37 }
 0x179   : > { %4939 = vmatprep.mubr.f32.mxu0 %v7251_v32  ;;  %5443 = vmatprep.mubr.f32.mxu1 %v3969_v6  ;;  %v7436_v32 = vld [vmem:[%s7029_s11 + $0x111] sm:$0xff]  ;;  %v5874_v6 = vpack.c.bf16 %v1771_v58, %v1770_v57 }
 0x17a   : > { %5835 = vmatprep.subr.bf16.mxu0 %v5834_v7  ;;  %6123 = vmatprep.subr.bf16.mxu1 %v5834_v7  ;;  %v3996_v58 = vld [vmem:[%s7040_s1 + $0x170] sm:$0xff] }
 0x17b   : > { %4940 = vmatmul.mubr.f32.gmra.mrb[14].mxu0 %v7258_v21  ;;  %5444 = vmatmul.mubr.f32.gmra.mrb[14].mxu1 %v3970_v38  ;;  %v7443_v21 = vld [vmem:[%s7029_s11 + $0x129] sm:$0xff] }
 0x17c   : > { %5837 = vmatpush3.bf16.msra.mxu0 %v5834_v7  ;;  %6125 = vmatpush3.bf16.msra.mxu1 %v5834_v7  ;;  %v1772_v7 = vld [vmem:[#allocation5 + $0x420] sm:$0xff]  ;;  %v1774_v38 = vld [vmem:[#allocation5 + $0x430] sm:$0xff] }
 0x17d   : > { %4974 = vmatprep.mubr.f32.mxu0 %v1391_v4  ;;  %5478 = vmatprep.mubr.f32.mxu1 %v7431_v39  ;;  %v5878_v15 = vpack.c.bf16 %v1773_v8, %v1772_v7  ;;  %v1775_v4 = vld [vmem:[#allocation5 + $0x438] sm:$0xff] }
 0x17e   : > { %5839 = vmatprep.subr.bf16.mxu0 %v5838_v10  ;;  %6127 = vmatprep.subr.bf16.mxu1 %v5838_v10 }
 0x17f   : > { %4975 = vmatmul.mubr.f32.vlgmr.msra.gmra.mrb[0].mxu0 %v1392_v45  ;;  %5479 = vmatmul.mubr.f32.vlgmr.msra.gmra.mrb[0].mxu1 %v7436_v32  ;;  %v5886_v45 = vpack.c.bf16 %v1777_v41, %v1776_v40  ;;  %v3995_v40 = vld [vmem:[%s7040_s1 + $0x168] sm:$0xff] }
 0x180   : > { %5841 = vmatpush3.bf16.msra.mxu0 %v5838_v10  ;;  %6129 = vmatpush3.bf16.msra.mxu1 %v5838_v10  ;;  %v5882_v10 = vpack.c.bf16 %v1775_v4, %v1774_v38  ;;  %v3918_v4 = vld [vmem:[%s7040_s1 + $0x68] sm:$0xff] }
 0x181   : > { %4977 = vmatprep.mubr.f32.mxu0 %v7440_v46  ;;  %5481 = vmatprep.mubr.f32.mxu1 %v7443_v21 }
 0x182   : > { %5843 = vmatprep.subr.bf16.mxu0 %v5842_v47  ;;  %6131 = vmatprep.subr.bf16.mxu1 %v5842_v47 }
 0x183   : > { %4978 = vmatmul.mubr.f32.gmra.mrb[2].mxu0 %v7447_v53  ;;  %5482 = vmatmul.mubr.f32.gmra.mrb[2].mxu1 %v7450_v54 }
 0x184   : > { %5845 = vmatpush3.bf16.msra.mxu0 %v5842_v47  ;;  %6133 = vmatpush3.bf16.msra.mxu1 %v5842_v47  ;;  %v1779_v47 = vld [vmem:[#allocation5 + $0x458] sm:$0xff] }
 0x185   : > { %4980 = vmatprep.mubr.f32.mxu0 %v7455_v55  ;;  %5484 = vmatprep.mubr.f32.mxu1 %v7458_v59 }
 0x186   : > { %5847 = vmatprep.subr.bf16.mxu0 %v5846_v60  ;;  %6135 = vmatprep.subr.bf16.mxu1 %v5846_v60 }
 0x187   : > { %4981 = vmatmul.mubr.f32.gmra.mrb[4].mxu0 %v7463_v2  ;;  %5485 = vmatmul.mubr.f32.gmra.mrb[4].mxu1 %v7466_v3 }
 0x188   : > { %5849 = vmatpush3.bf16.msra.mxu0 %v5846_v60  ;;  %6137 = vmatpush3.bf16.msra.mxu1 %v5846_v60 }
 0x189   : > { %4983 = vmatprep.mubr.f32.mxu0 %v7471_v5  ;;  %5487 = vmatprep.mubr.f32.mxu1 %v7474_v11 }
 0x18a   : > { %5851 = vmatprep.subr.bf16.mxu0 %v5850_v12  ;;  %6139 = vmatprep.subr.bf16.mxu1 %v5850_v12 }
 0x18b   : > { %4984 = vmatmul.mubr.f32.gmra.mrb[6].mxu0 %v7479_v17  ;;  %5488 = vmatmul.mubr.f32.gmra.mrb[6].mxu1 %v7482_v18 }
 0x18c   : > { %5853 = vmatpush3.bf16.msra.mxu0 %v5850_v12  ;;  %6141 = vmatpush3.bf16.msra.mxu1 %v5850_v12  ;;  %v3987_v12 = vld [vmem:[%s7029_s11 + $0x209] sm:$0xff] }
 0x18d   : > { %4986 = vmatprep.mubr.f32.mxu0 %v7487_v19  ;;  %5490 = vmatprep.mubr.f32.mxu1 %v7490_v20 }
 0x18e   : > { %5855 = vmatprep.subr.bf16.mxu0 %v5854_v24  ;;  %6143 = vmatprep.subr.bf16.mxu1 %v5854_v24 }
 0x18f   : > { %4987 = vmatmul.mubr.f32.gmra.mrb[8].mxu0 %v7495_v9  ;;  %5491 = vmatmul.mubr.f32.gmra.mrb[8].mxu1 %v7498_v35 }
 0x190   : > { %5857 = vmatpush3.bf16.msra.mxu0 %v5854_v24  ;;  %6145 = vmatpush3.bf16.msra.mxu1 %v5854_v24 }
 0x191   : > { %4989 = vmatprep.mubr.f32.mxu0 %v7503_v36  ;;  %5493 = vmatprep.mubr.f32.mxu1 %v7506_v44 }
 0x192   : > { %5859 = vmatprep.subr.bf16.mxu0 %v5858_v49  ;;  %6147 = vmatprep.subr.bf16.mxu1 %v5858_v49 }
 0x193   : > { %4990 = vmatmul.mubr.f32.gmra.mrb[10].mxu0 %v7511_v0  ;;  %5494 = vmatmul.mubr.f32.gmra.mrb[10].mxu1 %v7514_v1 }
 0x194   : > { %5861 = vmatpush3.bf16.msra.mxu0 %v5858_v49  ;;  %6149 = vmatpush3.bf16.msra.mxu1 %v5858_v49 }
 0x195   : > { %4992 = vmatprep.mubr.f32.mxu0 %v7519_v33  ;;  %5496 = vmatprep.mubr.f32.mxu1 %v7522_v34 }
 0x196   : > { %5863 = vmatprep.subr.bf16.mxu0 %v5862_v22  ;;  %6151 = vmatprep.subr.bf16.mxu1 %v5862_v22 }
 0x197   : > { %4993 = vmatmul.mubr.f32.gmra.mrb[12].mxu0 %v7527_v27  ;;  %5497 = vmatmul.mubr.f32.gmra.mrb[12].mxu1 %v7530_v28 }
 0x198   : > { %5865 = vmatpush3.bf16.msra.mxu0 %v5862_v22  ;;  %6153 = vmatpush3.bf16.msra.mxu1 %v5862_v22  ;;  %v3916_v22 = vld [vmem:[%s7040_s1 + $0x48] sm:$0xff] }
 0x199   : > { %4995 = vmatprep.mubr.f32.mxu0 %v7535_v29  ;;  %5499 = vmatprep.mubr.f32.mxu1 %v7538_v30 }
 0x19a   : > { %5867 = vmatprep.subr.bf16.mxu0 %v5866_v31  ;;  %6155 = vmatprep.subr.bf16.mxu1 %v5866_v31 }
 0x19b   : > { %4996 = vmatmul.mubr.f32.gmra.mrb[14].mxu0 %v7543_v43  ;;  %5500 = vmatmul.mubr.f32.gmra.mrb[14].mxu1 %v7546_v51 }
 0x19c   : > { %5869 = vmatpush3.bf16.msra.mxu0 %v5866_v31  ;;  %6157 = vmatpush3.bf16.msra.mxu1 %v5866_v31 }
 0x19d   : > { %5030 = vmatprep.mubr.f32.mxu0 %v7440_v46  ;;  %5534 = vmatprep.mubr.f32.mxu1 %v7443_v21  ;;  %v1778_v46 = vld [vmem:[#allocation5 + $0x450] sm:$0xff] }
 0x19e   : > { %5871 = vmatprep.subr.bf16.mxu0 %v5870_v56  ;;  %6159 = vmatprep.subr.bf16.mxu1 %v5870_v56  ;;  %v5890_v48 = vpack.c.bf16 %v1779_v47, %v1778_v46 }
 0x19f   : > { %5031 = vmatmul.mubr.f32.vlgmr.msra.gmra.mrb[0].mxu0 %v7447_v53  ;;  %5535 = vmatmul.mubr.f32.vlgmr.msra.gmra.mrb[0].mxu1 %v7450_v54  ;;  %v1781_v53 = vld [vmem:[#allocation5 + $0x468] sm:$0xff] }
 0x1a0   : > { %5873 = vmatpush3.bf16.msra.mxu0 %v5870_v56  ;;  %6161 = vmatpush3.bf16.msra.mxu1 %v5870_v56  ;;  %v5894_v60 = vpack.c.bf16 %v1781_v53, %v1780_v52  ;;  %v3919_v56 = vld [vmem:[%s7040_s1 + $0x70] sm:$0xff] }
 0x1a1   : > { %5033 = vmatprep.mubr.f32.mxu0 %v7455_v55  ;;  %5537 = vmatprep.mubr.f32.mxu1 %v7458_v59 }
 0x1a2   : > { %5875 = vmatprep.subr.bf16.mxu0 %v5874_v6  ;;  %6163 = vmatprep.subr.bf16.mxu1 %v5874_v6 }
 0x1a3   : > { %5034 = vmatmul.mubr.f32.gmra.mrb[2].mxu0 %v7463_v2  ;;  %5538 = vmatmul.mubr.f32.gmra.mrb[2].mxu1 %v7466_v3 }
 0x1a4   : > { %5877 = vmatpush3.bf16.msra.mxu0 %v5874_v6  ;;  %6165 = vmatpush3.bf16.msra.mxu1 %v5874_v6 }
 0x1a5   : > { %5036 = vmatprep.mubr.f32.mxu0 %v7471_v5  ;;  %5540 = vmatprep.mubr.f32.mxu1 %v7474_v11 }
 0x1a6   : > { %5879 = vmatprep.subr.bf16.mxu0 %v5878_v15  ;;  %6167 = vmatprep.subr.bf16.mxu1 %v5878_v15 }
 0x1a7   : > { %5037 = vmatmul.mubr.f32.gmra.mrb[4].mxu0 %v7479_v17  ;;  %5541 = vmatmul.mubr.f32.gmra.mrb[4].mxu1 %v7482_v18 }
 0x1a8   : > { %5881 = vmatpush3.bf16.msra.mxu0 %v5878_v15  ;;  %6169 = vmatpush3.bf16.msra.mxu1 %v5878_v15 }
 0x1a9   : > { %5039 = vmatprep.mubr.f32.mxu0 %v7487_v19  ;;  %5543 = vmatprep.mubr.f32.mxu1 %v7490_v20 }
 0x1aa   : > { %5883 = vmatprep.subr.bf16.mxu0 %v5882_v10  ;;  %6171 = vmatprep.subr.bf16.mxu1 %v5882_v10 }
 0x1ab   : > { %5040 = vmatmul.mubr.f32.gmra.mrb[6].mxu0 %v7495_v9  ;;  %5544 = vmatmul.mubr.f32.gmra.mrb[6].mxu1 %v7498_v35 }
 0x1ac   : > { %5885 = vmatpush3.bf16.msra.mxu0 %v5882_v10  ;;  %6173 = vmatpush3.bf16.msra.mxu1 %v5882_v10 }
 0x1ad   : > { %5042 = vmatprep.mubr.f32.mxu0 %v7503_v36  ;;  %5546 = vmatprep.mubr.f32.mxu1 %v7506_v44 }
 0x1ae   : > { %5887 = vmatprep.subr.bf16.mxu0 %v5886_v45  ;;  %6175 = vmatprep.subr.bf16.mxu1 %v5886_v45 }
 0x1af   : > { %5043 = vmatmul.mubr.f32.gmra.mrb[8].mxu0 %v7511_v0  ;;  %5547 = vmatmul.mubr.f32.gmra.mrb[8].mxu1 %v7514_v1 }
 0x1b0   : > { %5889 = vmatpush3.bf16.msra.mxu0 %v5886_v45  ;;  %6177 = vmatpush3.bf16.msra.mxu1 %v5886_v45 }
 0x1b1   : > { %5045 = vmatprep.mubr.f32.mxu0 %v7519_v33  ;;  %5549 = vmatprep.mubr.f32.mxu1 %v7522_v34 }
 0x1b2   : > { %5891 = vmatprep.subr.bf16.mxu0 %v5890_v48  ;;  %6179 = vmatprep.subr.bf16.mxu1 %v5890_v48 }
 0x1b3   : > { %5046 = vmatmul.mubr.f32.gmra.mrb[10].mxu0 %v7527_v27  ;;  %5550 = vmatmul.mubr.f32.gmra.mrb[10].mxu1 %v7530_v28 }
 0x1b4   : > { %5893 = vmatpush3.bf16.msra.mxu0 %v5890_v48  ;;  %6181 = vmatpush3.bf16.msra.mxu1 %v5890_v48 }
 0x1b5   : > { %5048 = vmatprep.mubr.f32.mxu0 %v7535_v29  ;;  %5552 = vmatprep.mubr.f32.mxu1 %v7538_v30 }
 0x1b6   : > { %5895 = vmatprep.subr.bf16.mxu0 %v5894_v60  ;;  %6183 = vmatprep.subr.bf16.mxu1 %v5894_v60 }
 0x1b7   : > { %5049 = vmatmul.mubr.f32.gmra.mrb[12].mxu0 %v7543_v43  ;;  %5553 = vmatmul.mubr.f32.gmra.mrb[12].mxu1 %v7546_v51 }
 0x1b8   : > { %5897 = vmatpush3.bf16.msra.mxu0 %v5894_v60  ;;  %6185 = vmatpush3.bf16.msra.mxu1 %v5894_v60 }
 0x1b9   : > { %5051 = vmatprep.mubr.f32.mxu0 %v7431_v39  ;;  %5555 = vmatprep.mubr.f32.mxu1 %v3987_v12 }
 0x1ba   : > { %5899 = vmatprep.subr.bf16.mxu0 %v5898_v13  ;;  %6187 = vmatprep.subr.bf16.mxu1 %v5898_v13 }
 0x1bb   : > { %5052 = vmatmul.mubr.f32.gmra.mrb[14].mxu0 %v7436_v32  ;;  %5556 = vmatmul.mubr.f32.gmra.mrb[14].mxu1 %v3988_v14 }
 0x1bc   : > { %5901 = vmatpush3.bf16.msra.mxu0 %v5898_v13  ;;  %6189 = vmatpush3.bf16.msra.mxu1 %v5898_v13  ;;  %v3998_v13 = vld [vmem:[%s7040_s1 + $0x190] sm:$0xff] }
 0x1bd   : > { %5086 = vmatprep.mubr.f32.mxu0 %v7455_v55  ;;  %5590 = vmatprep.mubr.f32.mxu1 %v7458_v59  ;;  %v3989_v55 = vld [vmem:[%s7029_s11 + $0x229] sm:$0xff]  ;;  %v3990_v59 = vld [vmem:[%s7029_s11 + $0x231] sm:$0xff] }
 0x1bf   : > { %5087 = vmatmul.mubr.f32.vlgmr.msra.gmra.mrb[0].mxu0 %v7463_v2  ;;  %5591 = vmatmul.mubr.f32.vlgmr.msra.gmra.mrb[0].mxu1 %v7466_v3  ;;  %v7614_v2 = vld [vmem:[#allocation7] ss:$0 sm:$0xff] }
 0x1c0   : > { %5089 = vmatprep.mubr.f32.mxu0 %v7471_v5  ;;  %5593 = vmatprep.mubr.f32.mxu1 %v7474_v11  ;;  %v3915_v5 = vld [vmem:[%s7040_s1 + $0x30] sm:$0xff] }
 0x1c3   : > { %5090 = vmatmul.mubr.f32.gmra.mrb[2].mxu0 %v7479_v17  ;;  %5594 = vmatmul.mubr.f32.gmra.mrb[2].mxu1 %v7482_v18  ;;  %v3914_v18 = vld [vmem:[%s7040_s1 + $0x28] sm:$0xff] }
 0x1c4   : > { %5092 = vmatprep.mubr.f32.mxu0 %v7487_v19  ;;  %5596 = vmatprep.mubr.f32.mxu1 %v7490_v20  ;;  %v3991_v20 = vld [vmem:[%s7040_s1 + $0x128] sm:$0xff] }
 0x1c7   : > { %5093 = vmatmul.mubr.f32.gmra.mrb[4].mxu0 %v7495_v9  ;;  %5597 = vmatmul.mubr.f32.gmra.mrb[4].mxu1 %v7498_v35 }
 0x1c8   : > { %5095 = vmatprep.mubr.f32.mxu0 %v7503_v36  ;;  %5599 = vmatprep.mubr.f32.mxu1 %v7506_v44  ;;  %v3917_v44 = vld [vmem:[%s7040_s1 + $0x50] sm:$0xff] }
 0x1cb   : > { %5096 = vmatmul.mubr.f32.gmra.mrb[6].mxu0 %v7511_v0  ;;  %5600 = vmatmul.mubr.f32.gmra.mrb[6].mxu1 %v7514_v1 }
 0x1cc   : > { %5098 = vmatprep.mubr.f32.mxu0 %v7519_v33  ;;  %5602 = vmatprep.mubr.f32.mxu1 %v7522_v34 }
 0x1cf   : > { %5099 = vmatmul.mubr.f32.gmra.mrb[8].mxu0 %v7527_v27  ;;  %5603 = vmatmul.mubr.f32.gmra.mrb[8].mxu1 %v7530_v28 }
 0x1d0   : > { %5101 = vmatprep.mubr.f32.mxu0 %v7535_v29  ;;  %5605 = vmatprep.mubr.f32.mxu1 %v7538_v30 }
 0x1d3   : > { %5102 = vmatmul.mubr.f32.gmra.mrb[10].mxu0 %v7543_v43  ;;  %5606 = vmatmul.mubr.f32.gmra.mrb[10].mxu1 %v7546_v51 }
 0x1d4   : > { %5104 = vmatprep.mubr.f32.mxu0 %v7431_v39  ;;  %5608 = vmatprep.mubr.f32.mxu1 %v3987_v12  ;;  %v3992_v39 = vld [vmem:[%s7040_s1 + $0x130] sm:$0xff] }
 0x1d7   : > { %5105 = vmatmul.mubr.f32.gmra.mrb[12].mxu0 %v7436_v32  ;;  %5609 = vmatmul.mubr.f32.gmra.mrb[12].mxu1 %v3988_v14 }
 0x1d8   : > { %5107 = vmatprep.mubr.f32.mxu0 %v7443_v21  ;;  %5611 = vmatprep.mubr.f32.mxu1 %v3989_v55 }
 0x1db   : > { %5108 = vmatmul.mubr.f32.gmra.mrb[14].mxu0 %v7450_v54  ;;  %5612 = vmatmul.mubr.f32.gmra.mrb[14].mxu1 %v3990_v59 }
 0x292   : > { %v5088_v3 = vpop.f32.mrb[0].mxu0  ;;  %v5592_v11 = vpop.f32.mrb[0].mxu1 }
 0x293   : > { %v1972_v32 = vadd.f32 %v5088_v3, %v7614_v2  ;;  %v3687_v17 = vadd.f32 %v5592_v11, %v7614_v2  ;;  %v1850_v21 = vpop.f32.mrb[1].mxu0  ;;  %v3565_v19 = vpop.f32.mrb[1].mxu1  ;;  %v3920_v11 = vld [vmem:[%s7040_s1 + $0x88] sm:$0xff] }
 0x294   : > { %v1971_v54 = vadd.f32 %v7614_v2, %v1850_v21  ;;  %v3686_v24 = vadd.f32 %v7614_v2, %v3565_v19 }
 0x295   : > { %v1988_v25 = vadd.f32 %v3915_v5, %v1972_v32  ;;  %v3703_v26 = vadd.f32 %v3992_v39, %v3687_v17  ;;  %v3997_v32 = vld [vmem:[%s7040_s1 + $0x188] sm:$0xff] }
 0x296   : > { %v1987_v9 = vadd.f32 %v3914_v18, %v1971_v54  ;;  %v3702_v35 = vadd.f32 %v3991_v20, %v3686_v24  ;;  %v5091_v36 = vpop.f32.mrb[2].mxu0  ;;  %v5595_v49 = vpop.f32.mrb[2].mxu1 }
 0x297   : > { %v2004_v63 = vmax.f32 %v1988_v25, 0.0  ;;  %v3719_v0 = vmax.f32 %v3703_v26, 0.0  ;;  %v1974_v1 = vadd.f32 %v5091_v36, %v7614_v2  ;;  %v3689_v33 = vadd.f32 %v5595_v49, %v7614_v2  ;;  %v1860_v34 = vpop.f32.mrb[3].mxu0  ;;  %v3575_v23 = vpop.f32.mrb[3].mxu1  ;;  %v4000_v36 = vld [vmem:[%s7040_s1 + $0x1b0] sm:$0xff] }
 0x298   : > { %v2003_v27 = vmax.f32 %v1987_v9, 0.0  ;;  %v3718_v28 = vmax.f32 %v3702_v35, 0.0  ;;  %v1973_v29 = vadd.f32 %v7614_v2, %v1860_v34  ;;  %v3688_v30 = vadd.f32 %v7614_v2, %v3575_v23  ;;  %v3923_v9 = vld [vmem:[%s7040_s1 + $0xb0] sm:$0xff]  ;;  %v3999_v34 = vld [vmem:[%s7040_s1 + $0x1a8] sm:$0xff] }
 0x299   : > { %2022 = vst [vmem:[%s7633_s25 + $0x8] sm:$0xff] %v2004_v63  ;;  %4009 = vst [vmem:[%s7633_s25 + $0x88] sm:$0xff] %v3719_v0  ;;  %v1990_v31 = vadd.f32 %v3917_v44, %v1974_v1  ;;  %v3705_v37 = vadd.f32 %v3994_v50, %v3689_v33  ;;  %v3922_v1 = vld [vmem:[%s7040_s1 + $0xa8] sm:$0xff] }
 0x29a   : > { %2021 = vst [vmem:[%s7633_s25] sm:$0xff] %v2003_v27  ;;  %4008 = vst [vmem:[%s7633_s25 + $0x80] sm:$0xff] %v3718_v28  ;;  %v1989_v42 = vadd.f32 %v3916_v22, %v1973_v29  ;;  %v3704_v43 = vadd.f32 %v3993_v16, %v3688_v30  ;;  %v5094_v51 = vpop.f32.mrb[4].mxu0  ;;  %v5598_v57 = vpop.f32.mrb[4].mxu1 }
 0x29b   : > { %v2006_v6 = vmax.f32 %v1990_v31, 0.0  ;;  %v3721_v7 = vmax.f32 %v3705_v37, 0.0  ;;  %v1976_v8 = vadd.f32 %v5094_v51, %v7614_v2  ;;  %v3691_v15 = vadd.f32 %v5598_v57, %v7614_v2  ;;  %v1870_v38 = vpop.f32.mrb[5].mxu0  ;;  %v3585_v10 = vpop.f32.mrb[5].mxu1  ;;  %v4002_v51 = vld [vmem:[%s7040_s1 + $0x1d0] sm:$0xff] }
 0x29c   : > { %v2005_v41 = vmax.f32 %v1989_v42, 0.0  ;;  %v3720_v45 = vmax.f32 %v3704_v43, 0.0  ;;  %v1975_v46 = vadd.f32 %v7614_v2, %v1870_v38  ;;  %v3690_v47 = vadd.f32 %v7614_v2, %v3585_v10  ;;  %v3925_v42 = vld [vmem:[%s7040_s1 + $0xd0] sm:$0xff]  ;;  %v4001_v38 = vld [vmem:[%s7040_s1 + $0x1c8] sm:$0xff] }
 0x29d   : > { %2024 = vst [vmem:[%s7633_s25 + $0x18] sm:$0xff] %v2006_v6  ;;  %4011 = vst [vmem:[%s7633_s25 + $0x98] sm:$0xff] %v3721_v7  ;;  %v1992_v48 = vadd.f32 %v3919_v56, %v1976_v8  ;;  %v3707_v52 = vadd.f32 %v3996_v58, %v3691_v15  ;;  %v3924_v8 = vld [vmem:[%s7040_s1 + $0xc8] sm:$0xff] }
 0x29e   : > { %2023 = vst [vmem:[%s7633_s25 + $0x10] sm:$0xff] %v2005_v41  ;;  %4010 = vst [vmem:[%s7633_s25 + $0x90] sm:$0xff] %v3720_v45  ;;  %v1991_v53 = vadd.f32 %v3918_v4, %v1975_v46  ;;  %v3706_v60 = vadd.f32 %v3995_v40, %v3690_v47  ;;  %v5097_v61 = vpop.f32.mrb[6].mxu0  ;;  %v5601_v12 = vpop.f32.mrb[6].mxu1 }
 0x29f   : > { %v2008_v14 = vmax.f32 %v1992_v48, 0.0  ;;  %v3723_v55 = vmax.f32 %v3707_v52, 0.0  ;;  %v1978_v59 = vadd.f32 %v5097_v61, %v7614_v2  ;;  %v3693_v3 = vadd.f32 %v5601_v12, %v7614_v2  ;;  %v1880_v5 = vpop.f32.mrb[7].mxu0  ;;  %v3595_v39 = vpop.f32.mrb[7].mxu1  ;;  %v4004_v61 = vld [vmem:[%s7040_s1 + $0x1f0] sm:$0xff] }
 0x2a0   : > { %v2007_v17 = vmax.f32 %v1991_v53, 0.0  ;;  %v3722_v21 = vmax.f32 %v3706_v60, 0.0  ;;  %v1977_v18 = vadd.f32 %v7614_v2, %v1880_v5  ;;  %v3692_v19 = vadd.f32 %v7614_v2, %v3595_v39  ;;  %v3927_v53 = vld [vmem:[%s7040_s1 + $0xf0] sm:$0xff]  ;;  %v4003_v5 = vld [vmem:[%s7040_s1 + $0x1e8] sm:$0xff] }
 0x2a1   : > { %2026 = vst [vmem:[%s7633_s25 + $0x28] sm:$0xff] %v2008_v14  ;;  %4013 = vst [vmem:[%s7633_s25 + $0xa8] sm:$0xff] %v3723_v55  ;;  %v1994_v20 = vadd.f32 %v3921_v62, %v1978_v59  ;;  %v3709_v54 = vadd.f32 %v3998_v13, %v3693_v3  ;;  %v3926_v59 = vld [vmem:[%s7040_s1 + $0xe8] sm:$0xff] }
 0x2a2   : > { %2025 = vst [vmem:[%s7633_s25 + $0x20] sm:$0xff] %v2007_v17  ;;  %4012 = vst [vmem:[%s7633_s25 + $0xa0] sm:$0xff] %v3722_v21  ;;  %v1993_v24 = vadd.f32 %v3920_v11, %v1977_v18  ;;  %v3708_v25 = vadd.f32 %v3997_v32, %v3692_v19  ;;  %v5100_v26 = vpop.f32.mrb[8].mxu0  ;;  %v5604_v35 = vpop.f32.mrb[8].mxu1 }
 0x2a3   : > { %v2010_v44 = vmax.f32 %v1994_v20, 0.0  ;;  %v3725_v49 = vmax.f32 %v3709_v54, 0.0  ;;  %v1980_v50 = vadd.f32 %v5100_v26, %v7614_v2  ;;  %v3695_v63 = vadd.f32 %v5604_v35, %v7614_v2  ;;  %v1890_v0 = vpop.f32.mrb[9].mxu0  ;;  %v3605_v33 = vpop.f32.mrb[9].mxu1  ;;  %v4006_v26 = vld [vmem:[%s7040_s1 + $0x210] sm:$0xff] }
 0x2a4   : > { %v2009_v22 = vmax.f32 %v1993_v24, 0.0  ;;  %v3724_v23 = vmax.f32 %v3708_v25, 0.0  ;;  %v1979_v16 = vadd.f32 %v7614_v2, %v1890_v0  ;;  %v3694_v27 = vadd.f32 %v7614_v2, %v3605_v33  ;;  %v3929_v24 = vld [vmem:[%s7040_s1 + $0x110] sm:$0xff]  ;;  %v4005_v0 = vld [vmem:[%s7040_s1 + $0x208] sm:$0xff] }
 0x2a5   : > { %2028 = vst [vmem:[%s7633_s25 + $0x38] sm:$0xff] %v2010_v44  ;;  %4015 = vst [vmem:[%s7633_s25 + $0xb8] sm:$0xff] %v3725_v49  ;;  %v1996_v28 = vadd.f32 %v3923_v9, %v1980_v50  ;;  %v3711_v29 = vadd.f32 %v4000_v36, %v3695_v63  ;;  %v3928_v50 = vld [vmem:[%s7040_s1 + $0x108] sm:$0xff] }
 0x2a6   : > { %2027 = vst [vmem:[%s7633_s25 + $0x30] sm:$0xff] %v2009_v22  ;;  %4014 = vst [vmem:[%s7633_s25 + $0xb0] sm:$0xff] %v3724_v23  ;;  %v1995_v30 = vadd.f32 %v3922_v1, %v1979_v16  ;;  %v3710_v31 = vadd.f32 %v3999_v34, %v3694_v27  ;;  %v5103_v37 = vpop.f32.mrb[10].mxu0  ;;  %v5607_v43 = vpop.f32.mrb[10].mxu1 }
 0x2a7   : > { %v2012_v56 = vmax.f32 %v1996_v28, 0.0  ;;  %v3727_v57 = vmax.f32 %v3711_v29, 0.0  ;;  %v1982_v58 = vadd.f32 %v5103_v37, %v7614_v2  ;;  %v3697_v6 = vadd.f32 %v5607_v43, %v7614_v2  ;;  %v1900_v7 = vpop.f32.mrb[11].mxu0  ;;  %v3615_v15 = vpop.f32.mrb[11].mxu1 }
 0x2a8   : > { %v2011_v4 = vmax.f32 %v1995_v30, 0.0  ;;  %v3726_v10 = vmax.f32 %v3710_v31, 0.0  ;;  %v1981_v40 = vadd.f32 %v7614_v2, %v1900_v7  ;;  %v3696_v41 = vadd.f32 %v7614_v2, %v3615_v15 }
 0x2a9   : > { %2030 = vst [vmem:[%s7633_s25 + $0x48] sm:$0xff] %v2012_v56  ;;  %4017 = vst [vmem:[%s7633_s25 + $0xc8] sm:$0xff] %v3727_v57  ;;  %v1998_v45 = vadd.f32 %v3925_v42, %v1982_v58  ;;  %v3713_v46 = vadd.f32 %v4002_v51, %v3697_v6 }
 0x2aa   : > { %2029 = vst [vmem:[%s7633_s25 + $0x40] sm:$0xff] %v2011_v4  ;;  %4016 = vst [vmem:[%s7633_s25 + $0xc0] sm:$0xff] %v3726_v10  ;;  %v1997_v47 = vadd.f32 %v3924_v8, %v1981_v40  ;;  %v3712_v48 = vadd.f32 %v4001_v38, %v3696_v41  ;;  %v5106_v52 = vpop.f32.mrb[12].mxu0  ;;  %v5610_v60 = vpop.f32.mrb[12].mxu1 }
 0x2ab   : > { %v2014_v62 = vmax.f32 %v1998_v45, 0.0  ;;  %v3729_v12 = vmax.f32 %v3713_v46, 0.0  ;;  %v1984_v13 = vadd.f32 %v5106_v52, %v7614_v2  ;;  %v3699_v14 = vadd.f32 %v5610_v60, %v7614_v2  ;;  %v1910_v55 = vpop.f32.mrb[13].mxu0  ;;  %v3625_v3 = vpop.f32.mrb[13].mxu1 }
 0x2ac   : > { %v2013_v11 = vmax.f32 %v1997_v47, 0.0  ;;  %v3728_v39 = vmax.f32 %v3712_v48, 0.0  ;;  %v1983_v32 = vadd.f32 %v7614_v2, %v1910_v55  ;;  %v3698_v17 = vadd.f32 %v7614_v2, %v3625_v3 }
 0x2ad   : > { %2032 = vst [vmem:[%s7633_s25 + $0x58] sm:$0xff] %v2014_v62  ;;  %4019 = vst [vmem:[%s7633_s25 + $0xd8] sm:$0xff] %v3729_v12  ;;  %v2000_v21 = vadd.f32 %v3927_v53, %v1984_v13  ;;  %v3715_v18 = vadd.f32 %v4004_v61, %v3699_v14 }
 0x2ae   : > { %2031 = vst [vmem:[%s7633_s25 + $0x50] sm:$0xff] %v2013_v11  ;;  %4018 = vst [vmem:[%s7633_s25 + $0xd0] sm:$0xff] %v3728_v39  ;;  %v1999_v19 = vadd.f32 %v3926_v59, %v1983_v32  ;;  %v3714_v20 = vadd.f32 %v4003_v5, %v3698_v17  ;;  %v5109_v54 = vpop.f32.mrb[14].mxu0  ;;  %v5613_v25 = vpop.f32.mrb[14].mxu1 }
 0x2af   : > { %v2016_v9 = vmax.f32 %v2000_v21, 0.0  ;;  %v3731_v35 = vmax.f32 %v3715_v18, 0.0  ;;  %v1986_v36 = vadd.f32 %v5109_v54, %v7614_v2  ;;  %v3701_v44 = vadd.f32 %v5613_v25, %v7614_v2  ;;  %v1920_v49 = vpop.f32.mrb[15].mxu0  ;;  %v3635_v63 = vpop.f32.mrb[15].mxu1 }
 0x2b0   : > { %v2015_v1 = vmax.f32 %v1999_v19, 0.0  ;;  %v3730_v33 = vmax.f32 %v3714_v20, 0.0  ;;  %v1985_v34 = vadd.f32 %v7614_v2, %v1920_v49  ;;  %v3700_v22 = vadd.f32 %v7614_v2, %v3635_v63 }
 0x2b1   : > { %2034 = vst [vmem:[%s7633_s25 + $0x68] sm:$0xff] %v2016_v9  ;;  %4021 = vst [vmem:[%s7633_s25 + $0xe8] sm:$0xff] %v3731_v35  ;;  %v2002_v23 = vadd.f32 %v3929_v24, %v1986_v36  ;;  %v3717_v16 = vadd.f32 %v4006_v26, %v3701_v44 }
 0x2b2   : > { %2033 = vst [vmem:[%s7633_s25 + $0x60] sm:$0xff] %v2015_v1  ;;  %4020 = vst [vmem:[%s7633_s25 + $0xe0] sm:$0xff] %v3730_v33  ;;  %v2001_v27 = vadd.f32 %v3928_v50, %v1985_v34  ;;  %v3716_v28 = vadd.f32 %v4005_v0, %v3700_v22 }
 0x2b3   : > { %v2018_v29 = vmax.f32 %v2002_v23, 0.0  ;;  %v3733_v30 = vmax.f32 %v3717_v16, 0.0 }
 0x2b4   : > { %v2017_v2 = vmax.f32 %v2001_v27, 0.0  ;;  %v3732_v31 = vmax.f32 %v3716_v28, 0.0 }
 0x2b5   : > { %2036 = vst [vmem:[%s7633_s25 + $0x78] sm:$0xff] %v2018_v29  ;;  %4023 = vst [vmem:[%s7633_s25 + $0xf8] sm:$0xff] %v3733_v30 }
 0x2b6   : > { %2035 = vst [vmem:[%s7633_s25 + $0x70] sm:$0xff] %v2017_v2  ;;  %4022 = vst [vmem:[%s7633_s25 + $0xf0] sm:$0xff] %v3732_v31 }
 0x2b7   : > { %6672 = shalt.err (!%p6669_p7)
}
 0x2b8   : > { %s6673_s6 = scalar_lea.hbm %s7716_s18, 4096  ;;  %s6677_s9 = scalar_lea.hbm %s7775_s4, 8192 }
 0x2b9   : > { %p6674_p1 = scmp.ne.s32.totalorder %s7716_s18, %s6673_s6  ;;  %p6678_p11 = scmp.lt.u32.totalorder %s7716_s18, %s7775_s4 }
 0x2ba   : > { %p6679_p12 = scmp.lt.u32.totalorder %s6677_s9, %s6673_s6  ;;  %p6681_p8 = scmp.lt.u32.totalorder %s6673_s6, %s7716_s18 }
 0x2bb   : > { %p6675_p3 = pnand %p6674_p1, %p7803_p10 }
 0x2bc   : > { %p6680_p9 = por %p6679_p12, %p6678_p11 }
 0x2bd   : > { %p6676_p5 = pneg %p6675_p3 }
 0x2be   : > { %p6682_p2 = por %p6681_p8, %p6680_p9 }
 0x2c0   : > { %p6683_p0 = pnand %p6682_p2, %p6676_p5 }
 0x2c2   : > { %6686 = shalt.err (!%p6683_p0)
}
 0x2c3   : > { %s6758_s1 = smov 128   ;;  %s6759_s23 = smov 8  }
 0x2c4   : > { %6463 = dma.vmem_to_hbm [thread:$0]  (%p7803_p10), %s7718_s22, 4096, %s7716_s18, %s3753_s8, %s6758_s1, %s6758_s1, %s6759_s23  }
 0x2c5 PF: > { %s3782_s25 = sand.u32 1, %s6729_s15   ;;  %p7804_p4 = scmp.ne.s32.totalorder %s7790_s26, 0 }
 0x2c6   : > { %p7805_p13 = scmp.ge.s32.totalorder %s6749_s20, 2  ;;  %s3783_s27 = scalar_lea.sflag [#allocation4], %s3782_s25 }
 0x2c8   : > { %p6480_p6 = pnand %p7805_p13, %p7804_p4 }
 0x2ca   : > { %6724 = dma.done.wait (!%p6480_p6), %s3783_s27, 4096  }
 0x2cb   : > { %6726 = vsyncadd (!%p6480_p6), %s3783_s27, 4294963200  ;;  %s24_s20 = sadd.s32 1, %s6749_s20   ;;  %s7806_s15 = smov %s6733_s16 }
 0x2cc   : > { %p21_p7 = scmp.ge.s32.totalorder %s24_s20, 4   ;;  %s7807_s16 = smov %s6737_s17 }
 0x2cd   : > { %s7808_s17 = smov %s6937_s12  ;;  %s7809_s18 = smov %s6745_s19 }
 0x2ce   : > { %s7810_s19 = smov %s7812_s7  ;;  %23 = sbr.rel (!%p21_p7) target bundleno = 13 (0xd), region = 118 }
 0x2d5   :  { %3788 = vsyncpa [#allocation3], 1 }
 0x2d6   :  { %3790 = vsyncpa [#allocation3 + $0x1], 1 }
 0x2d7   :  { %3791 = vsyncpa [#allocation6], 1 }
 0x2d8   :  { %3792 = vsyncpa [#allocation9], 1 }
 0x2d9   :  { %3794 = vsyncpa [#allocation9 + $0x1], 1 }
 0x2da   :  { %3795 = vsyncpa [#allocation4], 1 }
 0x2db   :  { %3797 = vsyncpa [#allocation4 + $0x1], 1 }

</bundles_post_ra>
